<compile_context>
chip_gen: v6e
topology: v6e:2x2x1
jax: 0.10.0
libtpu: 0.0.40
codegen_flags: <defaults>
</compile_context>

<pallas_src>
import functools

import jax
import jax.numpy as jnp
from jax.experimental import pallas as pl
from jax.experimental.pallas import tpu as pltpu

LANE = 128      # vreg lane width
SUBLANE = 8     # f32 sublane height

# Kernel weight-argument order (blin is dropped: it cancels in the softmax).
KERNEL_WEIGHTS = [
    "wvp", "bvp",    # NewAttention.v_proj : FCNet([v_dim, H]) -> Linear + ReLU
    "wqp", "bqp",    # NewAttention.q_proj : FCNet([q_dim, H]) -> Linear + ReLU
    "wlin",          # NewAttention.linear : Linear(H, 1) folded into q_proj (VPU/XLU path)
    "wqn", "bqn",    # q_net : FCNet([q_dim, H])
    "wvn", "bvn",    # v_net : FCNet([v_dim, H])
    "wc1", "bc1",    # classifier.linear1 : Linear(H, 2H) + ReLU
    "wc2", "bc2",    # classifier.linear2 : Linear(2H, num_ans)
]
MXU_WEIGHTS = ("wvp", "wqp", "wqn", "wvn", "wc1", "wc2")   # stored in bf16


def _round_up(n, m):
    return ((n + m - 1) // m) * m


def _vmem_limit_bytes():
    """Per-generation scoped-VMEM limit (capacity minus headroom), not a hard-coded 32 MiB."""
    try:
        cap = int(pltpu.get_tpu_info().vmem_capacity_bytes)
    except Exception:
        cap = 64 * 1024 * 1024           # conservative (v7x-sized) fallback
    return max(32 * 1024 * 1024, cap - 8 * 1024 * 1024)


def updn_kernel(v_ref, q_ref,
                wvp_ref, bvp_ref, wqp_ref, bqp_ref, wlin_ref,
                wqn_ref, bqn_ref, wvn_ref, bvn_ref,
                wc1_ref, bc1_ref, wc2_ref, bc2_ref,
                o_ref, *, regions):
    """One grid step == BM batch elements (v block is [BM*K_pad, v_dim_pad] bf16)."""
    f32 = jnp.float32
    bf16 = jnp.bfloat16

    q_in = q_ref[...]                      # [BM, Qd_p] (bf16 or f32)
    bm = q_in.shape[0]
    v_bf = v_ref[...]                      # [BM*K_p, Vd_p] bf16
    kp = v_bf.shape[0] // bm
    q_bf = q_in.astype(bf16)               # no-op when q already ships as bf16

    # ---- NewAttention: v_proj / q_proj (FCNet = weight_norm Linear + ReLU) ----
    v_proj = jnp.maximum(
        jnp.dot(v_bf, wvp_ref[...], preferred_element_type=f32) + bvp_ref[...],
        0.0)                                                    # [BM*K_p, H_p] f32
    q_proj = jnp.maximum(
        jnp.dot(q_bf, wqp_ref[...], preferred_element_type=f32) + bqp_ref[...],
        0.0)                                                    # [BM, H_p] f32

    # Fold the width-1 Linear(H,1) into q_proj BEFORE the K broadcast; its scalar bias
    # is shared by all K logits and cancels in the softmax, so it is dropped.
    qw = q_proj * wlin_ref[...]                                 # [BM, H_p] f32
    att_logits = jnp.sum(v_proj.reshape(bm, kp, -1) * qw[:, None, :],
                         axis=-1, keepdims=True)                # [BM, K_p, 1] f32
    # TODO(synk): at production BM/K/H the [BM,K_p,H_p] f32 temporary above can bind
    # VMEM before the weights do; chunk K with a fori_loop or do the multiply in bf16.

    # Mask padded regions (zero-padded v rows) out of the softmax.
    if kp > regions:
        rid = jax.lax.broadcasted_iota(jnp.int32, att_logits.shape, 1)
        att_logits = jnp.where(rid < regions, att_logits, -jnp.inf)

    # ---- softmax over regions (torch dim=1), f32; divide on the EUP slot ----
    m = jnp.max(att_logits, axis=1, keepdims=True)
    e = jnp.exp(att_logits - m)
    denom = jnp.sum(e, axis=1, keepdims=True)
    att = e * pl.reciprocal(denom, approx=True)                 # [BM, K_p, 1]

    # ---- v_emb = (att * v).sum(1); upcast bf16 v to f32 only here ----
    v_emb = jnp.sum(att * v_bf.astype(f32).reshape(bm, kp, -1), axis=1)   # [BM, Vd_p]

    # ---- q_net / v_net (weight_norm Linear + ReLU) ----
    q_repr = jnp.maximum(
        jnp.dot(q_bf, wqn_ref[...], preferred_element_type=f32) + bqn_ref[...],
        0.0)                                                    # [BM, H_p]
    v_repr = jnp.maximum(
        jnp.dot(v_emb.astype(bf16), wvn_ref[...], preferred_element_type=f32)
        + bvn_ref[...],
        0.0)                                                    # [BM, H_p]
    joint_repr = q_repr * v_repr                                # [BM, H_p]

    # ---- SimpleClassifier: Linear -> ReLU -> (Dropout=id) -> Linear ----
    h = jnp.maximum(
        jnp.dot(joint_repr.astype(bf16), wc1_ref[...], preferred_element_type=f32)
        + bc1_ref[...],
        0.0)                                                    # [BM, H2_p]
    logits = (jnp.dot(h.astype(bf16), wc2_ref[...], preferred_element_type=f32)
              + bc2_ref[...])                                   # [BM, A_p]

    o_ref[...] = logits                                         # lane-dense unmasked store


def prepare_weights(params):
    """Pad / transpose / cast the weight dict ONCE (call at init, reuse across forwards)."""
    f32, bf16 = jnp.float32, jnp.bfloat16
    Vd, H = params["wvp"].shape
    Qd = params["wqp"].shape[0]
    H2 = params["wc1"].shape[1]
    A = params["wc2"].shape[1]
    Vd_p, Qd_p, H_p, H2_p, A_p = (_round_up(d, LANE) for d in (Vd, Qd, H, H2, A))

    def pad2(x, rows, cols, dtype):
        x = jnp.asarray(x, dtype)
        return jnp.pad(x, ((0, rows - x.shape[0]), (0, cols - x.shape[1])))

    # TODO(synk): on v6e wc1/wc2 could additionally be int8-quantized (per-column scales,
    # dequant in the f32 epilogue); not done here (needs accuracy validation, no int8 MXU on v7x).
    w = {
        "wvp": pad2(params["wvp"], Vd_p, H_p, bf16),
        "bvp": pad2(params["bvp"], 1, H_p, f32),
        "wqp": pad2(params["wqp"], Qd_p, H_p, bf16),
        "bqp": pad2(params["bqp"], 1, H_p, f32),
        # attention Linear(H, 1) stored as a [1, H_p] f32 row, folded into q_proj in-kernel
        "wlin": pad2(params["wlin"].T, 1, H_p, f32),
        "wqn": pad2(params["wqn"], Qd_p, H_p, bf16),
        "bqn": pad2(params["bqn"], 1, H_p, f32),
        "wvn": pad2(params["wvn"], Vd_p, H_p, bf16),
        "bvn": pad2(params["bvn"], 1, H_p, f32),
        "wc1": pad2(params["wc1"], H_p, H2_p, bf16),
        "bc1": pad2(params["bc1"], 1, H2_p, f32),
        "wc2": pad2(params["wc2"], H2_p, A_p, bf16),
        "bc2": pad2(params["bc2"], 1, A_p, f32),
    }
    meta = dict(Vd=Vd, Qd=Qd, H=H, H2=H2, A=A,
                Vd_p=Vd_p, Qd_p=Qd_p, H_p=H_p, H2_p=H2_p, A_p=A_p)
    return w, meta


def updn_forward(v, q_emb, weights, meta, *, block_b=256):
    B, K, Vd = v.shape
    Qd = q_emb.shape[-1]
    assert Vd == meta["Vd"] and Qd == meta["Qd"]
    Vd_p, Qd_p, H_p, H2_p, A_p, A = (meta[k] for k in
                                     ("Vd_p", "Qd_p", "H_p", "H2_p", "A_p", "A"))
    K_p = _round_up(K, SUBLANE)         # sublane-aligned regions (K=36 -> 40)

    # ---- batch block selection: bm % 8 == 0, bm | B_pad, grid length >= 2 when possible ----
    bm = max(SUBLANE, min(_round_up(block_b, SUBLANE), _round_up(B, SUBLANE)))
    if _round_up(B, bm) // bm == 1 and bm > SUBLANE:
        # Split into (at least) two grid steps so both v7x TensorCores get work.
        bm = _round_up(-(-B // 2), SUBLANE)
    B_pad = _round_up(B, bm)            # pad the batch rather than collapsing to grid=1
    grid = (B_pad // bm,)

    f32, bf16 = jnp.float32, jnp.bfloat16
    # q block sublane height is bm; bf16 needs a multiple of 16 there, else keep q in f32.
    q_dtype = bf16 if bm % 16 == 0 else f32

    # v cast ONCE to bf16 in the wrapper (dominant HBM->VMEM stream), flattened so
    # v_proj is one [BM*K_p, Vd_p] x [Vd_p, H_p] matmul per step.  Zero padding of
    # batch / regions / feature dims provably preserves the forward on the valid slice.
    v2 = jnp.pad(v.astype(bf16),
                 ((0, B_pad - B), (0, K_p - K), (0, Vd_p - Vd))
                 ).reshape(B_pad * K_p, Vd_p)
    q2 = jnp.pad(q_emb.astype(q_dtype), ((0, B_pad - B), (0, Qd_p - Qd)))

    weight_args = [weights[k] for k in KERNEL_WEIGHTS]

    # Advisory cost estimate so XLA schedules this call well vs. the text encoder.
    flops = 2 * B_pad * (K_p * Vd_p * H_p + Qd_p * H_p + K_p * H_p + K_p * Vd_p
                         + Qd_p * H_p + Vd_p * H_p + H_p * H2_p + H2_p * A_p)
    bytes_accessed = (v2.size * v2.dtype.itemsize + q2.size * q2.dtype.itemsize
                      + B_pad * A_p * 4
                      + sum(int(a.size) * a.dtype.itemsize for a in weight_args))
    cost = pl.CostEstimate(flops=int(flops), transcendentals=int(B_pad * (K_p + 1)),
                           bytes_accessed=int(bytes_accessed))

    def call(single_buffer_weights):
        def const_spec(arr):
            # Constant-index block: single-buffer it (the block index never changes
            # across the batch grid, so double-buffering is pure VMEM waste).
            if single_buffer_weights:
                return pl.BlockSpec(arr.shape, lambda b: (0, 0),
                                    pipeline_mode=pl.Buffered(1))
            return pl.BlockSpec(arr.shape, lambda b: (0, 0))

        # TODO(synk): at production sizes on v7x (64 MiB VMEM), stream wc2's A-dim
        # column tiles from HBM (memory_space=pl.ANY + pltpu.emit_pipeline) instead of
        # keeping it fully resident; v5e/v6e (128 MiB) keep everything resident.
        in_specs = [
            pl.BlockSpec((bm * K_p, Vd_p), lambda b: (b, 0)),
            pl.BlockSpec((bm, Qd_p), lambda b: (b, 0)),
        ] + [const_spec(a) for a in weight_args]

        return pl.pallas_call(
            functools.partial(updn_kernel, regions=K),
            grid=grid,
            in_specs=in_specs,
            out_specs=pl.BlockSpec((bm, A_p), lambda b: (b, 0)),
            out_shape=jax.ShapeDtypeStruct((B_pad, A_p), f32),
            compiler_params=pltpu.CompilerParams(
                # "parallel" batch grid -> megacore / both v7x TensorCores split it.
                dimension_semantics=("parallel",),
                vmem_limit_bytes=_vmem_limit_bytes()),
            cost_estimate=cost,
        )(v2, q2, *weight_args)

    try:
        out = call(True)
    except Exception:
        # Fallback for jax builds where pipeline_mode on pallas_call BlockSpecs is
        # unsupported: identical numerics, weights just double-buffered.
        out = call(False)
    return out[:B, :A]


# ---------------- parameter construction (deterministic) ----------------
def _weight_norm_linear(key, in_dim, out_dim, g_scale=0.9):
    """PyTorch weight_norm(Linear, dim=None) folded into an effective weight.

    W_eff = g * V / ||V||_F  (g scalar), g initialized to g_scale*||V||_F so the
    reparametrization is non-trivial.  Returns W_eff transposed to [in, out] and
    bias as [1, out], both f32.
    """
    kw, kb = jax.random.split(key)
    bound = 1.0 / jnp.sqrt(in_dim)
    V = jax.random.uniform(kw, (out_dim, in_dim), jnp.float32, -bound, bound)
    b = jax.random.uniform(kb, (out_dim,), jnp.float32, -bound, bound)
    g = g_scale * jnp.linalg.norm(V)
    W_eff = (g / jnp.linalg.norm(V)) * V
    return W_eff.T.astype(jnp.float32), b.reshape(1, out_dim).astype(jnp.float32)


def make_params(key, v_dim, q_dim, num_hid, num_ans):
    keys = jax.random.split(key, 7)
    p = {}
    p["wvp"], p["bvp"] = _weight_norm_linear(keys[0], v_dim, num_hid)        # v_att.v_proj
    p["wqp"], p["bqp"] = _weight_norm_linear(keys[1], q_dim, num_hid)        # v_att.q_proj
    p["wlin"], p["blin"] = _weight_norm_linear(keys[2], num_hid, 1)          # v_att.linear
    p["wqn"], p["bqn"] = _weight_norm_linear(keys[3], q_dim, num_hid)        # q_net
    p["wvn"], p["bvn"] = _weight_norm_linear(keys[4], v_dim, num_hid)        # v_net
    p["wc1"], p["bc1"] = _weight_norm_linear(keys[5], num_hid, 2 * num_hid)  # classifier.1
    p["wc2"], p["bc2"] = _weight_norm_linear(keys[6], 2 * num_hid, num_ans)  # classifier.2
    # MXU weights in bf16 (kernel accumulates in f32); biases / attention row / epilogue f32.
    for k in MXU_WEIGHTS:
        p[k] = p[k].astype(jnp.bfloat16)
    return p


# ---------------- pure-JAX reference of the same forward ----------------
def updn_reference(v, q, p):
    """Mirrors the kernel's numerics: bf16 matmul operands (and bf16 v for the
    attention-weighted sum), f32 accumulation, f32 biases / softmax / epilogue."""
    relu = jax.nn.relu
    f32, bf16 = jnp.float32, jnp.bfloat16
    v_bf = v.astype(bf16)
    q_bf = q.astype(bf16)
    v_proj = relu(jnp.einsum("bkv,vh->bkh", v_bf, p["wvp"],
                             preferred_element_type=f32) + p["bvp"])
    q_proj = relu(jnp.dot(q_bf, p["wqp"], preferred_element_type=f32) + p["bqp"])
    joint = v_proj * q_proj[:, None, :]
    att_logits = jnp.sum(joint * p["wlin"].T, axis=-1, keepdims=True) + p["blin"]
    att = jax.nn.softmax(att_logits, axis=1)
    v_emb = jnp.sum(att * v_bf.astype(f32), axis=1)
    q_repr = relu(jnp.dot(q_bf, p["wqn"], preferred_element_type=f32) + p["bqn"])
    v_repr = relu(jnp.dot(v_emb.astype(bf16), p["wvn"],
                          preferred_element_type=f32) + p["bvn"])
    joint_repr = q_repr * v_repr
    h = relu(jnp.dot(joint_repr.astype(bf16), p["wc1"],
                     preferred_element_type=f32) + p["bc1"])
    return jnp.dot(h.astype(bf16), p["wc2"], preferred_element_type=f32) + p["bc2"]


if __name__ == "__main__":
    # Small shapes consistent with the forward:
    #   B=16 batch (split into 2 grid steps of BM=8 -> both v7x TCs get work),
    #   K=6 regions (exercises the K->8 sublane padding + softmax mask),
    #   v_dim=64 object features, q_dim == num_hid = 32 (required by NewAttention.linear),
    #   num_ans = 16.
    B, K, Vd, H, A = 16, 6, 64, 32, 16
    Qd = H

    key = jax.random.PRNGKey(0)
    k_v, k_q, k_p = jax.random.split(key, 3)
    v = jax.random.normal(k_v, (B, K, Vd), jnp.float32)
    q_emb = jax.random.normal(k_q, (B, Qd), jnp.float32)
    params = make_params(k_p, Vd, Qd, H, A)
    prepared, meta = prepare_weights(params)   # pad/cast weights once, at init

    logits = jax.block_until_ready(updn_forward(v, q_emb, prepared, meta, block_b=256))
    ref = jax.block_until_ready(updn_reference(v, q_emb, params))

    assert logits.shape == (B, A), logits.shape
    assert jnp.allclose(logits, ref, atol=2e-2, rtol=2e-2), (
        "mismatch vs reference", float(jnp.max(jnp.abs(logits - ref))))
    print("KERNEL_OK")
</pallas_src>

<mosaic_0001>
module attributes {stable_mosaic.version = 11 : i64} {
  func.func @updn_kernel(%arg0: i32, %arg1: memref<64x128xbf16, #tpu.memory_space<vmem>>, %arg2: memref<8x128xf32, #tpu.memory_space<vmem>>, %arg3: memref<128x128xbf16, #tpu.memory_space<vmem>>, %arg4: memref<1x128xf32, #tpu.memory_space<vmem>>, %arg5: memref<128x128xbf16, #tpu.memory_space<vmem>>, %arg6: memref<1x128xf32, #tpu.memory_space<vmem>>, %arg7: memref<1x128xf32, #tpu.memory_space<vmem>>, %arg8: memref<128x128xbf16, #tpu.memory_space<vmem>>, %arg9: memref<1x128xf32, #tpu.memory_space<vmem>>, %arg10: memref<128x128xbf16, #tpu.memory_space<vmem>>, %arg11: memref<1x128xf32, #tpu.memory_space<vmem>>, %arg12: memref<128x128xbf16, #tpu.memory_space<vmem>>, %arg13: memref<1x128xf32, #tpu.memory_space<vmem>>, %arg14: memref<128x128xbf16, #tpu.memory_space<vmem>>, %arg15: memref<1x128xf32, #tpu.memory_space<vmem>>, %arg16: memref<8x128xf32, #tpu.memory_space<vmem>>) attributes {dimension_semantics = [#tpu.dimension_semantics<parallel>], iteration_bounds = array<i64: 2>, scalar_prefetch = 0 : i64, scratch_operands = 0 : i64, tpu.core_type = #tpu.core_type<tc>, window_params = [{transform_indices = @transform_0, window_bounds = array<i64: 64, 128>}, {transform_indices = @transform_1, window_bounds = array<i64: 8, 128>}, {pipeline_mode = #tpu.pipeline_mode<synchronous>, transform_indices = @transform_2, window_bounds = array<i64: 128, 128>}, {pipeline_mode = #tpu.pipeline_mode<synchronous>, transform_indices = @transform_3, window_bounds = array<i64: 1, 128>}, {pipeline_mode = #tpu.pipeline_mode<synchronous>, transform_indices = @transform_4, window_bounds = array<i64: 128, 128>}, {pipeline_mode = #tpu.pipeline_mode<synchronous>, transform_indices = @transform_5, window_bounds = array<i64: 1, 128>}, {pipeline_mode = #tpu.pipeline_mode<synchronous>, transform_indices = @transform_6, window_bounds = array<i64: 1, 128>}, {pipeline_mode = #tpu.pipeline_mode<synchronous>, transform_indices = @transform_7, window_bounds = array<i64: 128, 128>}, {pipeline_mode = #tpu.pipeline_mode<synchronous>, transform_indices = @transform_8, window_bounds = array<i64: 1, 128>}, {pipeline_mode = #tpu.pipeline_mode<synchronous>, transform_indices = @transform_9, window_bounds = array<i64: 128, 128>}, {pipeline_mode = #tpu.pipeline_mode<synchronous>, transform_indices = @transform_10, window_bounds = array<i64: 1, 128>}, {pipeline_mode = #tpu.pipeline_mode<synchronous>, transform_indices = @transform_11, window_bounds = array<i64: 128, 128>}, {pipeline_mode = #tpu.pipeline_mode<synchronous>, transform_indices = @transform_12, window_bounds = array<i64: 1, 128>}, {pipeline_mode = #tpu.pipeline_mode<synchronous>, transform_indices = @transform_13, window_bounds = array<i64: 128, 128>}, {pipeline_mode = #tpu.pipeline_mode<synchronous>, transform_indices = @transform_14, window_bounds = array<i64: 1, 128>}, {transform_indices = @transform_15, window_bounds = array<i64: 8, 128>}]} {
    %c0 = arith.constant 0 : index
    %c0_0 = arith.constant 0 : index
    %0 = vector.load %arg2[%c0, %c0_0] : memref<8x128xf32, #tpu.memory_space<vmem>>, vector<8x128xf32>
    %c0_1 = arith.constant 0 : index
    %c0_2 = arith.constant 0 : index
    %1 = vector.load %arg1[%c0_1, %c0_2] : memref<64x128xbf16, #tpu.memory_space<vmem>>, vector<64x128xbf16>
    %2 = arith.truncf %0 : vector<8x128xf32> to vector<8x128xbf16>
    %c0_3 = arith.constant 0 : index
    %c0_4 = arith.constant 0 : index
    %3 = vector.load %arg3[%c0_3, %c0_4] : memref<128x128xbf16, #tpu.memory_space<vmem>>, vector<128x128xbf16>
    %cst = arith.constant dense<0.000000e+00> : vector<64x128xf32>
    %4 = tpu.matmul %1, %3, %cst {dimension_numbers = #tpu.dot_dimension_numbers<[1], [0], [0], [1], [0, 0, 1, 1], [], []>} : vector<64x128xbf16>, vector<128x128xbf16>, vector<64x128xf32> -> vector<64x128xf32>
    %c0_5 = arith.constant 0 : index
    %c0_6 = arith.constant 0 : index
    %5 = vector.load %arg4[%c0_5, %c0_6] : memref<1x128xf32, #tpu.memory_space<vmem>>, vector<1x128xf32>
    %6 = vector.broadcast %5 : vector<1x128xf32> to vector<64x128xf32>
    %7 = arith.addf %4, %6 : vector<64x128xf32>
    %cst_7 = arith.constant 0.000000e+00 : f32
    %8 = vector.broadcast %cst_7 : f32 to vector<64x128xf32>
    %9 = arith.maximumf %7, %8 : vector<64x128xf32>
    %c0_8 = arith.constant 0 : index
    %c0_9 = arith.constant 0 : index
    %10 = vector.load %arg5[%c0_8, %c0_9] : memref<128x128xbf16, #tpu.memory_space<vmem>>, vector<128x128xbf16>
    %cst_10 = arith.constant dense<0.000000e+00> : vector<8x128xf32>
    %11 = tpu.matmul %2, %10, %cst_10 {dimension_numbers = #tpu.dot_dimension_numbers<[1], [0], [0], [1], [0, 0, 1, 1], [], []>} : vector<8x128xbf16>, vector<128x128xbf16>, vector<8x128xf32> -> vector<8x128xf32>
    %c0_11 = arith.constant 0 : index
    %c0_12 = arith.constant 0 : index
    %12 = vector.load %arg6[%c0_11, %c0_12] : memref<1x128xf32, #tpu.memory_space<vmem>>, vector<1x128xf32>
    %13 = vector.broadcast %12 : vector<1x128xf32> to vector<8x128xf32>
    %14 = arith.addf %11, %13 : vector<8x128xf32>
    %cst_13 = arith.constant 0.000000e+00 : f32
    %15 = vector.broadcast %cst_13 : f32 to vector<8x128xf32>
    %16 = arith.maximumf %14, %15 : vector<8x128xf32>
    %c0_14 = arith.constant 0 : index
    %c0_15 = arith.constant 0 : index
    %17 = vector.load %arg7[%c0_14, %c0_15] : memref<1x128xf32, #tpu.memory_space<vmem>>, vector<1x128xf32>
    %18 = vector.broadcast %17 : vector<1x128xf32> to vector<8x128xf32>
    %19 = arith.mulf %16, %18 : vector<8x128xf32>
    %20 = vector.shape_cast %9 : vector<64x128xf32> to vector<8x8x128xf32>
    %21 = vector.shape_cast %19 : vector<8x128xf32> to vector<8x1x128xf32>
    %22 = vector.broadcast %21 : vector<8x1x128xf32> to vector<8x8x128xf32>
    %23 = arith.mulf %20, %22 : vector<8x8x128xf32>
    %cst_16 = arith.constant dense<0.000000e+00> : vector<8x8xf32>
    %24 = vector.multi_reduction <add>, %23, %cst_16 [2] : vector<8x8x128xf32> to vector<8x8xf32>
    %25 = vector.shape_cast %24 : vector<8x8xf32> to vector<8x8x1xf32>
    %26 = tpu.iota {dimensions = array<i32: 1>} : vector<8x8x1xi32>
    %c6_i32 = arith.constant 6 : i32
    %27 = vector.broadcast %c6_i32 : i32 to vector<8x8x1xi32>
    %28 = arith.cmpi slt, %26, %27 : vector<8x8x1xi32>
    %cst_17 = arith.constant 0xFF800000 : f32
    %29 = vector.broadcast %cst_17 : f32 to vector<8x8x1xf32>
    %30 = arith.select %28, %25, %29 : vector<8x8x1xi1>, vector<8x8x1xf32>
    %cst_18 = arith.constant dense<0xFF800000> : vector<8x1xf32>
    %31 = vector.multi_reduction <maximumf>, %30, %cst_18 [1] : vector<8x8x1xf32> to vector<8x1xf32>
    %32 = vector.shape_cast %31 : vector<8x1xf32> to vector<8x1x1xf32>
    %33 = vector.broadcast %32 : vector<8x1x1xf32> to vector<8x8x1xf32>
    %34 = arith.subf %30, %33 : vector<8x8x1xf32>
    %35 = math.exp %34 : vector<8x8x1xf32>
    %cst_19 = arith.constant dense<0.000000e+00> : vector<8x1xf32>
    %36 = vector.multi_reduction <add>, %35, %cst_19 [1] : vector<8x8x1xf32> to vector<8x1xf32>
    %37 = vector.shape_cast %36 : vector<8x1xf32> to vector<8x1x1xf32>
    %38 = tpu.reciprocal %37 {approx = true} : vector<8x1x1xf32> -> vector<8x1x1xf32>
    %39 = vector.broadcast %38 : vector<8x1x1xf32> to vector<8x8x1xf32>
    %40 = arith.mulf %35, %39 : vector<8x8x1xf32>
    %41 = arith.extf %1 : vector<64x128xbf16> to vector<64x128xf32>
    %42 = vector.shape_cast %41 : vector<64x128xf32> to vector<8x8x128xf32>
    %43 = vector.broadcast %40 : vector<8x8x1xf32> to vector<8x8x128xf32>
    %44 = arith.mulf %43, %42 : vector<8x8x128xf32>
    %cst_20 = arith.constant dense<0.000000e+00> : vector<8x128xf32>
    %45 = vector.multi_reduction <add>, %44, %cst_20 [1] : vector<8x8x128xf32> to vector<8x128xf32>
    %c0_21 = arith.constant 0 : index
    %c0_22 = arith.constant 0 : index
    %46 = vector.load %arg8[%c0_21, %c0_22] : memref<128x128xbf16, #tpu.memory_space<vmem>>, vector<128x128xbf16>
    %cst_23 = arith.constant dense<0.000000e+00> : vector<8x128xf32>
    %47 = tpu.matmul %2, %46, %cst_23 {dimension_numbers = #tpu.dot_dimension_numbers<[1], [0], [0], [1], [0, 0, 1, 1], [], []>} : vector<8x128xbf16>, vector<128x128xbf16>, vector<8x128xf32> -> vector<8x128xf32>
    %c0_24 = arith.constant 0 : index
    %c0_25 = arith.constant 0 : index
    %48 = vector.load %arg9[%c0_24, %c0_25] : memref<1x128xf32, #tpu.memory_space<vmem>>, vector<1x128xf32>
    %49 = vector.broadcast %48 : vector<1x128xf32> to vector<8x128xf32>
    %50 = arith.addf %47, %49 : vector<8x128xf32>
    %cst_26 = arith.constant 0.000000e+00 : f32
    %51 = vector.broadcast %cst_26 : f32 to vector<8x128xf32>
    %52 = arith.maximumf %50, %51 : vector<8x128xf32>
    %53 = arith.truncf %45 : vector<8x128xf32> to vector<8x128xbf16>
    %c0_27 = arith.constant 0 : index
    %c0_28 = arith.constant 0 : index
    %54 = vector.load %arg10[%c0_27, %c0_28] : memref<128x128xbf16, #tpu.memory_space<vmem>>, vector<128x128xbf16>
    %cst_29 = arith.constant dense<0.000000e+00> : vector<8x128xf32>
    %55 = tpu.matmul %53, %54, %cst_29 {dimension_numbers = #tpu.dot_dimension_numbers<[1], [0], [0], [1], [0, 0, 1, 1], [], []>} : vector<8x128xbf16>, vector<128x128xbf16>, vector<8x128xf32> -> vector<8x128xf32>
    %c0_30 = arith.constant 0 : index
    %c0_31 = arith.constant 0 : index
    %56 = vector.load %arg11[%c0_30, %c0_31] : memref<1x128xf32, #tpu.memory_space<vmem>>, vector<1x128xf32>
    %57 = vector.broadcast %56 : vector<1x128xf32> to vector<8x128xf32>
    %58 = arith.addf %55, %57 : vector<8x128xf32>
    %cst_32 = arith.constant 0.000000e+00 : f32
    %59 = vector.broadcast %cst_32 : f32 to vector<8x128xf32>
    %60 = arith.maximumf %58, %59 : vector<8x128xf32>
    %61 = arith.mulf %52, %60 : vector<8x128xf32>
    %62 = arith.truncf %61 : vector<8x128xf32> to vector<8x128xbf16>
    %c0_33 = arith.constant 0 : index
    %c0_34 = arith.constant 0 : index
    %63 = vector.load %arg12[%c0_33, %c0_34] : memref<128x128xbf16, #tpu.memory_space<vmem>>, vector<128x128xbf16>
    %cst_35 = arith.constant dense<0.000000e+00> : vector<8x128xf32>
    %64 = tpu.matmul %62, %63, %cst_35 {dimension_numbers = #tpu.dot_dimension_numbers<[1], [0], [0], [1], [0, 0, 1, 1], [], []>} : vector<8x128xbf16>, vector<128x128xbf16>, vector<8x128xf32> -> vector<8x128xf32>
    %c0_36 = arith.constant 0 : index
    %c0_37 = arith.constant 0 : index
    %65 = vector.load %arg13[%c0_36, %c0_37] : memref<1x128xf32, #tpu.memory_space<vmem>>, vector<1x128xf32>
    %66 = vector.broadcast %65 : vector<1x128xf32> to vector<8x128xf32>
    %67 = arith.addf %64, %66 : vector<8x128xf32>
    %cst_38 = arith.constant 0.000000e+00 : f32
    %68 = vector.broadcast %cst_38 : f32 to vector<8x128xf32>
    %69 = arith.maximumf %67, %68 : vector<8x128xf32>
    %70 = arith.truncf %69 : vector<8x128xf32> to vector<8x128xbf16>
    %c0_39 = arith.constant 0 : index
    %c0_40 = arith.constant 0 : index
    %71 = vector.load %arg14[%c0_39, %c0_40] : memref<128x128xbf16, #tpu.memory_space<vmem>>, vector<128x128xbf16>
    %cst_41 = arith.constant dense<0.000000e+00> : vector<8x128xf32>
    %72 = tpu.matmul %70, %71, %cst_41 {dimension_numbers = #tpu.dot_dimension_numbers<[1], [0], [0], [1], [0, 0, 1, 1], [], []>} : vector<8x128xbf16>, vector<128x128xbf16>, vector<8x128xf32> -> vector<8x128xf32>
    %c0_42 = arith.constant 0 : index
    %c0_43 = arith.constant 0 : index
    %73 = vector.load %arg15[%c0_42, %c0_43] : memref<1x128xf32, #tpu.memory_space<vmem>>, vector<1x128xf32>
    %74 = vector.broadcast %73 : vector<1x128xf32> to vector<8x128xf32>
    %75 = arith.addf %72, %74 : vector<8x128xf32>
    %c0_44 = arith.constant 0 : index
    %c0_45 = arith.constant 0 : index
    %76 = vector.load %arg16[%c0_44, %c0_45] : memref<8x128xf32, #tpu.memory_space<vmem>>, vector<8x128xf32>
    tpu.vector_store %arg16[%c0_44, %c0_45], %75 {strides = array<i32>} : memref<8x128xf32, #tpu.memory_space<vmem>>, vector<8x128xf32>,
    return
  }
  func.func @transform_0(%arg0: i32) -> (i32, i32) {
    %c0_i32 = arith.constant 0 : i32
    %c0_i32_0 = arith.constant 0 : i32
    return %arg0, %c0_i32 : i32, i32
  }
  func.func @transform_1(%arg0: i32) -> (i32, i32) {
    %c0_i32 = arith.constant 0 : i32
    %c0_i32_0 = arith.constant 0 : i32
    return %arg0, %c0_i32 : i32, i32
  }
  func.func @transform_2(%arg0: i32) -> (i32, i32) {
    %c0_i32 = arith.constant 0 : i32
    %c0_i32_0 = arith.constant 0 : i32
    %c0_i32_1 = arith.constant 0 : i32
    return %c0_i32, %c0_i32_0 : i32, i32
  }
  func.func @transform_3(%arg0: i32) -> (i32, i32) {
    %c0_i32 = arith.constant 0 : i32
    %c0_i32_0 = arith.constant 0 : i32
    %c0_i32_1 = arith.constant 0 : i32
    return %c0_i32, %c0_i32_0 : i32, i32
  }
  func.func @transform_4(%arg0: i32) -> (i32, i32) {
    %c0_i32 = arith.constant 0 : i32
    %c0_i32_0 = arith.constant 0 : i32
    %c0_i32_1 = arith.constant 0 : i32
    return %c0_i32, %c0_i32_0 : i32, i32
  }
  func.func @transform_5(%arg0: i32) -> (i32, i32) {
    %c0_i32 = arith.constant 0 : i32
    %c0_i32_0 = arith.constant 0 : i32
    %c0_i32_1 = arith.constant 0 : i32
    return %c0_i32, %c0_i32_0 : i32, i32
  }
  func.func @transform_6(%arg0: i32) -> (i32, i32) {
    %c0_i32 = arith.constant 0 : i32
    %c0_i32_0 = arith.constant 0 : i32
    %c0_i32_1 = arith.constant 0 : i32
    return %c0_i32, %c0_i32_0 : i32, i32
  }
  func.func @transform_7(%arg0: i32) -> (i32, i32) {
    %c0_i32 = arith.constant 0 : i32
    %c0_i32_0 = arith.constant 0 : i32
    %c0_i32_1 = arith.constant 0 : i32
    return %c0_i32, %c0_i32_0 : i32, i32
  }
  func.func @transform_8(%arg0: i32) -> (i32, i32) {
    %c0_i32 = arith.constant 0 : i32
    %c0_i32_0 = arith.constant 0 : i32
    %c0_i32_1 = arith.constant 0 : i32
    return %c0_i32, %c0_i32_0 : i32, i32
  }
  func.func @transform_9(%arg0: i32) -> (i32, i32) {
    %c0_i32 = arith.constant 0 : i32
    %c0_i32_0 = arith.constant 0 : i32
    %c0_i32_1 = arith.constant 0 : i32
    return %c0_i32, %c0_i32_0 : i32, i32
  }
  func.func @transform_10(%arg0: i32) -> (i32, i32) {
    %c0_i32 = arith.constant 0 : i32
    %c0_i32_0 = arith.constant 0 : i32
    %c0_i32_1 = arith.constant 0 : i32
    return %c0_i32, %c0_i32_0 : i32, i32
  }
  func.func @transform_11(%arg0: i32) -> (i32, i32) {
    %c0_i32 = arith.constant 0 : i32
    %c0_i32_0 = arith.constant 0 : i32
    %c0_i32_1 = arith.constant 0 : i32
    return %c0_i32, %c0_i32_0 : i32, i32
  }
  func.func @transform_12(%arg0: i32) -> (i32, i32) {
    %c0_i32 = arith.constant 0 : i32
    %c0_i32_0 = arith.constant 0 : i32
    %c0_i32_1 = arith.constant 0 : i32
    return %c0_i32, %c0_i32_0 : i32, i32
  }
  func.func @transform_13(%arg0: i32) -> (i32, i32) {
    %c0_i32 = arith.constant 0 : i32
    %c0_i32_0 = arith.constant 0 : i32
    %c0_i32_1 = arith.constant 0 : i32
    return %c0_i32, %c0_i32_0 : i32, i32
  }
  func.func @transform_14(%arg0: i32) -> (i32, i32) {
    %c0_i32 = arith.constant 0 : i32
    %c0_i32_0 = arith.constant 0 : i32
    %c0_i32_1 = arith.constant 0 : i32
    return %c0_i32, %c0_i32_0 : i32, i32
  }
  func.func @transform_15(%arg0: i32) -> (i32, i32) {
    %c0_i32 = arith.constant 0 : i32
    %c0_i32_0 = arith.constant 0 : i32
    return %arg0, %c0_i32 : i32, i32
  }
}

module attributes {stable_mosaic.version = 11 : i64} {
  func.func @updn_kernel(%arg0: i32, %arg1: memref<64x128xbf16, #tpu.memory_space<vmem>>, %arg2: memref<8x128xf32, #tpu.memory_space<vmem>>, %arg3: memref<128x128xbf16, #tpu.memory_space<vmem>>, %arg4: memref<1x128xf32, #tpu.memory_space<vmem>>, %arg5: memref<128x128xbf16, #tpu.memory_space<vmem>>, %arg6: memref<1x128xf32, #tpu.memory_space<vmem>>, %arg7: memref<1x128xf32, #tpu.memory_space<vmem>>, %arg8: memref<128x128xbf16, #tpu.memory_space<vmem>>, %arg9: memref<1x128xf32, #tpu.memory_space<vmem>>, %arg10: memref<128x128xbf16, #tpu.memory_space<vmem>>, %arg11: memref<1x128xf32, #tpu.memory_space<vmem>>, %arg12: memref<128x128xbf16, #tpu.memory_space<vmem>>, %arg13: memref<1x128xf32, #tpu.memory_space<vmem>>, %arg14: memref<128x128xbf16, #tpu.memory_space<vmem>>, %arg15: memref<1x128xf32, #tpu.memory_space<vmem>>, %arg16: memref<8x128xf32, #tpu.memory_space<vmem>>) attributes {dimension_semantics = [#tpu.dimension_semantics<parallel>], iteration_bounds = array<i64: 2>, scalar_prefetch = 0 : i64, scratch_operands = 0 : i64, tpu.core_type = #tpu.core_type<tc>, window_params = [{transform_indices = @transform_0, window_bounds = array<i64: 64, 128>}, {transform_indices = @transform_1, window_bounds = array<i64: 8, 128>}, {pipeline_mode = #tpu.pipeline_mode<synchronous>, transform_indices = @transform_2, window_bounds = array<i64: 128, 128>}, {pipeline_mode = #tpu.pipeline_mode<synchronous>, transform_indices = @transform_3, window_bounds = array<i64: 1, 128>}, {pipeline_mode = #tpu.pipeline_mode<synchronous>, transform_indices = @transform_4, window_bounds = array<i64: 128, 128>}, {pipeline_mode = #tpu.pipeline_mode<synchronous>, transform_indices = @transform_5, window_bounds = array<i64: 1, 128>}, {pipeline_mode = #tpu.pipeline_mode<synchronous>, transform_indices = @transform_6, window_bounds = array<i64: 1, 128>}, {pipeline_mode = #tpu.pipeline_mode<synchronous>, transform_indices = @transform_7, window_bounds = array<i64: 128, 128>}, {pipeline_mode = #tpu.pipeline_mode<synchronous>, transform_indices = @transform_8, window_bounds = array<i64: 1, 128>}, {pipeline_mode = #tpu.pipeline_mode<synchronous>, transform_indices = @transform_9, window_bounds = array<i64: 128, 128>}, {pipeline_mode = #tpu.pipeline_mode<synchronous>, transform_indices = @transform_10, window_bounds = array<i64: 1, 128>}, {pipeline_mode = #tpu.pipeline_mode<synchronous>, transform_indices = @transform_11, window_bounds = array<i64: 128, 128>}, {pipeline_mode = #tpu.pipeline_mode<synchronous>, transform_indices = @transform_12, window_bounds = array<i64: 1, 128>}, {pipeline_mode = #tpu.pipeline_mode<synchronous>, transform_indices = @transform_13, window_bounds = array<i64: 128, 128>}, {pipeline_mode = #tpu.pipeline_mode<synchronous>, transform_indices = @transform_14, window_bounds = array<i64: 1, 128>}, {transform_indices = @transform_15, window_bounds = array<i64: 8, 128>}]} {
    %c0 = arith.constant 0 : index
    %c0_0 = arith.constant 0 : index
    %0 = vector.load %arg2[%c0, %c0_0] : memref<8x128xf32, #tpu.memory_space<vmem>>, vector<8x128xf32>
    %c0_1 = arith.constant 0 : index
    %c0_2 = arith.constant 0 : index
    %1 = vector.load %arg1[%c0_1, %c0_2] : memref<64x128xbf16, #tpu.memory_space<vmem>>, vector<64x128xbf16>
    %2 = arith.truncf %0 : vector<8x128xf32> to vector<8x128xbf16>
    %c0_3 = arith.constant 0 : index
    %c0_4 = arith.constant 0 : index
    %3 = vector.load %arg3[%c0_3, %c0_4] : memref<128x128xbf16, #tpu.memory_space<vmem>>, vector<128x128xbf16>
    %cst = arith.constant dense<0.000000e+00> : vector<64x128xf32>
    %4 = tpu.matmul %1, %3, %cst {dimension_numbers = #tpu.dot_dimension_numbers<[1], [0], [0], [1], [0, 0, 1, 1], [], []>} : vector<64x128xbf16>, vector<128x128xbf16>, vector<64x128xf32> -> vector<64x128xf32>
    %c0_5 = arith.constant 0 : index
    %c0_6 = arith.constant 0 : index
    %5 = vector.load %arg4[%c0_5, %c0_6] : memref<1x128xf32, #tpu.memory_space<vmem>>, vector<1x128xf32>
    %6 = vector.broadcast %5 : vector<1x128xf32> to vector<64x128xf32>
    %7 = arith.addf %4, %6 : vector<64x128xf32>
    %cst_7 = arith.constant 0.000000e+00 : f32
    %8 = vector.broadcast %cst_7 : f32 to vector<64x128xf32>
    %9 = arith.maximumf %7, %8 : vector<64x128xf32>
    %c0_8 = arith.constant 0 : index
    %c0_9 = arith.constant 0 : index
    %10 = vector.load %arg5[%c0_8, %c0_9] : memref<128x128xbf16, #tpu.memory_space<vmem>>, vector<128x128xbf16>
    %cst_10 = arith.constant dense<0.000000e+00> : vector<8x128xf32>
    %11 = tpu.matmul %2, %10, %cst_10 {dimension_numbers = #tpu.dot_dimension_numbers<[1], [0], [0], [1], [0, 0, 1, 1], [], []>} : vector<8x128xbf16>, vector<128x128xbf16>, vector<8x128xf32> -> vector<8x128xf32>
    %c0_11 = arith.constant 0 : index
    %c0_12 = arith.constant 0 : index
    %12 = vector.load %arg6[%c0_11, %c0_12] : memref<1x128xf32, #tpu.memory_space<vmem>>, vector<1x128xf32>
    %13 = vector.broadcast %12 : vector<1x128xf32> to vector<8x128xf32>
    %14 = arith.addf %11, %13 : vector<8x128xf32>
    %cst_13 = arith.constant 0.000000e+00 : f32
    %15 = vector.broadcast %cst_13 : f32 to vector<8x128xf32>
    %16 = arith.maximumf %14, %15 : vector<8x128xf32>
    %c0_14 = arith.constant 0 : index
    %c0_15 = arith.constant 0 : index
    %17 = vector.load %arg7[%c0_14, %c0_15] : memref<1x128xf32, #tpu.memory_space<vmem>>, vector<1x128xf32>
    %18 = vector.broadcast %17 : vector<1x128xf32> to vector<8x128xf32>
    %19 = arith.mulf %16, %18 : vector<8x128xf32>
    %20 = vector.shape_cast %9 : vector<64x128xf32> to vector<8x8x128xf32>
    %21 = vector.shape_cast %19 : vector<8x128xf32> to vector<8x1x128xf32>
    %22 = vector.broadcast %21 : vector<8x1x128xf32> to vector<8x8x128xf32>
    %23 = arith.mulf %20, %22 : vector<8x8x128xf32>
    %cst_16 = arith.constant dense<0.000000e+00> : vector<8x8xf32>
    %24 = vector.multi_reduction <add>, %23, %cst_16 [2] : vector<8x8x128xf32> to vector<8x8xf32>
    %25 = vector.shape_cast %24 : vector<8x8xf32> to vector<8x8x1xf32>
    %26 = tpu.iota {dimensions = array<i32: 1>} : vector<8x8x1xi32>
    %c6_i32 = arith.constant 6 : i32
    %27 = vector.broadcast %c6_i32 : i32 to vector<8x8x1xi32>
    %28 = arith.cmpi slt, %26, %27 : vector<8x8x1xi32>
    %cst_17 = arith.constant 0xFF800000 : f32
    %29 = vector.broadcast %cst_17 : f32 to vector<8x8x1xf32>
    %30 = arith.select %28, %25, %29 : vector<8x8x1xi1>, vector<8x8x1xf32>
    %cst_18 = arith.constant dense<0xFF800000> : vector<8x1xf32>
    %31 = vector.multi_reduction <maximumf>, %30, %cst_18 [1] : vector<8x8x1xf32> to vector<8x1xf32>
    %32 = vector.shape_cast %31 : vector<8x1xf32> to vector<8x1x1xf32>
    %33 = vector.broadcast %32 : vector<8x1x1xf32> to vector<8x8x1xf32>
    %34 = arith.subf %30, %33 : vector<8x8x1xf32>
    %35 = math.exp %34 : vector<8x8x1xf32>
    %cst_19 = arith.constant dense<0.000000e+00> : vector<8x1xf32>
    %36 = vector.multi_reduction <add>, %35, %cst_19 [1] : vector<8x8x1xf32> to vector<8x1xf32>
    %37 = vector.shape_cast %36 : vector<8x1xf32> to vector<8x1x1xf32>
    %38 = tpu.reciprocal %37 {approx = true} : vector<8x1x1xf32> -> vector<8x1x1xf32>
    %39 = vector.broadcast %38 : vector<8x1x1xf32> to vector<8x8x1xf32>
    %40 = arith.mulf %35, %39 : vector<8x8x1xf32>
    %41 = arith.extf %1 : vector<64x128xbf16> to vector<64x128xf32>
    %42 = vector.shape_cast %41 : vector<64x128xf32> to vector<8x8x128xf32>
    %43 = vector.broadcast %40 : vector<8x8x1xf32> to vector<8x8x128xf32>
    %44 = arith.mulf %43, %42 : vector<8x8x128xf32>
    %cst_20 = arith.constant dense<0.000000e+00> : vector<8x128xf32>
    %45 = vector.multi_reduction <add>, %44, %cst_20 [1] : vector<8x8x128xf32> to vector<8x128xf32>
    %c0_21 = arith.constant 0 : index
    %c0_22 = arith.constant 0 : index
    %46 = vector.load %arg8[%c0_21, %c0_22] : memref<128x128xbf16, #tpu.memory_space<vmem>>, vector<128x128xbf16>
    %cst_23 = arith.constant dense<0.000000e+00> : vector<8x128xf32>
    %47 = tpu.matmul %2, %46, %cst_23 {dimension_numbers = #tpu.dot_dimension_numbers<[1], [0], [0], [1], [0, 0, 1, 1], [], []>} : vector<8x128xbf16>, vector<128x128xbf16>, vector<8x128xf32> -> vector<8x128xf32>
    %c0_24 = arith.constant 0 : index
    %c0_25 = arith.constant 0 : index
    %48 = vector.load %arg9[%c0_24, %c0_25] : memref<1x128xf32, #tpu.memory_space<vmem>>, vector<1x128xf32>
    %49 = vector.broadcast %48 : vector<1x128xf32> to vector<8x128xf32>
    %50 = arith.addf %47, %49 : vector<8x128xf32>
    %cst_26 = arith.constant 0.000000e+00 : f32
    %51 = vector.broadcast %cst_26 : f32 to vector<8x128xf32>
    %52 = arith.maximumf %50, %51 : vector<8x128xf32>
    %53 = arith.truncf %45 : vector<8x128xf32> to vector<8x128xbf16>
    %c0_27 = arith.constant 0 : index
    %c0_28 = arith.constant 0 : index
    %54 = vector.load %arg10[%c0_27, %c0_28] : memref<128x128xbf16, #tpu.memory_space<vmem>>, vector<128x128xbf16>
    %cst_29 = arith.constant dense<0.000000e+00> : vector<8x128xf32>
    %55 = tpu.matmul %53, %54, %cst_29 {dimension_numbers = #tpu.dot_dimension_numbers<[1], [0], [0], [1], [0, 0, 1, 1], [], []>} : vector<8x128xbf16>, vector<128x128xbf16>, vector<8x128xf32> -> vector<8x128xf32>
    %c0_30 = arith.constant 0 : index
    %c0_31 = arith.constant 0 : index
    %56 = vector.load %arg11[%c0_30, %c0_31] : memref<1x128xf32, #tpu.memory_space<vmem>>, vector<1x128xf32>
    %57 = vector.broadcast %56 : vector<1x128xf32> to vector<8x128xf32>
    %58 = arith.addf %55, %57 : vector<8x128xf32>
    %cst_32 = arith.constant 0.000000e+00 : f32
    %59 = vector.broadcast %cst_32 : f32 to vector<8x128xf32>
    %60 = arith.maximumf %58, %59 : vector<8x128xf32>
    %61 = arith.mulf %52, %60 : vector<8x128xf32>
    %62 = arith.truncf %61 : vector<8x128xf32> to vector<8x128xbf16>
    %c0_33 = arith.constant 0 : index
    %c0_34 = arith.constant 0 : index
    %63 = vector.load %arg12[%c0_33, %c0_34] : memref<128x128xbf16, #tpu.memory_space<vmem>>, vector<128x128xbf16>
    %cst_35 = arith.constant dense<0.000000e+00> : vector<8x128xf32>
    %64 = tpu.matmul %62, %63, %cst_35 {dimension_numbers = #tpu.dot_dimension_numbers<[1], [0], [0], [1], [0, 0, 1, 1], [], []>} : vector<8x128xbf16>, vector<128x128xbf16>, vector<8x128xf32> -> vector<8x128xf32>
    %c0_36 = arith.constant 0 : index
    %c0_37 = arith.constant 0 : index
    %65 = vector.load %arg13[%c0_36, %c0_37] : memref<1x128xf32, #tpu.memory_space<vmem>>, vector<1x128xf32>
    %66 = vector.broadcast %65 : vector<1x128xf32> to vector<8x128xf32>
    %67 = arith.addf %64, %66 : vector<8x128xf32>
    %cst_38 = arith.constant 0.000000e+00 : f32
    %68 = vector.broadcast %cst_38 : f32 to vector<8x128xf32>
    %69 = arith.maximumf %67, %68 : vector<8x128xf32>
    %70 = arith.truncf %69 : vector<8x128xf32> to vector<8x128xbf16>
    %c0_39 = arith.constant 0 : index
    %c0_40 = arith.constant 0 : index
    %71 = vector.load %arg14[%c0_39, %c0_40] : memref<128x128xbf16, #tpu.memory_space<vmem>>, vector<128x128xbf16>
    %cst_41 = arith.constant dense<0.000000e+00> : vector<8x128xf32>
    %72 = tpu.matmul %70, %71, %cst_41 {dimension_numbers = #tpu.dot_dimension_numbers<[1], [0], [0], [1], [0, 0, 1, 1], [], []>} : vector<8x128xbf16>, vector<128x128xbf16>, vector<8x128xf32> -> vector<8x128xf32>
    %c0_42 = arith.constant 0 : index
    %c0_43 = arith.constant 0 : index
    %73 = vector.load %arg15[%c0_42, %c0_43] : memref<1x128xf32, #tpu.memory_space<vmem>>, vector<1x128xf32>
    %74 = vector.broadcast %73 : vector<1x128xf32> to vector<8x128xf32>
    %75 = arith.addf %72, %74 : vector<8x128xf32>
    %c0_44 = arith.constant 0 : index
    %c0_45 = arith.constant 0 : index
    %76 = vector.load %arg16[%c0_44, %c0_45] : memref<8x128xf32, #tpu.memory_space<vmem>>, vector<8x128xf32>
    tpu.vector_store %arg16[%c0_44, %c0_45], %75 {strides = array<i32>} : memref<8x128xf32, #tpu.memory_space<vmem>>, vector<8x128xf32>,
    return
  }
  func.func @transform_0(%arg0: i32) -> (i32, i32) {
    %c0_i32 = arith.constant 0 : i32
    %c0_i32_0 = arith.constant 0 : i32
    return %arg0, %c0_i32 : i32, i32
  }
  func.func @transform_1(%arg0: i32) -> (i32, i32) {
    %c0_i32 = arith.constant 0 : i32
    %c0_i32_0 = arith.constant 0 : i32
    return %arg0, %c0_i32 : i32, i32
  }
  func.func @transform_2(%arg0: i32) -> (i32, i32) {
    %c0_i32 = arith.constant 0 : i32
    %c0_i32_0 = arith.constant 0 : i32
    %c0_i32_1 = arith.constant 0 : i32
    return %c0_i32, %c0_i32_0 : i32, i32
  }
  func.func @transform_3(%arg0: i32) -> (i32, i32) {
    %c0_i32 = arith.constant 0 : i32
    %c0_i32_0 = arith.constant 0 : i32
    %c0_i32_1 = arith.constant 0 : i32
    return %c0_i32, %c0_i32_0 : i32, i32
  }
  func.func @transform_4(%arg0: i32) -> (i32, i32) {
    %c0_i32 = arith.constant 0 : i32
    %c0_i32_0 = arith.constant 0 : i32
    %c0_i32_1 = arith.constant 0 : i32
    return %c0_i32, %c0_i32_0 : i32, i32
  }
  func.func @transform_5(%arg0: i32) -> (i32, i32) {
    %c0_i32 = arith.constant 0 : i32
    %c0_i32_0 = arith.constant 0 : i32
    %c0_i32_1 = arith.constant 0 : i32
    return %c0_i32, %c0_i32_0 : i32, i32
  }
  func.func @transform_6(%arg0: i32) -> (i32, i32) {
    %c0_i32 = arith.constant 0 : i32
    %c0_i32_0 = arith.constant 0 : i32
    %c0_i32_1 = arith.constant 0 : i32
    return %c0_i32, %c0_i32_0 : i32, i32
  }
  func.func @transform_7(%arg0: i32) -> (i32, i32) {
    %c0_i32 = arith.constant 0 : i32
    %c0_i32_0 = arith.constant 0 : i32
    %c0_i32_1 = arith.constant 0 : i32
    return %c0_i32, %c0_i32_0 : i32, i32
  }
  func.func @transform_8(%arg0: i32) -> (i32, i32) {
    %c0_i32 = arith.constant 0 : i32
    %c0_i32_0 = arith.constant 0 : i32
    %c0_i32_1 = arith.constant 0 : i32
    return %c0_i32, %c0_i32_0 : i32, i32
  }
  func.func @transform_9(%arg0: i32) -> (i32, i32) {
    %c0_i32 = arith.constant 0 : i32
    %c0_i32_0 = arith.constant 0 : i32
    %c0_i32_1 = arith.constant 0 : i32
    return %c0_i32, %c0_i32_0 : i32, i32
  }
  func.func @transform_10(%arg0: i32) -> (i32, i32) {
    %c0_i32 = arith.constant 0 : i32
    %c0_i32_0 = arith.constant 0 : i32
    %c0_i32_1 = arith.constant 0 : i32
    return %c0_i32, %c0_i32_0 : i32, i32
  }
  func.func @transform_11(%arg0: i32) -> (i32, i32) {
    %c0_i32 = arith.constant 0 : i32
    %c0_i32_0 = arith.constant 0 : i32
    %c0_i32_1 = arith.constant 0 : i32
    return %c0_i32, %c0_i32_0 : i32, i32
  }
  func.func @transform_12(%arg0: i32) -> (i32, i32) {
    %c0_i32 = arith.constant 0 : i32
    %c0_i32_0 = arith.constant 0 : i32
    %c0_i32_1 = arith.constant 0 : i32
    return %c0_i32, %c0_i32_0 : i32, i32
  }
  func.func @transform_13(%arg0: i32) -> (i32, i32) {
    %c0_i32 = arith.constant 0 : i32
    %c0_i32_0 = arith.constant 0 : i32
    %c0_i32_1 = arith.constant 0 : i32
    return %c0_i32, %c0_i32_0 : i32, i32
  }
  func.func @transform_14(%arg0: i32) -> (i32, i32) {
    %c0_i32 = arith.constant 0 : i32
    %c0_i32_0 = arith.constant 0 : i32
    %c0_i32_1 = arith.constant 0 : i32
    return %c0_i32, %c0_i32_0 : i32, i32
  }
  func.func @transform_15(%arg0: i32) -> (i32, i32) {
    %c0_i32 = arith.constant 0 : i32
    %c0_i32_0 = arith.constant 0 : i32
    return %arg0, %c0_i32 : i32, i32
  }
}

</mosaic_0001>

<bundles_post_ra>
// kernel: tpu_custom_call.1
= control target key start
LH: loop header
LB: loop body
LE: loop exit
PB: predicated region body
PF: predicated region fallthrough
CT: control target
= control target key end

     0   :  { %s3264_s0 = inlined_call_operand.hbm [shape: bf16[128,128], index: 0, kind: input, shape index: {}]   ;;  %s3265_s1 = inlined_call_operand.hbm [shape: f32[16,128], index: 1, kind: input, shape index: {}]   ;;  %s3266_s2 = inlined_call_operand.hbm [shape: bf16[128,128], index: 2, kind: input, shape index: {}]   ;;  %s3267_s3 = inlined_call_operand.vmem [shape: f32[1,128], index: 3, kind: input, shape index: {}]   ;;  %s3268_s4 = inlined_call_operand.hbm [shape: bf16[128,128], index: 4, kind: input, shape index: {}]   ;;  %s3269_s5 = inlined_call_operand.vmem [shape: f32[1,128], index: 5, kind: input, shape index: {}]   ;;  %s3270_s6 = inlined_call_operand.vmem [shape: f32[1,128], index: 6, kind: input, shape index: {}]   ;;  %s3271_s7 = inlined_call_operand.hbm [shape: bf16[128,128], index: 7, kind: input, shape index: {}]   ;;  %s3272_s8 = inlined_call_operand.vmem [shape: f32[1,128], index: 8, kind: input, shape index: {}]   ;;  %s3273_s9 = inlined_call_operand.hbm [shape: bf16[128,128], index: 9, kind: input, shape index: {}]   ;;  %s3274_s10 = inlined_call_operand.vmem [shape: f32[1,128], index: 10, kind: input, shape index: {}]   ;;  %s3275_s11 = inlined_call_operand.hbm [shape: bf16[128,128], index: 11, kind: input, shape index: {}]   ;;  %s3276_s12 = inlined_call_operand.vmem [shape: f32[1,128], index: 12, kind: input, shape index: {}]   ;;  %s3277_s13 = inlined_call_operand.hbm [shape: bf16[128,128], index: 13, kind: input, shape index: {}]   ;;  %s3278_s14 = inlined_call_operand.vmem [shape: f32[1,128], index: 14, kind: input, shape index: {}]   ;;  %s3279_s15 = inlined_call_operand.hbm [shape: f32[16,128], index: 15, kind: output, shape index: {}]  }
   0x1   :  { %3291 = sst [smem:[#allocation28_spill]] %s3264_s0 }
   0x2   :  { %3292 = sst [smem:[#allocation29_spill]] %s3266_s2 }
   0x3   :  { %3293 = sst [smem:[#allocation30_spill]] %s3268_s4 }
   0x4   :  { %3294 = sst [smem:[#allocation31_spill]] %s3271_s7 }
   0x5   :  { %3295 = sst [smem:[#allocation32_spill]] %s3273_s9 }
   0x6   :  { %3296 = sst [smem:[#allocation33_spill]] %s3275_s11 }
   0x7   :  { %3297 = sst [smem:[#allocation34_spill]] %s3277_s13 }
   0x8   :  { %3298 = sst [smem:[#allocation35_spill]] %s3278_s14 }
   0x9   :  { %3299 = sst [smem:[#allocation36_spill]] %s3279_s15 }
   0xa   :  { %20 = vsyncpa [#allocation3], 0 }
   0xb   :  { %22 = vsyncpa [#allocation3 + $0x1], 0 }
   0xc   :  { %23 = vsyncpa [#allocation6], 0 }
   0xd   :  { %25 = vsyncpa [#allocation6 + $0x1], 0 }
   0xe   :  { %26 = vsyncpa [#allocation9], 0 }
   0xf   :  { %27 = vsyncpa [#allocation12], 0 }
  0x10   :  { %28 = vsyncpa [#allocation15], 0 }
  0x11   :  { %29 = vsyncpa [#allocation4], 0 }
  0x12   :  { %31 = vsyncpa [#allocation4 + $0x1], 0  ;;  %s2783_s18 = smov 0   ;;  %s2785_s19 = smov 0  }
  0x13   :  { %s2787_s20 = smov 0   ;;  %s2789_s21 = smov 0  }
  0x14 LB: > { %3300 = sst [smem:[#allocation24_spill]] %s2683_s20  ;;  %s2689_s22 = smov [#allocation7]   ;;  %s2687_s21 = sphi %s2789_s21, %s3339_s21   ;;  %s2683_s20 = sphi %s2787_s20, %s3341_s20   ;;  %s2679_s19 = sphi %s2785_s19, %s3343_s19   ;;  %s2675_s18 = sphi %s2783_s18, %s3342_s18  }
  0x15   : > { %s405_s23 = sshll.u32 %s2689_s22, 4  ;;  %s2804_s24 = sadd.s32 4294967295, %s2687_s21   ;;  %s406_s23 = int_to_ptr.vmem [resolvable:$true] %s405_s23 }
  0x16   : > { %p1918_p0 = scmp.ge.s32.totalorder %s2687_s21, 1  ;;  %p3283_p1 = scmp.eq.s32.totalorder %s2804_s24, 0 }
  0x17   : > { %p393_p2 = scmp.lt.s32.totalorder %s2687_s21, 3  ;;  %s2690_s26 = smov [#allocation8]  }
  0x18   : > { %s421_s27 = sshll.u32 %s2690_s26, 4  ;;  %s2691_s29 = smov [#allocation11]   ;;  %s2822_s27 = int_to_ptr.vmem [resolvable:$true] %s421_s27 }
  0x19   : > { %p2809_p3 = pnand %p1918_p0, %p393_p2  ;;  %s456_s30 = sshll.u32 %s2691_s29, 4  ;;  %s2824_s30 = int_to_ptr.vmem [resolvable:$true] %s456_s30 }
  0x1a   : > { %s2402_s17 = scalar_lea.vmem %s406_s23, 1024  ;;  %p2410_p11 = scmp.lt.s32.totalorder %s406_s23, %s406_s23 }
  0x1b   : > { %s3301_s25 = scalar_select %p2809_p3, 1, 0 }
  0x1c   : > { %p2216_p5 = pneg %p2809_p3  ;;  %p2403_p8 = scmp.ne.s32.totalorder %s406_s23, %s2402_s17 }
  0x1d   : > { %p2411_p12 = scmp.lt.s32.totalorder %s2402_s17, %s2402_s17 }
  0x1e   : > { %p2818_p6 = pnand %p2216_p5, %p3283_p1 }
  0x1f   : > { %p2412_p13 = por %p2411_p12, %p2410_p11 }
  0x20   : > { %p2828_p7 = pneg %p2818_p6 }
  0x22   : > { %p2405_p9 = pnand %p2403_p8, %p2828_p7 }
  0x24   : > { %p2406_p10 = pneg %p2405_p9 }
  0x26   : > { %p2413_p0 = pnand %p2412_p13, %p2406_p10 }
  0x28   : > { %2416 = shalt.err (!%p2413_p0)
}
  0x29   : > { %s3281_s22 = smov 64   ;;  %s3282_s26 = smov 4  }
  0x2a   : > { %s3304_s2 = sld [smem:[#allocation29_spill]]  ;;  %s2428_s14 = scalar_lea.vmem %s2822_s27, 1024 }
  0x2b   : > { %p2429_p2 = scmp.ne.s32.totalorder %s2822_s27, %s2428_s14  ;;  %p2436_p9 = scmp.lt.s32.totalorder %s2822_s27, %s2822_s27 }
  0x2c   : > { %p2437_p10 = scmp.lt.s32.totalorder %s2428_s14, %s2428_s14 }
  0x2d   : > { %p2431_p5 = pnand %p2429_p2, %p2828_p7 }
  0x2e   : > { %p2438_p11 = por %p2437_p10, %p2436_p9 }
  0x2f   : > { %p2432_p8 = pneg %p2431_p5 }
  0x30   : > { %2219 = dma.hbm_to_vmem [thread:$0]  (!%p2818_p6), %s3304_s2, 1024, %s406_s23, [#allocation6], %s3281_s22, %s3281_s22, %s3282_s26  }
  0x31   : > { %p2439_p12 = pnand %p2438_p11, %p2432_p8 }
  0x33   : > { %2442 = shalt.err (!%p2439_p12)
}
  0x34   : > { %s3305_s4 = sld [smem:[#allocation30_spill]]  ;;  %s2454_s23 = scalar_lea.vmem %s2824_s30, 1024 }
  0x35   : > { %p2455_p13 = scmp.ne.s32.totalorder %s2824_s30, %s2454_s23  ;;  %p2462_p5 = scmp.lt.s32.totalorder %s2824_s30, %s2824_s30 }
  0x36   : > { %p2463_p8 = scmp.lt.s32.totalorder %s2454_s23, %s2454_s23 }
  0x37   : > { %p2457_p0 = pnand %p2455_p13, %p2828_p7 }
  0x38   : > { %p2464_p9 = por %p2463_p8, %p2462_p5 }
  0x39   : > { %p2458_p2 = pneg %p2457_p0 }
  0x3a   : > { %2222 = dma.hbm_to_vmem [thread:$0]  (!%p2818_p6), %s3305_s4, 1024, %s2822_s27, [#allocation9], %s3281_s22, %s3281_s22, %s3282_s26  }
  0x3b   : > { %p2465_p10 = pnand %p2464_p9, %p2458_p2 }
  0x3d   : > { %2468 = shalt.err (!%p2465_p10)
}
  0x3e   : > { %s3306_s9 = sld [smem:[#allocation32_spill]]  ;;  %s2694_s27 = smov [#allocation10]  }
  0x3f   : > { %s440_s17 = sshll.u32 %s2694_s27, 4  ;;  %s2695_s15 = smov [#allocation13]   ;;  %s441_s17 = int_to_ptr.vmem [resolvable:$true] %s440_s17 }
  0x40   : > { %s472_s2 = sshll.u32 %s2695_s15, 4  ;;  %s2480_s23 = scalar_lea.vmem %s441_s17, 1024  ;;  %s473_s2 = int_to_ptr.vmem [resolvable:$true] %s472_s2 }
  0x41   : > { %p2481_p11 = scmp.ne.s32.totalorder %s441_s17, %s2480_s23  ;;  %p2488_p0 = scmp.lt.s32.totalorder %s441_s17, %s441_s17 }
  0x42   : > { %p2489_p2 = scmp.lt.s32.totalorder %s2480_s23, %s2480_s23 }
  0x43   : > { %p2483_p12 = pnand %p2481_p11, %p2828_p7 }
  0x44   : > { %2228 = dma.hbm_to_vmem [thread:$0]  (!%p2818_p6), %s3306_s9, 1024, %s2824_s30, [#allocation12], %s3281_s22, %s3281_s22, %s3282_s26  }
  0x45   : > { %p2484_p13 = pneg %p2483_p12  ;;  %p2490_p5 = por %p2489_p2, %p2488_p0 }
  0x47   : > { %p2491_p8 = pnand %p2490_p5, %p2484_p13 }
  0x49   : > { %2494 = shalt.err (!%p2491_p8)
}
  0x4a   : > { %s3307_s7 = sld [smem:[#allocation31_spill]]  ;;  %s2506_s29 = scalar_lea.vmem %s473_s2, 1024 }
  0x4b   : > { %p2507_p9 = scmp.ne.s32.totalorder %s473_s2, %s2506_s29  ;;  %p2514_p12 = scmp.lt.s32.totalorder %s473_s2, %s473_s2 }
  0x4c   : > { %p2515_p0 = scmp.lt.s32.totalorder %s2506_s29, %s2506_s29 }
  0x4d   : > { %p2509_p10 = pnand %p2507_p9, %p2828_p7 }
  0x4e   : > { %p2516_p13 = por %p2515_p0, %p2514_p12 }
  0x4f   : > { %p2510_p11 = pneg %p2509_p10 }
  0x50   : > { %2225 = dma.hbm_to_vmem [thread:$0]  (!%p2818_p6), %s3307_s7, 1024, %s441_s17, [#allocation9], %s3281_s22, %s3281_s22, %s3282_s26  }
  0x51   : > { %p2517_p2 = pnand %p2516_p13, %p2510_p11 }
  0x53   : > { %2520 = shalt.err (!%p2517_p2)
}
  0x54   : > { %s3308_s11 = sld [smem:[#allocation33_spill]]  ;;  %s2696_s17 = smov [#allocation14]  }
  0x55   : > { %s488_s23 = sshll.u32 %s2696_s17, 4  ;;  %s489_s23 = int_to_ptr.vmem [resolvable:$true] %s488_s23 }
  0x56   : > { %s2532_s30 = scalar_lea.vmem %s489_s23, 1024  ;;  %p2540_p10 = scmp.lt.s32.totalorder %s489_s23, %s489_s23 }
  0x57   : > { %p2533_p5 = scmp.ne.s32.totalorder %s489_s23, %s2532_s30  ;;  %p2541_p11 = scmp.lt.s32.totalorder %s2532_s30, %s2532_s30 }
  0x59   : > { %p2535_p8 = pnand %p2533_p5, %p2828_p7  ;;  %p2542_p12 = por %p2541_p11, %p2540_p10 }
  0x5a   : > { %2231 = dma.hbm_to_vmem [thread:$0]  (!%p2818_p6), %s3308_s11, 1024, %s473_s2, [#allocation12], %s3281_s22, %s3281_s22, %s3282_s26  }
  0x5b   : > { %p2536_p9 = pneg %p2535_p8 }
  0x5d   : > { %p2543_p0 = pnand %p2542_p12, %p2536_p9 }
  0x5f   : > { %2546 = shalt.err (!%p2543_p0)
}
  0x60   : > { %s3309_s13 = sld [smem:[#allocation34_spill]]  ;;  %s1917_s28 = sadd.s32 4294967294, %s2687_s21  }
  0x61   : > { %s2904_s16 = sadd.s32 1, %s2687_s21   ;;  %s44_s27 = sadd.s32 1, %s2683_s20 }
  0x62   : > { %3310 = sst [smem:[#allocation25_spill]] %s2904_s16  ;;  %s41_s29 = ssub.s32 %s2687_s21, %s2904_s16 }
  0x63   : > { %p42_p7 = scmp.eq.s32.totalorder %s41_s29, 0  ;;  %p51_p13 = scmp.ne.s32.totalorder %s2683_s20, %s2679_s19 }
  0x64   : > { %p52_p2 = scmp.eq.s32.totalorder %s2687_s21, 0  ;;  %p57_p5 = scmp.ne.s32.totalorder %s2679_s19, %s2675_s18 }
  0x65   : > { %s2915_s15 = scalar_select %p42_p7, %s2683_s20, %s44_s27  }
  0x66   : > { %2234 = dma.hbm_to_vmem [thread:$0]  (!%p2818_p6), %s3309_s13, 1024, %s489_s23, [#allocation15], %s3281_s22, %s3281_s22, %s3282_s26  }
  0x67   : > { %3311 = sst [smem:[#allocation26_spill]] %s2915_s15  ;;  %p2917_p8 = por %p52_p2, %p51_p13 }
  0x68   : > { %p2923_p6 = por %p3283_p1, %p57_p5  ;;  %p380_p9 = scmp.eq.s32.totalorder %s2804_s24, 1 }
  0x69   : > { %p386_p10 = scmp.eq.s32.totalorder %s1917_s28, 1  ;;  %p2252_p11 = scmp.lt.s32.totalorder %s2687_s21, 2 }
  0x6a   : > { %s3313_s23 = scalar_select %p2923_p6, 1, 0 }
  0x6b   : > { %s2930_s30 = sand.u32 1, %s2683_s20   ;;  %p2932_p12 = por %p380_p9, %p51_p13 }
  0x6c   : > { %p2936_p0 = por %p386_p10, %p57_p5  ;;  %s1926_s29 = sshll.u32 %s2930_s30, 5 }
  0x6d   : > { %s3314_s14 = scalar_select %p2932_p12, 1, 0 }
  0x6e   : > { %s3315_s2 = scalar_select %p2936_p0, 1, 0 }
  0x6f   : > { %s2004_s27 = sshll.u32 %s2687_s21, 9  ;;  %s3317_s0 = sld [smem:[#allocation28_spill]] }
  0x70   : > { %3316 = sst [smem:[#allocation27_spill]] %s3315_s2  ;;  %s509_s4 = scalar_lea.vmem [#allocation2], %s1926_s29 }
  0x71   : > { %s516_s7 = sshll.u32 %s509_s4, 4  ;;  %p2951_p7 = pnand %p2252_p11, %p2917_p8  ;;  %s2947_s7 = int_to_ptr.vmem [resolvable:$true] %s516_s7 }
  0x72   : > { %s506_s15 = scalar_lea.sflag [#allocation3], %s2930_s30 }
  0x73   : > { %p2549_p2 = pneg %p2951_p7 }
  0x75   : > { %s2945_s28 = scalar_lea.hbm %s3317_s0, %s2004_s27  ;;  %s2552_s17 = scalar_lea.hbm %s3317_s0, 1024 }
  0x76   : > { %s2547_s22 = scalar_lea.hbm %s2945_s28, 512  ;;  %p2553_p8 = scmp.lt.s32.totalorder %s2945_s28, %s3317_s0 }
  0x77   : > { %p2548_p13 = scmp.ne.s32.totalorder %s2945_s28, %s2547_s22  ;;  %p2554_p10 = scmp.lt.s32.totalorder %s2552_s17, %s2547_s22 }
  0x79   : > { %p2550_p5 = pnand %p2549_p2, %p2548_p13  ;;  %p2555_p11 = por %p2554_p10, %p2553_p8 }
  0x7b   : > { %p2551_p9 = pneg %p2550_p5 }
  0x7d   : > { %p2556_p4 = pnand %p2555_p11, %p2551_p9 }
  0x7f   : > { %2559 = shalt.err (!%p2556_p4)
}
  0x80   : > { %s2560_s11 = scalar_lea.vmem %s2947_s7, 512  ;;  %s2697_s4 = smov [#allocation2]  }
  0x81   : > { %p2561_p1 = scmp.ne.s32.totalorder %s2947_s7, %s2560_s11  ;;  %s2565_s26 = sshll.u32 %s2697_s4, 4  ;;  %s2566_s26 = int_to_ptr.vmem [resolvable:$false] %s2565_s26 }
  0x82   : > { %s2567_s13 = scalar_lea.vmem %s2566_s26, 1024  ;;  %p2568_p0 = scmp.lt.s32.totalorder %s2947_s7, %s2566_s26 }
  0x83   : > { %p2563_p13 = pnand %p2561_p1, %p2549_p2  ;;  %p2569_p12 = scmp.lt.s32.totalorder %s2567_s13, %s2560_s11 }
  0x85   : > { %p2564_p5 = pneg %p2563_p13  ;;  %p2570_p6 = por %p2569_p12, %p2568_p0 }
  0x87   : > { %p2571_p8 = pnand %p2570_p6, %p2564_p5 }
  0x89   : > { %2574 = shalt.err (!%p2571_p8)
}
  0x8a   : > { %s3319_s22 = smov 4   ;;  %s3320_s17 = smov 64  }
  0x8b   : > { %2238 = dma.hbm_to_vmem [thread:$0]  (!%p2951_p7), %s2945_s28, 512, %s2947_s7, %s506_s15, %s3320_s17, %s3320_s17, %s3319_s22  }
  0x8c   : > { %s1930_s29 = sshll.u32 %s2687_s21, 7  ;;  %s3321_s4 = sshll.u32 %s2930_s30, 3 }
  0x8d   : > { %s2991_s13 = scalar_lea.hbm %s3265_s1, %s1930_s29  ;;  %s530_s26 = scalar_lea.vmem [#allocation5], %s3321_s4 }
  0x8e   : > { %s537_s0 = sshll.u32 %s530_s26, 4  ;;  %s3322_s20 = sand.u32 1, %s2687_s21   ;;  %s538_s0 = int_to_ptr.vmem [resolvable:$true] %s537_s0 }
  0x8f   : > { %s527_s16 = scalar_lea.sflag [#allocation6], %s3322_s20  ;;  %s2575_s2 = scalar_lea.hbm %s2991_s13, 128 }
  0x90   : > { %p2576_p1 = scmp.ne.s32.totalorder %s2991_s13, %s2575_s2  ;;  %s2580_s28 = scalar_lea.hbm %s3265_s1, 256 }
  0x91   : > { %p2581_p12 = scmp.lt.s32.totalorder %s2991_s13, %s3265_s1  ;;  %p2582_p0 = scmp.lt.s32.totalorder %s2580_s28, %s2575_s2 }
  0x92   : > { %p2578_p4 = pnand %p2576_p1, %p2549_p2 }
  0x93   : > { %p2583_p9 = por %p2582_p0, %p2581_p12 }
  0x94   : > { %p2579_p6 = pneg %p2578_p4 }
  0x96   : > { %p2584_p10 = pnand %p2583_p9, %p2579_p6 }
  0x98   : > { %2587 = shalt.err (!%p2584_p10)
}
  0x99   : > { %s2588_s17 = scalar_lea.vmem %s538_s0, 128  ;;  %s2698_s20 = smov [#allocation5]  }
  0x9a   : > { %p2589_p11 = scmp.ne.s32.totalorder %s538_s0, %s2588_s17  ;;  %s2593_s29 = sshll.u32 %s2698_s20, 4  ;;  %s2594_s29 = int_to_ptr.vmem [resolvable:$false] %s2593_s29 }
  0x9b   : > { %s2595_s27 = scalar_lea.vmem %s2594_s29, 256  ;;  %p2596_p8 = scmp.lt.s32.totalorder %s538_s0, %s2594_s29 }
  0x9c   : > { %p2591_p13 = pnand %p2589_p11, %p2549_p2  ;;  %p2597_p1 = scmp.lt.s32.totalorder %s2595_s27, %s2588_s17 }
  0x9e   : > { %p2592_p5 = pneg %p2591_p13  ;;  %p2598_p4 = por %p2597_p1, %p2596_p8 }
  0xa0   : > { %p2599_p3 = pnand %p2598_p4, %p2592_p5 }
  0xa2   : > { %2602 = shalt.err (!%p2599_p3)
}
  0xa3   : > { %2241 = dma.hbm_to_vmem [thread:$0]  (!%p2951_p7), %s2991_s13, 128, %s538_s0, %s527_s16  }
  0xa4   : > { %p3323_p6 = scmp.ne.s32.totalorder %s3301_s25, 0 }
  0xa5   : > { %s3018_s2 = sand.u32 (!%p3323_p6), 1, %s2679_s19   ;;  %p3324_p2 = scmp.ne.s32.totalorder (!%p3323_p6), %s3313_s23, 0 }
  0xa6   : > { %546 = sbr.rel (%p3323_p6) target bundleno = 1270 (0x4f6), region = 80  ;;  %s1932_s11 = sshll.u32 (!%p3323_p6), %s3018_s2, 5 }
  0xa7   : > { %s549_s4 = scalar_lea.sflag (!%p3323_p6), [#allocation3], %s3018_s2  ;;  %s3022_s26 = scalar_lea.vmem (!%p3323_p6), [#allocation2], %s1932_s11 }
  0xab   : > { %2646 = dma.done.wait (%p3324_p2), %s549_s4, 512  }
  0xac   : > { %2648 = vsyncadd (%p3324_p2), %s549_s4, 4294966784  ;;  %s557_s0 = sand.u32 1, %s2804_s24   ;;  %s1933_s9 = sshll.u32 %s3018_s2, 3 }
  0xad   : > { %s558_s25 = scalar_lea.sflag [#allocation6], %s557_s0  ;;  %s3032_s16 = scalar_lea.vmem [#allocation5], %s1933_s9 }
  0xae   : > { %2650 = dma.done.wait (%p3324_p2), %s558_s25, 128  }
  0xaf   : > { %2652 = vsyncadd (%p3324_p2), %s558_s25, 4294967168  ;;  %p3325_p3 = scmp.eq.s32.totalorder %s2804_s24, 0 }
  0xb1   : > { %2654 = dma.done.wait (%p3325_p3), [#allocation6], 1024   ;;  %p3326_p7 = pmov %p3325_p3 }
  0xb2   : > { %p3327_p12 = pmov %p3325_p3 }
  0xb3   : > { %2656 = vsyncadd (%p3326_p7), [#allocation6], 4294966272 }
  0xb4   : > { %2658 = dma.done.wait (%p3327_p12), [#allocation9], 2048   ;;  %p3328_p0 = pmov %p3325_p3 }
  0xb6   : > { %2660 = vsyncadd (%p3328_p0), [#allocation9], 4294965248  ;;  %p3329_p9 = pmov %p3328_p0 }
  0xb7   : > { %p3330_p10 = pmov %p3328_p0 }
  0xb8   : > { %2662 = dma.done.wait (%p3329_p9), [#allocation12], 2048  }
  0xb9   : > { %2664 = vsyncadd (%p3330_p10), [#allocation12], 4294965248  ;;  %p3331_p11 = pmov %p3328_p0 }
  0xba   : > { %p3332_p13 = pmov %p3328_p0 }
  0xbb   : > { %2666 = dma.done.wait (%p3331_p11), [#allocation15], 1024  }
  0xbc   : > { %2668 = vsyncadd (%p3332_p13), [#allocation15], 4294966272  ;;  %v2699_v0 = vmov 0.0   ;;  %vm2700_vm0 = vmmov 0   ;;  %v2303_v1 = vld [vmem:[#allocation7 + $0x38] sm:$0xff]   ;;  %v2305_v3 = vld [vmem:[#allocation7 + $0x30] sm:$0xff]   ;;  %v942_v25 = vlaneseq }
  0xbd   : > { %2086 = vmatprep.subr.bf16.mxu1 %v2699_v0  ;;  %2102 = vmatprep.mubr.msk.bf16.mxu1 %vm2700_vm0, %v2699_v0  ;;  %v2304_v2 = vld [vmem:[#allocation8 + $0x38] sm:$0xff]   ;;  %v2306_v4 = vld [vmem:[#allocation8 + $0x30] sm:$0xff]   ;;  %v2307_v5 = vld [vmem:[#allocation7 + $0x28] sm:$0xff]   ;;  %v2701_v23 = vmov 1966171168   ;;  %vm1421_vm2 = vcmask 1041409  }
  0xbe   : > { %2062 = vmatprep.subr.bf16.mxu0 %v2303_v1  ;;  %2087 = vmatpush3.bf16.msra.mxu1 %v2304_v2  ;;  %v2308_v6 = vld [vmem:[#allocation8 + $0x28] sm:$0xff]   ;;  %v2309_v7 = vld [vmem:[#allocation7 + $0x20] sm:$0xff]   ;;  %v2311_v9 = vld [vmem:[#allocation7 + $0x18] sm:$0xff]   ;;  %v940_v24 = vunpack.c.l.s4 %v2701_v23  ;;  %v3093_v28 = vshrl.u32 %v942_v25, 7  ;;  %vm1423_vm3 = vcmask 1042434   ;;  %vm1425_vm4 = vcmask 1043459  }
  0xbf   : > { %2063 = vmatpush3.bf16.msra.mxu0 %v2303_v1  ;;  %2088 = vmatprep.subr.bf16.mxu1 %v2699_v0  ;;  %v2310_v8 = vld [vmem:[#allocation8 + $0x20] sm:$0xff]   ;;  %v2312_v10 = vld [vmem:[#allocation8 + $0x18] sm:$0xff]   ;;  %v2313_v11 = vld [vmem:[#allocation7 + $0x10] sm:$0xff]   ;;  %vm1427_vm5 = vcmask 1044484   ;;  %vm1429_vm6 = vcmask 1045509   ;;  %vm1431_vm7 = vcmask 1046534  }
  0xc0   : > { %2064 = vmatprep.subr.bf16.mxu0 %v2305_v3  ;;  %v3062_v12 = vld [vmem:[%s3022_s26] sm:$0xff]   ;;  %v2315_v14 = vld [vmem:[#allocation7 + $0x8] sm:$0xff]   ;;  %v2317_v16 = vld [vmem:[#allocation7] sm:$0xff]   ;;  %v941_v27 = vunpack.c.0.s8 %v940_v24  ;;  %v989_v45 = vsub.s32 0, %v3093_v28  ;;  %vm1053_vm1 = vcmp.lt.s32.totalorder %v3093_v28, 6  ;;  %vm1433_vm8 = vcmask 1047559  }
  0xc1   : > { %v2314_v13 = vld [vmem:[#allocation8 + $0x10] sm:$0xff]   ;;  %v2316_v15 = vld [vmem:[#allocation8 + $0x8] sm:$0xff]   ;;  %2078 = vmatprep.mubr.bf16.mxu0 %v3062_v12  ;;  %v2318_v17 = vld [vmem:[#allocation8] sm:$0xff]   ;;  %s3333_s0 = sld [smem:[#allocation35_spill]]  ;;  %s2001_s25 = sshll.u32 %s2804_s24, 7 }
  0xc2   : > { %2089 = vmatpush3.bf16.msra.mxu1 %v2306_v4  ;;  %v639_v18 = vld [vmem:[%s3032_s16] sm:$0xff]  ;;  %v3072_v20 = vld [vmem:[%s3022_s26 + $0x10] sm:$0xff]   ;;  %v3080_v22 = vld [vmem:[%s3022_s26 + $0x18] sm:$0xff]   ;;  %v944_v36 = vsub.s32 %v941_v27, %v3093_v28  ;;  %s636_s16 = scalar_lea.vmem [#allocation16], %s1933_s9  ;;  %s3334_s15 = sld [smem:[#allocation36_spill]] }
  0xc3   : > { %2065 = vmatpush3.bf16.msra.mxu0 %v2305_v3  ;;  %2090 = vmatprep.subr.bf16.mxu1 %v2699_v0  ;;  %v3069_v19 = vld [vmem:[%s3022_s26 + $0x8] sm:$0xff]   ;;  %v3075_v21 = vpack.c.bf16 %v639_v18, %v639_v18  ;;  %v1954_v26 = vld [vmem:[%s3269_s5] ss:$0 sm:$0xff]  ;;  %s1767_s23 = sshll.u32 %s636_s16, 4  ;;  %s1754_s22 = scalar_lea.sflag [#allocation4], %s3018_s2  ;;  %s3223_s23 = int_to_ptr.vmem [resolvable:$true] %s1767_s23 }
  0xc4   : > { %2066 = vmatprep.subr.bf16.mxu0 %v2307_v5  ;;  %v1963_v32 = vld [vmem:[%s3270_s6] ss:$0 sm:$0xff]  ;;  %s2603_s24 = scalar_lea.vmem %s3223_s23, 128  ;;  %p3335_p8 = scmp.ne.s32.totalorder %s3314_s14, 0 }
  0xc5   : > { %v1941_v40 = vld [vmem:[%s3267_s3] ss:$0 sm:$0xff]  ;;  %p2604_p5 = scmp.ne.s32.totalorder %s3223_s23, %s2603_s24  ;;  %s2702_s9 = smov [#allocation16]  }
  0xc6   : > { %2091 = vmatpush3.bf16.msra.mxu1 %v2308_v6  ;;  %s2607_s30 = sshll.u32 %s2702_s9, 4  ;;  %s2608_s30 = int_to_ptr.vmem [resolvable:$false] %s2607_s30 }
  0xc7   : > { %2067 = vmatpush3.bf16.msra.mxu0 %v2307_v5  ;;  %2092 = vmatprep.subr.bf16.mxu1 %v2699_v0  ;;  %p2605_p1 = pnand %p2604_p5, %p3335_p8  ;;  %s2609_s17 = scalar_lea.vmem %s2608_s30, 256 }
  0xc8   : > { %2068 = vmatprep.subr.bf16.mxu0 %v2309_v7  ;;  %s3221_s28 = scalar_lea.hbm %s3334_s15, %s2001_s25  ;;  %p2610_p6 = scmp.lt.s32.totalorder %s3223_s23, %s2608_s30 }
  0xc9   : > { %p2606_p4 = pneg %p2605_p1  ;;  %p2611_p2 = scmp.lt.s32.totalorder %s2609_s17, %s2603_s24 }
  0xca   : > { %2093 = vmatpush3.bf16.msra.mxu1 %v2310_v8 }
  0xcb   : > { %2069 = vmatpush3.bf16.msra.mxu0 %v2309_v7  ;;  %2094 = vmatprep.subr.bf16.mxu1 %v2699_v0  ;;  %p2612_p3 = por %p2611_p2, %p2610_p6 }
  0xcc   : > { %2070 = vmatprep.subr.bf16.mxu0 %v2311_v9 }
  0xcd   : > { %p2613_p7 = pnand %p2612_p3, %p2606_p4 }
  0xce   : > { %2095 = vmatpush3.bf16.msra.mxu1 %v2312_v10 }
  0xcf   : > { %2071 = vmatpush3.bf16.msra.mxu0 %v2311_v9  ;;  %2096 = vmatprep.subr.bf16.mxu1 %v2699_v0 }
  0xd0   : > { %2072 = vmatprep.subr.bf16.mxu0 %v2313_v11 }
  0xd2   : > { %2097 = vmatpush3.bf16.msra.mxu1 %v2314_v13 }
  0xd3   : > { %2073 = vmatpush3.bf16.msra.mxu0 %v2313_v11  ;;  %2098 = vmatprep.subr.bf16.mxu1 %v2699_v0 }
  0xd4   : > { %2074 = vmatprep.subr.bf16.mxu0 %v2315_v14 }
  0xd6   : > { %2099 = vmatpush3.bf16.msra.mxu1 %v2316_v15 }
  0xd7   : > { %2075 = vmatpush3.bf16.msra.mxu0 %v2315_v14  ;;  %2100 = vmatprep.subr.bf16.mxu1 %v2699_v0 }
  0xd8   : > { %2076 = vmatprep.subr.bf16.mxu0 %v2317_v16 }
  0xda   : > { %2101 = vmatpush3.bf16.msra.mxu1 %v2318_v17 }
  0xdb   : > { %2077 = vmatpush3.bf16.msra.mxu0 %v2317_v16  ;;  %2126 = vmatprep.subr.bf16.mxu1 %v2699_v0 }
  0xdc   : > { %2106 = vmatprep.subr.bf16.mxu0 %v2699_v0 }
  0xdd   : > { %2103 = vmatmul.mubr.bf16.vlgmr.msra.gmra.mxu1 %v3075_v21 }
  0xde   : > { %2079 = vmatmul.mubr.bf16.vlgmr.msra.gmra.mxu0 %v3069_v19  ;;  %2142 = vmatprep.mubr.msk.bf16.mxu1 %vm2700_vm0, %v2699_v0 }
  0xdf   : > { %2082 = vmatprep.mubr.bf16.mxu0 %v3072_v20 }
  0xe6   : > { %2083 = vmatmul.mubr.bf16.gmra.mxu0 %v3080_v22 }
  0xe7   : > { %2122 = vmatprep.mubr.msk.bf16.mxu0 %vm2700_vm0, %v2699_v0 }
 0x19d   : > { %v922_v29 = vpop.f32.mrf.mxu1 }
 0x19e   : > { %v2080_v30 = vpop.f32.mrf.mxu0  ;;  %v923_v31 = vadd.f32 %v1954_v26, %v922_v29 }
 0x19f   : > { %v2104_v33 = vpop.f32.mrf.mxu1  ;;  %v787_v50 = vadd.f32 %v2080_v30, %v1941_v40 }
 0x1a0   : > { %v778_v34 = vpop.f32.mrf.mxu0  ;;  %v928_v35 = vmax.f32 %v923_v31, 0.0 }
 0x1a1   : > { %v925_v37 = vpop.f32.mrf.mxu1  ;;  %v779_v46 = vadd.f32 %v1941_v40, %v778_v34  ;;  %v811_v60 = vmax.f32 %v787_v50, 0.0  ;;  %v2336_v50 = vld [vmem:[#allocation10] sm:$0xff]  }
 0x1a2   : > { %v2081_v38 = vpop.f32.mrf.mxu0  ;;  %v936_v39 = vmul.f32 %v1963_v32, %v928_v35  ;;  %v2325_v37 = vld [vmem:[#allocation11 + $0x38] sm:$0xff]  }
 0x1a3   : > { %v2105_v41 = vpop.f32.mrf.mxu1  ;;  %v809_v55 = vmax.f32 %v779_v46, 0.0  ;;  %v790_v61 = vadd.f32 %v2081_v38, %v1941_v40  ;;  %v2324_v38 = vld [vmem:[#allocation10 + $0x30] sm:$0xff]   ;;  %2127 = vmatpush3.bf16.msra.mxu1 %v2325_v37 }
 0x1a4   : > { %v781_v42 = vpop.f32.mrf.mxu0  ;;  %v938_v43 = vcombine.high %v936_v39, %v936_v39  ;;  %v945_v44 = vrot.slane %v936_v39, %v944_v36  ;;  %v2327_v39 = vld [vmem:[#allocation11 + $0x30] sm:$0xff]   ;;  %2128 = vmatprep.subr.bf16.mxu1 %v2699_v0  ;;  %v2329_v41 = vld [vmem:[#allocation11 + $0x28] sm:$0xff]  }
 0x1a5   : > { %v782_v53 = vadd.f32 %v1941_v40, %v781_v42  ;;  %v812_v11 = vmax.f32 %v790_v61, 0.0  ;;  %v2328_v42 = vld [vmem:[#allocation10 + $0x20] sm:$0xff]   ;;  %v2332_v46 = vld [vmem:[#allocation10 + $0x10] sm:$0xff]  }
 0x1a6   : > { %v2084_v47 = vpop.f32.mrf.mxu0  ;;  %v952_v48 = vrot.slane %v938_v43, %v944_v36  ;;  %v953_v49 = vcombine.high %v945_v44, %v945_v44  ;;  %v961_v52 = vrot.slane %v945_v44, %v944_v36  ;;  %v2331_v43 = vld [vmem:[#allocation11 + $0x20] sm:$0xff]   ;;  %v2330_v44 = vld [vmem:[#allocation10 + $0x18] sm:$0xff]  }
 0x1a7   : > { %v810_v6 = vmax.f32 %v782_v53, 0.0  ;;  %v803_v13 = vadd.f32 %v2084_v47, %v1941_v40  ;;  %2129 = vmatpush3.bf16.msra.mxu1 %v2327_v39  ;;  %v2335_v47 = vld [vmem:[#allocation11 + $0x10] sm:$0xff]  }
 0x1a8   : > { %v794_v51 = vpop.f32.mrf.mxu0  ;;  %v975_v54 = vrot.slane %v953_v49, %v944_v36  ;;  %v990_v57 = vrot.slane %v961_v52, %v989_v45  ;;  %v983_v58 = vcombine.high %v961_v52, %v961_v52  ;;  %v954_v59 = vcombine.high %v952_v48, %v952_v48  ;;  %2130 = vmatprep.subr.bf16.mxu1 %v2699_v0  ;;  %v2337_v49 = vld [vmem:[#allocation11 + $0x8] sm:$0xff]   ;;  %v2339_v52 = vld [vmem:[#allocation13 + $0x38] sm:$0xff]   ;;  %v2340_v53 = vld [vmem:[#allocation13 + $0x30] sm:$0xff]  }
 0x1a9   : > { %v795_v62 = vadd.f32 %v1941_v40, %v794_v51  ;;  %v968_v5 = vrot.slane %v952_v48, %v944_v36  ;;  %v815_v26 = vmax.f32 %v803_v13, 0.0  ;;  %v2334_v48 = vld [vmem:[#allocation10 + $0x8] sm:$0xff]   ;;  %v2338_v51 = vld [vmem:[#allocation11] sm:$0xff]  }
 0x1aa   : > { %v2085_v56 = vpop.f32.mrf.mxu0  ;;  %v985_v63 = vcombine.high %v975_v54, %v975_v54  ;;  %v1027_v2 = vmul.f32 %v990_v57, %v809_v55  ;;  %v998_v3 = vrot.slane %v983_v58, %v989_v45  ;;  %v994_v4 = vrot.slane %v975_v54, %v989_v45  ;;  %v2341_v54 = vld [vmem:[#allocation13 + $0x28] sm:$0xff]   ;;  %v2342_v55 = vld [vmem:[#allocation13 + $0x20] sm:$0xff]  }
 0x1ab   : > { %v982_v10 = vrot.slane %v954_v59, %v944_v36  ;;  %v813_v14 = vmax.f32 %v795_v62, 0.0  ;;  %v1006_v16 = vrot.slane %v968_v5, %v989_v45  ;;  %v984_v17 = vcombine.high %v968_v5, %v968_v5  ;;  %v2323_v36 = vld [vmem:[#allocation10 + $0x38] sm:$0xff]   ;;  %2131 = vmatpush3.bf16.msra.mxu1 %v2329_v41 }
 0x1ac   : > { %v797_v1 = vpop.f32.mrf.mxu0  ;;  %1035 = vadd.xlane.f32.xlu0 %v1027_v2  ;;  %v1029_v8 = vmul.f32 %v998_v3, %v811_v60  ;;  %v1002_v9 = vrot.slane %v985_v63, %v989_v45  ;;  %v1028_v15 = vmul.f32 %v994_v4, %v810_v6  ;;  %v806_v18 = vadd.f32 %v2085_v56, %v1941_v40 }
 0x1ad   : > { %v798_v7 = vadd.f32 %v1941_v40, %v797_v1  ;;  %v986_v25 = vcombine.high %v982_v10, %v982_v10  ;;  %v1031_v27 = vmul.f32 %v1006_v16, %v813_v14  ;;  %v1010_v29 = vrot.slane %v982_v10, %v989_v45  ;;  %2107 = vmatpush3.bf16.msra.mxu0 %v2323_v36  ;;  %v2326_v40 = vld [vmem:[#allocation10 + $0x28] sm:$0xff]  }
 0x1ae   : > { %1039 = vadd.xlane.f32.xlu1 %v1029_v8  ;;  %v1030_v24 = vmul.f32 %v1002_v9, %v812_v11  ;;  %v1014_v30 = vrot.slane %v984_v17, %v989_v45  ;;  %v816_v31 = vmax.f32 %v806_v18, 0.0  ;;  %2108 = vmatprep.subr.bf16.mxu0 %v2699_v0 }
 0x1af   : > { %v814_v23 = vmax.f32 %v798_v7, 0.0  ;;  %v1018_v33 = vrot.slane %v986_v25, %v989_v45  ;;  %2132 = vmatprep.subr.bf16.mxu1 %v2699_v0  ;;  %v2333_v45 = vld [vmem:[#allocation11 + $0x18] sm:$0xff]  }
 0x1b0   : > { %1037 = vadd.xlane.f32.xlu0 %v1028_v15  ;;  %v1033_v34 = vmul.f32 %v1014_v30, %v815_v26  ;;  %2133 = vmatpush3.bf16.msra.mxu1 %v2331_v43 }
 0x1b1   : > { %v1032_v32 = vmul.f32 %v1010_v29, %v814_v23  ;;  %v1034_v35 = vmul.f32 %v1018_v33, %v816_v31  ;;  %2109 = vmatpush3.bf16.msra.mxu0 %v2324_v38  ;;  %2134 = vmatprep.subr.bf16.mxu1 %v2699_v0 }
 0x1b2   : > { %1041 = vadd.xlane.f32.xlu1 %v1030_v24  ;;  %2110 = vmatprep.subr.bf16.mxu0 %v2699_v0 }
 0x1b4   : > { %1043 = vadd.xlane.f32.xlu0 %v1031_v27  ;;  %2135 = vmatpush3.bf16.msra.mxu1 %v2333_v45 }
 0x1b5   : > { %2111 = vmatpush3.bf16.msra.mxu0 %v2326_v40  ;;  %2136 = vmatprep.subr.bf16.mxu1 %v2699_v0 }
 0x1b6   : > { %1045 = vadd.xlane.f32.xlu1 %v1032_v32  ;;  %2112 = vmatprep.subr.bf16.mxu0 %v2699_v0 }
 0x1b8   : > { %1047 = vadd.xlane.f32.xlu0 %v1033_v34  ;;  %2137 = vmatpush3.bf16.msra.mxu1 %v2335_v47 }
 0x1b9   : > { %2113 = vmatpush3.bf16.msra.mxu0 %v2328_v42  ;;  %2138 = vmatprep.subr.bf16.mxu1 %v2699_v0 }
 0x1ba   : > { %1049 = vadd.xlane.f32.xlu1 %v1034_v35  ;;  %2114 = vmatprep.subr.bf16.mxu0 %v2699_v0 }
 0x1bc   : > { %2139 = vmatpush3.bf16.msra.mxu1 %v2337_v49 }
 0x1bd   : > { %2115 = vmatpush3.bf16.msra.mxu0 %v2330_v44  ;;  %2140 = vmatprep.subr.bf16.mxu1 %v2699_v0 }
 0x1be   : > { %2116 = vmatprep.subr.bf16.mxu0 %v2699_v0 }
 0x1c0   : > { %2141 = vmatpush3.bf16.msra.mxu1 %v2338_v51 }
 0x1c1   : > { %2117 = vmatpush3.bf16.msra.mxu0 %v2332_v46  ;;  %2166 = vmatprep.subr.bf16.mxu1 %v2699_v0 }
 0x1c2   : > { %2118 = vmatprep.subr.bf16.mxu0 %v2699_v0 }
 0x1c5   : > { %2119 = vmatpush3.bf16.msra.mxu0 %v2334_v48 }
 0x1c6   : > { %2120 = vmatprep.subr.bf16.mxu0 %v2699_v0 }
 0x1c9   : > { %2121 = vmatpush3.bf16.msra.mxu0 %v2336_v50 }
 0x1ca   : > { %2146 = vmatprep.subr.bf16.mxu0 %v2699_v0 }
 0x1cc   : > { %2123 = vmatmul.mubr.bf16.vlgmr.msra.gmra.mxu0 %v3075_v21 }
 0x1cd   : > { %2162 = vmatprep.mubr.msk.bf16.mxu0 %vm2700_vm0, %v2699_v0  ;;  %2147 = vmatpush3.bf16.msra.mxu0 %v2339_v52 }
 0x1ce   : > { %2148 = vmatprep.subr.bf16.mxu0 %v2699_v0 }
 0x1d1   : > { %2149 = vmatpush3.bf16.msra.mxu0 %v2340_v53 }
 0x1d2   : > { %2150 = vmatprep.subr.bf16.mxu0 %v2699_v0 }
 0x1d5   : > { %2151 = vmatpush3.bf16.msra.mxu0 %v2341_v54 }
 0x1d6   : > { %2152 = vmatprep.subr.bf16.mxu0 %v2699_v0 }
 0x1d9   : > { %2153 = vmatpush3.bf16.msra.mxu0 %v2342_v55 }
 0x1da   : > { %2154 = vmatprep.subr.bf16.mxu0 %v2699_v0 }
 0x235   : > { %v1036_v21 = vpop.xlane.xlu0 %1035 }
 0x236   : > { %v1054_v56 = vsel %vm1053_vm1, %v1036_v21, -inf }
 0x237   : > { %v1062_v57 = vrot.slane %v1054_v56, 4  ;;  %v1040_v58 = vpop.xlane.xlu1 %1039 }
 0x238   : > { %v1056_v59 = vsel %vm1053_vm1, %v1040_v58, -inf }
 0x239   : > { %v1063_v60 = vmax.f32 %v1054_v56, %v1062_v57  ;;  %v1074_v61 = vrot.slane %v1056_v59, 4  ;;  %v1038_v62 = vpop.xlane.xlu0 %1037 }
 0x23a   : > { %v1055_v63 = vsel %vm1053_vm1, %v1038_v62, -inf }
 0x23b   : > { %v1064_v1 = vrot.slane %v1063_v60, 2  ;;  %v1075_v2 = vmax.f32 %v1056_v59, %v1074_v61  ;;  %v1068_v3 = vrot.slane %v1055_v63, 4  ;;  %v1042_v4 = vpop.xlane.xlu1 %1041 }
 0x23c   : > { %v1057_v5 = vsel %vm1053_vm1, %v1042_v4, -inf }
 0x23d   : > { %v1065_v6 = vmax.f32 %v1063_v60, %v1064_v1  ;;  %v1076_v7 = vrot.slane %v1075_v2, 2  ;;  %v1069_v8 = vmax.f32 %v1055_v63, %v1068_v3  ;;  %v1080_v9 = vrot.slane %v1057_v5, 4  ;;  %v1044_v10 = vpop.xlane.xlu0 %1043 }
 0x23e   : > { %v1058_v11 = vsel %vm1053_vm1, %v1044_v10, -inf }
 0x23f   : > { %v1066_v13 = vrot.slane %v1065_v6, 1  ;;  %v1077_v14 = vmax.f32 %v1075_v2, %v1076_v7  ;;  %v1070_v15 = vrot.slane %v1069_v8, 2  ;;  %v1081_v16 = vmax.f32 %v1057_v5, %v1080_v9  ;;  %v1046_v17 = vpop.xlane.xlu1 %1045 }
 0x240   : > { %v1086_v18 = vrot.slane %v1058_v11, 4  ;;  %v1059_v23 = vsel %vm1053_vm1, %v1046_v17, -inf }
 0x241   : > { %v1067_v24 = vmax.f32 %v1065_v6, %v1066_v13  ;;  %v1078_v25 = vrot.slane %v1077_v14, 1  ;;  %v1071_v26 = vmax.f32 %v1069_v8, %v1070_v15  ;;  %v1082_v27 = vrot.slane %v1081_v16, 2  ;;  %v1048_v29 = vpop.xlane.xlu0 %1047  ;;  %v2343_v8 = vld [vmem:[#allocation13 + $0x18] sm:$0xff]   ;;  %v2344_v13 = vld [vmem:[#allocation13 + $0x10] sm:$0xff]  }
 0x242   : > { %v1087_v30 = vmax.f32 %v1058_v11, %v1086_v18  ;;  %v1092_v31 = vrot.slane %v1059_v23, 4  ;;  %v1060_v32 = vsel %vm1053_vm1, %v1048_v29, -inf  ;;  %2155 = vmatpush3.bf16.msra.mxu0 %v2343_v8 }
 0x243   : > { %v1110_v33 = vsub.f32 %v1054_v56, %v1067_v24  ;;  %v1079_v34 = vmax.f32 %v1077_v14, %v1078_v25  ;;  %v1072_v35 = vrot.slane %v1071_v26, 1  ;;  %v1083_v36 = vmax.f32 %v1081_v16, %v1082_v27  ;;  %v1050_v37 = vpop.xlane.xlu1 %1049  ;;  %2156 = vmatprep.subr.bf16.mxu0 %v2699_v0 }
 0x244   : > { %v1088_v38 = vrot.slane %v1087_v30, 2  ;;  %v1093_v39 = vmax.f32 %v1059_v23, %v1092_v31  ;;  %v1098_v40 = vrot.slane %v1060_v32, 4  ;;  %v1061_v41 = vsel %vm1053_vm1, %v1050_v37, -inf }
 0x245   : > { %v1118_v42 = vmul.f32 1.442695, %v1110_v33  ;;  %v1112_v43 = vsub.f32 %v1056_v59, %v1079_v34  ;;  %v1073_v44 = vmax.f32 %v1071_v26, %v1072_v35  ;;  %v1084_v45 = vrot.slane %v1083_v36, 1 }
 0x246   : > { %v1089_v46 = vmax.f32 %v1087_v30, %v1088_v38  ;;  %v1094_v47 = vrot.slane %v1093_v39, 2  ;;  %v1099_v48 = vmax.f32 %v1060_v32, %v1098_v40  ;;  %v1104_v49 = vrot.slane %v1061_v41, 4  ;;  %2157 = vmatpush3.bf16.msra.mxu0 %v2344_v13 }
 0x247   : > { %2359 = vpow2.f32 %v1118_v42  ;;  %v1122_v50 = vmul.f32 1.442695, %v1112_v43  ;;  %v1111_v51 = vsub.f32 %v1055_v63, %v1073_v44  ;;  %v1085_v52 = vmax.f32 %v1083_v36, %v1084_v45  ;;  %2158 = vmatprep.subr.bf16.mxu0 %v2699_v0 }
 0x248   : > { %v1090_v53 = vrot.slane %v1089_v46, 1  ;;  %v1095_v54 = vmax.f32 %v1093_v39, %v1094_v47  ;;  %v1100_v55 = vrot.slane %v1099_v48, 2  ;;  %v1105_v21 = vmax.f32 %v1061_v41, %v1104_v49 }
 0x249   : > { %2361 = vpow2.f32 %v1122_v50  ;;  %v1120_v56 = vmul.f32 1.442695, %v1111_v51  ;;  %v1113_v28 = vsub.f32 %v1057_v5, %v1085_v52  ;;  %v1198_v13 = vunpack.c.l.bf16 %v3062_v12 }
 0x24a   : > { %v1091_v57 = vmax.f32 %v1089_v46, %v1090_v53  ;;  %v1096_v58 = vrot.slane %v1095_v54, 1  ;;  %v1101_v59 = vmax.f32 %v1099_v48, %v1100_v55  ;;  %v1106_v60 = vrot.slane %v1105_v21, 2 }
 0x24b   : > { %2363 = vpow2.f32 %v1120_v56  ;;  %v1124_v61 = vmul.f32 1.442695, %v1113_v28 }
 0x24c   : > { %v1114_v62 = vsub.f32 %v1058_v11, %v1091_v57  ;;  %v1097_v1 = vmax.f32 %v1095_v54, %v1096_v58  ;;  %v1102_v2 = vrot.slane %v1101_v59, 1  ;;  %v1107_v3 = vmax.f32 %v1105_v21, %v1106_v60 }
 0x24d   : > { %2365 = vpow2.f32 %v1124_v61 }
 0x24e   : > { %v1126_v63 = vmul.f32 1.442695, %v1114_v62  ;;  %v1115_v4 = vsub.f32 %v1059_v23, %v1097_v1  ;;  %v1103_v6 = vmax.f32 %v1101_v59, %v1102_v2  ;;  %v1108_v7 = vrot.slane %v1107_v3, 1 }
 0x250   : > { %2367 = vpow2.f32 %v1126_v63  ;;  %v1128_v9 = vmul.f32 1.442695, %v1115_v4  ;;  %v1116_v10 = vsub.f32 %v1060_v32, %v1103_v6  ;;  %v1109_v5 = vmax.f32 %v1107_v3, %v1108_v7 }
 0x252   : > { %2369 = vpow2.f32 %v1128_v9  ;;  %v1130_v14 = vmul.f32 1.442695, %v1116_v10  ;;  %v1117_v11 = vsub.f32 %v1061_v41, %v1109_v5 }
 0x254   : > { %v3144_v15 = vpop.eup %2359  ;;  %2371 = vpow2.f32 %v1130_v14  ;;  %v1132_v16 = vmul.f32 1.442695, %v1117_v11 }
 0x255   : > { %v1134_v17 = vrot.slane %v3144_v15, 4 }
 0x256   : > { %v3148_v18 = vpop.eup %2361  ;;  %2373 = vpow2.f32 %v1132_v16  ;;  %v1200_v16 = vunpack.c.l.bf16 %v3069_v19 }
 0x257   : > { %v1135_v23 = vadd.f32 %v3144_v15, %v1134_v17  ;;  %v1146_v24 = vrot.slane %v3148_v18, 4 }
 0x258   : > { %v3152_v25 = vpop.eup %2363 }
 0x259   : > { %v1136_v26 = vrot.slane %v1135_v23, 2  ;;  %v1147_v27 = vadd.f32 %v3148_v18, %v1146_v24  ;;  %v1140_v29 = vrot.slane %v3152_v25, 4  ;;  %v1199_v24 = vunpack.c.h.bf16 %v3062_v12 }
 0x25a   : > { %v3156_v30 = vpop.eup %2365 }
 0x25b   : > { %v1137_v31 = vadd.f32 %v1136_v26, %v1135_v23  ;;  %v1148_v32 = vrot.slane %v1147_v27, 2  ;;  %v1141_v33 = vadd.f32 %v3152_v25, %v1140_v29  ;;  %v1152_v34 = vrot.slane %v3156_v30, 4 }
 0x25d   : > { %v3160_v35 = vpop.eup %2367  ;;  %v1138_v36 = vrot.slane %v1137_v31, 1  ;;  %v1149_v37 = vadd.f32 %v1148_v32, %v1147_v27  ;;  %v1142_v38 = vrot.slane %v1141_v33, 2  ;;  %v1153_v39 = vadd.f32 %v3156_v30, %v1152_v34 }
 0x25e   : > { %v1158_v40 = vrot.slane %v3160_v35, 4 }
 0x25f   : > { %v3164_v41 = vpop.eup %2369  ;;  %v1139_v42 = vadd.f32 %v1138_v36, %v1137_v31  ;;  %v1150_v43 = vrot.slane %v1149_v37, 1  ;;  %v1143_v44 = vadd.f32 %v1142_v38, %v1141_v33  ;;  %v1154_v45 = vrot.slane %v1153_v39, 2 }
 0x260   : > { %v1159_v46 = vadd.f32 %v3160_v35, %v1158_v40  ;;  %v1164_v47 = vrot.slane %v3164_v41, 4  ;;  %v1201_v31 = vunpack.c.h.bf16 %v3069_v19  ;;  %v1202_v40 = vunpack.c.l.bf16 %v3072_v20 }
 0x261   : > { %v3168_v48 = vpop.eup %2371  ;;  %2375 = vrcp.f32 %v1139_v42  ;;  %v1151_v49 = vadd.f32 %v1150_v43, %v1149_v37  ;;  %v1144_v50 = vrot.slane %v1143_v44, 1  ;;  %v1155_v51 = vadd.f32 %v1154_v45, %v1153_v39 }
 0x262   : > { %v1160_v52 = vrot.slane %v1159_v46, 2  ;;  %v1165_v53 = vadd.f32 %v3164_v41, %v1164_v47  ;;  %v1170_v54 = vrot.slane %v3168_v48, 4  ;;  %v1203_v45 = vunpack.c.h.bf16 %v3072_v20 }
 0x263   : > { %v3172_v55 = vpop.eup %2373  ;;  %2377 = vrcp.f32 %v1151_v49  ;;  %v1145_v21 = vadd.f32 %v1144_v50, %v1143_v44  ;;  %v1156_v56 = vrot.slane %v1155_v51, 1 }
 0x264   : > { %v1161_v28 = vadd.f32 %v1160_v52, %v1159_v46  ;;  %v1166_v57 = vrot.slane %v1165_v53, 2  ;;  %v1171_v58 = vadd.f32 %v3168_v48, %v1170_v54  ;;  %v1176_v59 = vrot.slane %v3172_v55, 4 }
 0x265   : > { %2379 = vrcp.f32 %v1145_v21  ;;  %v1157_v60 = vadd.f32 %v1156_v56, %v1155_v51 }
 0x266   : > { %v1162_v61 = vrot.slane %v1161_v28, 1  ;;  %v1167_v62 = vadd.f32 %v1166_v57, %v1165_v53  ;;  %v1172_v1 = vrot.slane %v1171_v58, 2  ;;  %v1177_v2 = vadd.f32 %v3172_v55, %v1176_v59 }
 0x267   : > { %2381 = vrcp.f32 %v1157_v60  ;;  %v1205_v57 = vunpack.c.h.bf16 %v3080_v22 }
 0x268   : > { %v1163_v3 = vadd.f32 %v1162_v61, %v1161_v28  ;;  %v1168_v63 = vrot.slane %v1167_v62, 1  ;;  %v1173_v4 = vadd.f32 %v1172_v1, %v1171_v58  ;;  %v1178_v6 = vrot.slane %v1177_v2, 2 }
 0x26a   : > { %2383 = vrcp.f32 %v1163_v3  ;;  %v1169_v7 = vadd.f32 %v1168_v63, %v1167_v62  ;;  %v1174_v8 = vrot.slane %v1173_v4, 1  ;;  %v1179_v9 = vadd.f32 %v1178_v6, %v1177_v2 }
 0x26c   : > { %v1175_v10 = vadd.f32 %v1174_v8, %v1173_v4  ;;  %v1180_v5 = vrot.slane %v1179_v9, 1  ;;  %2385 = vrcp.f32 %v1169_v7 }
 0x26e   : > { %v2376_v14 = vpop.eup %2375  ;;  %v1181_v11 = vadd.f32 %v1180_v5, %v1179_v9  ;;  %2387 = vrcp.f32 %v1175_v10 }
 0x26f   : > { %v1190_v17 = vmul.f32 %v2376_v14, %v3144_v15 }
 0x270   : > { %v2378_v23 = vpop.eup %2377  ;;  %2389 = vrcp.f32 %v1181_v11 }
 0x271   : > { %v1192_v26 = vmul.f32 %v2378_v23, %v3148_v18  ;;  %v1206_v27 = vmul.f32 %v1198_v13, %v1190_v17 }
 0x272   : > { %v2380_v29 = vpop.eup %2379 }
 0x273   : > { %v1191_v32 = vmul.f32 %v2380_v29, %v3152_v25  ;;  %v1208_v33 = vmul.f32 %v1200_v16, %v1192_v26  ;;  %v1214_v34 = vrot.slane %v1206_v27, 4 }
 0x274   : > { %v2382_v36 = vpop.eup %2381 }
 0x275   : > { %v1193_v37 = vmul.f32 %v2382_v36, %v3156_v30  ;;  %v1207_v38 = vmul.f32 %v1199_v24, %v1191_v32  ;;  %v1215_v39 = vadd.f32 %v1214_v34, %v1206_v27  ;;  %v1226_v15 = vrot.slane %v1208_v33, 4 }
 0x276   : > { %v1204_v30 = vunpack.c.l.bf16 %v3080_v22 }
 0x277   : > { %v2384_v42 = vpop.eup %2383  ;;  %v1209_v12 = vmul.f32 %v1201_v31, %v1193_v37  ;;  %v1216_v43 = vrot.slane %v1215_v39, 2  ;;  %v1220_v18 = vrot.slane %v1207_v38, 4  ;;  %v1227_v44 = vadd.f32 %v1226_v15, %v1208_v33 }
 0x278   : > { %v1194_v19 = vmul.f32 %v2384_v42, %v3160_v35 }
 0x279   : > { %v2386_v25 = vpop.eup %2385  ;;  %v1217_v46 = vadd.f32 %v1216_v43, %v1215_v39  ;;  %v1221_v47 = vadd.f32 %v1220_v18, %v1207_v38  ;;  %v1228_v49 = vrot.slane %v1227_v44, 2  ;;  %v1232_v50 = vrot.slane %v1209_v12, 4 }
 0x27a   : > { %v1195_v51 = vmul.f32 %v2386_v25, %v3164_v41  ;;  %v1210_v52 = vmul.f32 %v1202_v40, %v1194_v19 }
 0x27b   : > { %v2388_v53 = vpop.eup %2387  ;;  %v1218_v54 = vrot.slane %v1217_v46, 1  ;;  %v1222_v21 = vrot.slane %v1221_v47, 2  ;;  %v1229_v56 = vadd.f32 %v1228_v49, %v1227_v44  ;;  %v1233_v28 = vadd.f32 %v1232_v50, %v1209_v12 }
 0x27c   : > { %v1196_v20 = vmul.f32 %v2388_v53, %v3168_v48  ;;  %v1211_v35 = vmul.f32 %v1203_v45, %v1195_v51  ;;  %v1238_v58 = vrot.slane %v1210_v52, 4 }
 0x27d   : > { %v2390_v59 = vpop.eup %2389  ;;  %v1219_v60 = vadd.f32 %v1218_v54, %v1217_v46  ;;  %v1223_v61 = vadd.f32 %v1222_v21, %v1221_v47  ;;  %v1230_v62 = vrot.slane %v1229_v56, 1  ;;  %v1234_v1 = vrot.slane %v1233_v28, 2 }
 0x27e   : > { %v1197_v2 = vmul.f32 %v2390_v59, %v3172_v55  ;;  %v1212_v41 = vmul.f32 %v1204_v30, %v1196_v20  ;;  %v1239_v3 = vadd.f32 %v1238_v58, %v1210_v52  ;;  %v1244_v63 = vrot.slane %v1211_v35, 4 }
 0x27f   : > { %v1224_v4 = vrot.slane %v1223_v61, 1  ;;  %v1231_v6 = vadd.f32 %v1230_v62, %v1229_v56  ;;  %v1235_v7 = vadd.f32 %v1234_v1, %v1233_v28  ;;  %v1374_v13 = vpack.c.bf16 %v1219_v60, %v1219_v60  ;;  %v2346_v62 = vld [vmem:[#allocation13] sm:$0xff]   ;;  %v2347_v1 = vld [vmem:[#allocation14 + $0x38] sm:$0xff]  }
 0x280   : > { %v1213_v8 = vmul.f32 %v1205_v57, %v1197_v2  ;;  %v1240_v9 = vrot.slane %v1239_v3, 2  ;;  %v1245_v22 = vadd.f32 %v1244_v63, %v1211_v35  ;;  %v1250_v10 = vrot.slane %v1212_v41, 4  ;;  %v2348_v2 = vld [vmem:[#allocation14 + $0x30] sm:$0xff]   ;;  %v2351_v63 = vld [vmem:[#allocation14 + $0x18] sm:$0xff]  }
 0x281   : > { %v1225_v48 = vadd.f32 %v1224_v4, %v1223_v61  ;;  %v1236_v5 = vrot.slane %v1235_v7, 1  ;;  %v1376_v55 = vpack.c.bf16 %v1231_v6, %v1231_v6  ;;  %v1413_v33 = vunpack.c.l.b16 %v1374_v13  ;;  %v2345_v61 = vld [vmem:[#allocation13 + $0x8] sm:$0xff]   ;;  %v2352_v4 = vld [vmem:[#allocation14 + $0x10] sm:$0xff]  }
 0x282   : > { %v1241_v14 = vadd.f32 %v1240_v9, %v1239_v3  ;;  %v1246_v11 = vrot.slane %v1245_v22, 2  ;;  %v1251_v16 = vadd.f32 %v1250_v10, %v1212_v41  ;;  %v1256_v17 = vrot.slane %v1213_v8, 4  ;;  %2159 = vmatpush3.bf16.msra.mxu0 %v2345_v61  ;;  %v2349_v41 = vld [vmem:[#allocation14 + $0x28] sm:$0xff]   ;;  %v2350_v3 = vld [vmem:[#allocation14 + $0x20] sm:$0xff]   ;;  %v1964_v6 = vld [vmem:[%s3272_s8] ss:$0 sm:$0xff] }
 0x283   : > { %v1237_v23 = vadd.f32 %v1236_v5, %v1235_v7  ;;  %v1375_v24 = vpack.c.bf16 %v1225_v48, %v1225_v48  ;;  %v1415_v15 = vunpack.c.l.b16 %v1376_v55  ;;  %2160 = vmatprep.subr.bf16.mxu0 %v2699_v0 }
 0x284   : > { %v1242_v26 = vrot.slane %v1241_v14, 1  ;;  %v1247_v27 = vadd.f32 %v1246_v11, %v1245_v22  ;;  %v1252_v29 = vrot.slane %v1251_v16, 2  ;;  %v1257_v31 = vadd.f32 %v1256_v17, %v1213_v8  ;;  %v1973_v8 = vld [vmem:[%s3274_s10] ss:$0 sm:$0xff]  ;;  %v2353_v17 = vld [vmem:[#allocation14 + $0x8] sm:$0xff]  }
 0x285   : > { %v1377_v32 = vpack.c.bf16 %v1237_v23, %v1237_v23  ;;  %v1414_v34 = vunpack.c.l.b16 %v1375_v24  ;;  %v2354_v23 = vld [vmem:[#allocation14] sm:$0xff]   ;;  %v1982_v24 = vld [vmem:[%s3276_s12] ss:$0 sm:$0xff] }
 0x286   : > { %v1243_v36 = vadd.f32 %v1242_v26, %v1241_v14  ;;  %v1248_v37 = vrot.slane %v1247_v27, 1  ;;  %v1253_v38 = vadd.f32 %v1252_v29, %v1251_v16  ;;  %v1258_v39 = vrot.slane %v1257_v31, 2  ;;  %2161 = vmatpush3.bf16.msra.mxu0 %v2346_v62 }
 0x287   : > { %v1416_v40 = vunpack.c.l.b16 %v1377_v32  ;;  %v1422_v42 = vsel %vm1421_vm2, %v1414_v34, %v1413_v33 }
 0x288   : > { %v1249_v12 = vadd.f32 %v1248_v37, %v1247_v27  ;;  %v1254_v43 = vrot.slane %v1253_v38, 1  ;;  %v1259_v18 = vadd.f32 %v1258_v39, %v1257_v31  ;;  %v1378_v44 = vpack.c.bf16 %v1243_v36, %v1243_v36 }
 0x289   : > { %v1424_v45 = vsel %vm1423_vm3, %v1415_v15, %v1422_v42 }
 0x28a   : > { %v1255_v19 = vadd.f32 %v1254_v43, %v1253_v38  ;;  %v1260_v25 = vrot.slane %v1259_v18, 1  ;;  %v1379_v46 = vpack.c.bf16 %v1249_v12, %v1249_v12  ;;  %v1417_v47 = vunpack.c.l.b16 %v1378_v44 }
 0x28b   : > { %v1426_v49 = vsel %vm1425_vm4, %v1416_v40, %v1424_v45 }
 0x28c   : > { %v1261_v50 = vadd.f32 %v1260_v25, %v1259_v18  ;;  %v1380_v30 = vpack.c.bf16 %v1255_v19, %v1255_v19  ;;  %v1418_v51 = vunpack.c.l.b16 %v1379_v46  ;;  %v1428_v52 = vsel %vm1427_vm5, %v1417_v47, %v1426_v49  ;;  %v1367_v35 = vpop.f32.mrf.mxu0 }
 0x28d   : > { %v1368_v7 = vadd.f32 %v1964_v6, %v1367_v35 }
 0x28e   : > { %v1381_v53 = vpack.c.bf16 %v1261_v50, %v1261_v50  ;;  %v1419_v54 = vunpack.c.l.b16 %v1380_v30  ;;  %v1430_v21 = vsel %vm1429_vm6, %v1418_v51, %v1428_v52  ;;  %v2124_v58 = vpop.f32.mrf.mxu0 }
 0x28f   : > { %v1373_v22 = vmax.f32 %v1368_v7, 0.0 }
 0x290   : > { %v1420_v56 = vunpack.c.l.b16 %v1381_v53  ;;  %v1432_v28 = vsel %vm1431_vm7, %v1419_v54, %v1430_v21  ;;  %v1370_v59 = vpop.f32.mrf.mxu0 }
 0x292   : > { %v1434_v57 = vsel %vm1433_vm8, %v1420_v56, %v1432_v28  ;;  %v2125_v60 = vpop.f32.mrf.mxu0 }
 0x293   : > { %v1435_v20 = vpack.c.b16 %v1434_v57, %v1434_v57 }
 0x295   : > { %2143 = vmatmul.mubr.bf16.vlgmr.msra.gmra.mxu1 %v1435_v20 }
 0x296   : > { %2182 = vmatprep.mubr.msk.bf16.mxu1 %vm2700_vm0, %v2699_v0  ;;  %2167 = vmatpush3.bf16.msra.mxu1 %v2347_v1 }
 0x297   : > { %2168 = vmatprep.subr.bf16.mxu1 %v2699_v0 }
 0x29a   : > { %2169 = vmatpush3.bf16.msra.mxu1 %v2348_v2 }
 0x29b   : > { %2170 = vmatprep.subr.bf16.mxu1 %v2699_v0 }
 0x29e   : > { %2171 = vmatpush3.bf16.msra.mxu1 %v2349_v41 }
 0x29f   : > { %2172 = vmatprep.subr.bf16.mxu1 %v2699_v0 }
 0x2a2   : > { %2173 = vmatpush3.bf16.msra.mxu1 %v2350_v3 }
 0x2a3   : > { %2174 = vmatprep.subr.bf16.mxu1 %v2699_v0 }
 0x2a6   : > { %2175 = vmatpush3.bf16.msra.mxu1 %v2351_v63 }
 0x2a7   : > { %2176 = vmatprep.subr.bf16.mxu1 %v2699_v0 }
 0x2aa   : > { %2177 = vmatpush3.bf16.msra.mxu1 %v2352_v4 }
 0x2ab   : > { %2178 = vmatprep.subr.bf16.mxu1 %v2699_v0 }
 0x2ae   : > { %2179 = vmatpush3.bf16.msra.mxu1 %v2353_v17 }
 0x2af   : > { %2180 = vmatprep.subr.bf16.mxu1 %v2699_v0  ;;  %v1991_v0 = vld [vmem:[%s3333_s0] ss:$0 sm:$0xff] }
 0x2b2   : > { %2181 = vmatpush3.bf16.msra.mxu1 %v2354_v23 }
 0x355   : > { %v1519_v9 = vpop.f32.mrf.mxu1 }
 0x356   : > { %v1520_v10 = vadd.f32 %v1973_v8, %v1519_v9 }
 0x357   : > { %v2144_v48 = vpop.f32.mrf.mxu1 }
 0x358   : > { %v1525_v5 = vmax.f32 %v1520_v10, 0.0 }
 0x359   : > { %v1522_v13 = vpop.f32.mrf.mxu1 }
 0x35a   : > { %v1526_v14 = vmul.f32 %v1525_v5, %v1373_v22 }
 0x35b   : > { %v2145_v11 = vpop.f32.mrf.mxu1 }
 0x35c   : > { %v1527_v16 = vpack.c.bf16 %v1526_v14, %v1526_v14 }
 0x35e   : > { %2163 = vmatmul.mubr.bf16.vlgmr.msra.gmra.mxu0 %v1527_v16 }
 0x41e   : > { %v1633_v55 = vpop.f32.mrf.mxu0 }
 0x41f   : > { %v1634_v26 = vadd.f32 %v1982_v24, %v1633_v55 }
 0x420   : > { %v2164_v27 = vpop.f32.mrf.mxu0 }
 0x421   : > { %v1639_v29 = vmax.f32 %v1634_v26, 0.0 }
 0x422   : > { %v1636_v31 = vpop.f32.mrf.mxu0 }
 0x423   : > { %v1640_v32 = vpack.c.bf16 %v1639_v29, %v1639_v29 }
 0x424   : > { %v2165_v33 = vpop.f32.mrf.mxu0 }
 0x425   : > { %2183 = vmatmul.mubr.bf16.vlgmr.msra.gmra.mxu1 %v1640_v32 }
 0x4e5   : > { %v1746_v34 = vpop.f32.mrf.mxu1 }
 0x4e6   : > { %v1747_v36 = vadd.f32 %v1991_v0, %v1746_v34 }
 0x4e7   : > { %v2184_v37 = vpop.f32.mrf.mxu1 }
 0x4e8   : > { %1752 = vst [vmem:[%s636_s16] sm:$0xff] %v1747_v36 }
 0x4e9   : > { %v1749_v38 = vpop.f32.mrf.mxu1 }
 0x4ea   : > { %2616 = shalt.err (!%p2613_p7)
}
 0x4eb   : > { %s2617_s20 = scalar_lea.hbm %s3221_s28, 128  ;;  %s2621_s27 = scalar_lea.hbm %s3334_s15, 256 }
 0x4ec   : > { %p2618_p12 = scmp.ne.s32.totalorder %s3221_s28, %s2617_s20  ;;  %p2622_p10 = scmp.lt.s32.totalorder %s3221_s28, %s3334_s15 }
 0x4ed   : > { %p2623_p11 = scmp.lt.s32.totalorder %s2621_s27, %s2617_s20 }
 0x4ee   : > { %p2619_p0 = pnand %p2618_p12, %p3335_p8 }
 0x4ef   : > { %p2624_p13 = por %p2623_p11, %p2622_p10 }
 0x4f0   : > { %p2620_p9 = pneg %p2619_p0 }
 0x4f2   : > { %p2625_p5 = pnand %p2624_p13, %p2620_p9 }
 0x4f4   : > { %2628 = shalt.err (!%p2625_p5)
}
 0x4f5   : > { %2214 = dma.vmem_to_hbm [thread:$0]  (%p3335_p8), %s3223_s23, 128, %s3221_s28, %s1754_s22   ;;  %v2185_v39 = vpop.f32.mrf.mxu1 }
 0x4f6 PF: > { %s3336_s26 = sld [smem:[#allocation27_spill]]  ;;  %s1779_s0 = sand.u32 1, %s2675_s18  }
 0x4f7   : > { %p3338_p4 = scmp.ge.s32.totalorder %s2687_s21, 2  ;;  %s1780_s25 = scalar_lea.sflag [#allocation4], %s1779_s0 }
 0x4fc   : > { %p3337_p1 = scmp.ne.s32.totalorder %s3336_s26, 0 }
 0x4fe   : > { %p2243_p6 = pnand %p3338_p4, %p3337_p1 }
 0x500   : > { %p2244_p2 = pneg %p2243_p6 }
 0x502   : > { %2670 = dma.done.wait (%p2244_p2), %s1780_s25, 128  }
 0x503   : > { %2672 = vsyncadd (%p2244_p2), %s1780_s25, 4294967168  ;;  %s3339_s21 = sld [smem:[#allocation25_spill]]  ;;  %s3342_s18 = smov %s2679_s19 }
 0x504   : > { %s3340_s16 = sld [smem:[#allocation24_spill]] }
 0x505   : > { %s3341_s20 = sld [smem:[#allocation26_spill]] }
 0x509   : > { %p34_p3 = scmp.ge.s32.totalorder %s3339_s21, 4  }
 0x50a   : > { %s3343_s19 = smov %s3340_s16 }
 0x50b   :  { %36 = sbr.rel (!%p34_p3) target bundleno = 20 (0x14), region = 162 }
 0x510   :  { %1785 = vsyncpa [#allocation3], 1 }
 0x511   :  { %1787 = vsyncpa [#allocation3 + $0x1], 1 }
 0x512   :  { %1788 = vsyncpa [#allocation6], 1 }
 0x513   :  { %1790 = vsyncpa [#allocation6 + $0x1], 1 }
 0x514   :  { %1791 = vsyncpa [#allocation9], 1 }
 0x515   :  { %1792 = vsyncpa [#allocation12], 1 }
 0x516   :  { %1793 = vsyncpa [#allocation15], 1 }
 0x517   :  { %1794 = vsyncpa [#allocation4], 1 }
 0x518   :  { %1796 = vsyncpa [#allocation4 + $0x1], 1 }

// kernel: tpu_custom_call.1
= control target key start
LH: loop header
LB: loop body
LE: loop exit
PB: predicated region body
PF: predicated region fallthrough
CT: control target
= control target key end

     0   :  { %s3264_s0 = inlined_call_operand.hbm [shape: bf16[128,128], index: 0, kind: input, shape index: {}]   ;;  %s3265_s1 = inlined_call_operand.hbm [shape: f32[16,128], index: 1, kind: input, shape index: {}]   ;;  %s3266_s2 = inlined_call_operand.hbm [shape: bf16[128,128], index: 2, kind: input, shape index: {}]   ;;  %s3267_s3 = inlined_call_operand.vmem [shape: f32[1,128], index: 3, kind: input, shape index: {}]   ;;  %s3268_s4 = inlined_call_operand.hbm [shape: bf16[128,128], index: 4, kind: input, shape index: {}]   ;;  %s3269_s5 = inlined_call_operand.vmem [shape: f32[1,128], index: 5, kind: input, shape index: {}]   ;;  %s3270_s6 = inlined_call_operand.vmem [shape: f32[1,128], index: 6, kind: input, shape index: {}]   ;;  %s3271_s7 = inlined_call_operand.hbm [shape: bf16[128,128], index: 7, kind: input, shape index: {}]   ;;  %s3272_s8 = inlined_call_operand.vmem [shape: f32[1,128], index: 8, kind: input, shape index: {}]   ;;  %s3273_s9 = inlined_call_operand.hbm [shape: bf16[128,128], index: 9, kind: input, shape index: {}]   ;;  %s3274_s10 = inlined_call_operand.vmem [shape: f32[1,128], index: 10, kind: input, shape index: {}]   ;;  %s3275_s11 = inlined_call_operand.hbm [shape: bf16[128,128], index: 11, kind: input, shape index: {}]   ;;  %s3276_s12 = inlined_call_operand.vmem [shape: f32[1,128], index: 12, kind: input, shape index: {}]   ;;  %s3277_s13 = inlined_call_operand.hbm [shape: bf16[128,128], index: 13, kind: input, shape index: {}]   ;;  %s3278_s14 = inlined_call_operand.vmem [shape: f32[1,128], index: 14, kind: input, shape index: {}]   ;;  %s3279_s15 = inlined_call_operand.hbm [shape: f32[16,128], index: 15, kind: output, shape index: {}]  }
   0x1   :  { %3291 = sst [smem:[#allocation28_spill]] %s3264_s0 }
   0x2   :  { %3292 = sst [smem:[#allocation29_spill]] %s3266_s2 }
   0x3   :  { %3293 = sst [smem:[#allocation30_spill]] %s3268_s4 }
   0x4   :  { %3294 = sst [smem:[#allocation31_spill]] %s3271_s7 }
   0x5   :  { %3295 = sst [smem:[#allocation32_spill]] %s3273_s9 }
   0x6   :  { %3296 = sst [smem:[#allocation33_spill]] %s3275_s11 }
   0x7   :  { %3297 = sst [smem:[#allocation34_spill]] %s3277_s13 }
   0x8   :  { %3298 = sst [smem:[#allocation35_spill]] %s3278_s14 }
   0x9   :  { %3299 = sst [smem:[#allocation36_spill]] %s3279_s15 }
   0xa   :  { %20 = vsyncpa [#allocation3], 0 }
   0xb   :  { %22 = vsyncpa [#allocation3 + $0x1], 0 }
   0xc   :  { %23 = vsyncpa [#allocation6], 0 }
   0xd   :  { %25 = vsyncpa [#allocation6 + $0x1], 0 }
   0xe   :  { %26 = vsyncpa [#allocation9], 0 }
   0xf   :  { %27 = vsyncpa [#allocation12], 0 }
  0x10   :  { %28 = vsyncpa [#allocation15], 0 }
  0x11   :  { %29 = vsyncpa [#allocation4], 0 }
  0x12   :  { %31 = vsyncpa [#allocation4 + $0x1], 0  ;;  %s2783_s18 = smov 0   ;;  %s2785_s19 = smov 0  }
  0x13   :  { %s2787_s20 = smov 0   ;;  %s2789_s21 = smov 0  }
  0x14 LB: > { %3300 = sst [smem:[#allocation24_spill]] %s2683_s20  ;;  %s2689_s22 = smov [#allocation7]   ;;  %s2687_s21 = sphi %s2789_s21, %s3339_s21   ;;  %s2683_s20 = sphi %s2787_s20, %s3341_s20   ;;  %s2679_s19 = sphi %s2785_s19, %s3343_s19   ;;  %s2675_s18 = sphi %s2783_s18, %s3342_s18  }
  0x15   : > { %s405_s23 = sshll.u32 %s2689_s22, 4  ;;  %s2804_s24 = sadd.s32 4294967295, %s2687_s21   ;;  %s406_s23 = int_to_ptr.vmem [resolvable:$true] %s405_s23 }
  0x16   : > { %p1918_p0 = scmp.ge.s32.totalorder %s2687_s21, 1  ;;  %p3283_p1 = scmp.eq.s32.totalorder %s2804_s24, 0 }
  0x17   : > { %p393_p2 = scmp.lt.s32.totalorder %s2687_s21, 3  ;;  %s2690_s26 = smov [#allocation8]  }
  0x18   : > { %s421_s27 = sshll.u32 %s2690_s26, 4  ;;  %s2691_s29 = smov [#allocation11]   ;;  %s2822_s27 = int_to_ptr.vmem [resolvable:$true] %s421_s27 }
  0x19   : > { %p2809_p3 = pnand %p1918_p0, %p393_p2  ;;  %s456_s30 = sshll.u32 %s2691_s29, 4  ;;  %s2824_s30 = int_to_ptr.vmem [resolvable:$true] %s456_s30 }
  0x1a   : > { %s2402_s17 = scalar_lea.vmem %s406_s23, 1024  ;;  %p2410_p11 = scmp.lt.s32.totalorder %s406_s23, %s406_s23 }
  0x1b   : > { %s3301_s25 = scalar_select %p2809_p3, 1, 0 }
  0x1c   : > { %p2216_p5 = pneg %p2809_p3  ;;  %p2403_p8 = scmp.ne.s32.totalorder %s406_s23, %s2402_s17 }
  0x1d   : > { %p2411_p12 = scmp.lt.s32.totalorder %s2402_s17, %s2402_s17 }
  0x1e   : > { %p2818_p6 = pnand %p2216_p5, %p3283_p1 }
  0x1f   : > { %p2412_p13 = por %p2411_p12, %p2410_p11 }
  0x20   : > { %p2828_p7 = pneg %p2818_p6 }
  0x22   : > { %p2405_p9 = pnand %p2403_p8, %p2828_p7 }
  0x24   : > { %p2406_p10 = pneg %p2405_p9 }
  0x26   : > { %p2413_p0 = pnand %p2412_p13, %p2406_p10 }
  0x28   : > { %2416 = shalt.err (!%p2413_p0)
}
  0x29   : > { %s3281_s22 = smov 64   ;;  %s3282_s26 = smov 4  }
  0x2a   : > { %s3304_s2 = sld [smem:[#allocation29_spill]]  ;;  %s2428_s14 = scalar_lea.vmem %s2822_s27, 1024 }
  0x2b   : > { %p2429_p2 = scmp.ne.s32.totalorder %s2822_s27, %s2428_s14  ;;  %p2436_p9 = scmp.lt.s32.totalorder %s2822_s27, %s2822_s27 }
  0x2c   : > { %p2437_p10 = scmp.lt.s32.totalorder %s2428_s14, %s2428_s14 }
  0x2d   : > { %p2431_p5 = pnand %p2429_p2, %p2828_p7 }
  0x2e   : > { %p2438_p11 = por %p2437_p10, %p2436_p9 }
  0x2f   : > { %p2432_p8 = pneg %p2431_p5 }
  0x30   : > { %2219 = dma.hbm_to_vmem [thread:$0]  (!%p2818_p6), %s3304_s2, 1024, %s406_s23, [#allocation6], %s3281_s22, %s3281_s22, %s3282_s26  }
  0x31   : > { %p2439_p12 = pnand %p2438_p11, %p2432_p8 }
  0x33   : > { %2442 = shalt.err (!%p2439_p12)
}
  0x34   : > { %s3305_s4 = sld [smem:[#allocation30_spill]]  ;;  %s2454_s23 = scalar_lea.vmem %s2824_s30, 1024 }
  0x35   : > { %p2455_p13 = scmp.ne.s32.totalorder %s2824_s30, %s2454_s23  ;;  %p2462_p5 = scmp.lt.s32.totalorder %s2824_s30, %s2824_s30 }
  0x36   : > { %p2463_p8 = scmp.lt.s32.totalorder %s2454_s23, %s2454_s23 }
  0x37   : > { %p2457_p0 = pnand %p2455_p13, %p2828_p7 }
  0x38   : > { %p2464_p9 = por %p2463_p8, %p2462_p5 }
  0x39   : > { %p2458_p2 = pneg %p2457_p0 }
  0x3a   : > { %2222 = dma.hbm_to_vmem [thread:$0]  (!%p2818_p6), %s3305_s4, 1024, %s2822_s27, [#allocation9], %s3281_s22, %s3281_s22, %s3282_s26  }
  0x3b   : > { %p2465_p10 = pnand %p2464_p9, %p2458_p2 }
  0x3d   : > { %2468 = shalt.err (!%p2465_p10)
}
  0x3e   : > { %s3306_s9 = sld [smem:[#allocation32_spill]]  ;;  %s2694_s27 = smov [#allocation10]  }
  0x3f   : > { %s440_s17 = sshll.u32 %s2694_s27, 4  ;;  %s2695_s15 = smov [#allocation13]   ;;  %s441_s17 = int_to_ptr.vmem [resolvable:$true] %s440_s17 }
  0x40   : > { %s472_s2 = sshll.u32 %s2695_s15, 4  ;;  %s2480_s23 = scalar_lea.vmem %s441_s17, 1024  ;;  %s473_s2 = int_to_ptr.vmem [resolvable:$true] %s472_s2 }
  0x41   : > { %p2481_p11 = scmp.ne.s32.totalorder %s441_s17, %s2480_s23  ;;  %p2488_p0 = scmp.lt.s32.totalorder %s441_s17, %s441_s17 }
  0x42   : > { %p2489_p2 = scmp.lt.s32.totalorder %s2480_s23, %s2480_s23 }
  0x43   : > { %p2483_p12 = pnand %p2481_p11, %p2828_p7 }
  0x44   : > { %2228 = dma.hbm_to_vmem [thread:$0]  (!%p2818_p6), %s3306_s9, 1024, %s2824_s30, [#allocation12], %s3281_s22, %s3281_s22, %s3282_s26  }
  0x45   : > { %p2484_p13 = pneg %p2483_p12  ;;  %p2490_p5 = por %p2489_p2, %p2488_p0 }
  0x47   : > { %p2491_p8 = pnand %p2490_p5, %p2484_p13 }
  0x49   : > { %2494 = shalt.err (!%p2491_p8)
}
  0x4a   : > { %s3307_s7 = sld [smem:[#allocation31_spill]]  ;;  %s2506_s29 = scalar_lea.vmem %s473_s2, 1024 }
  0x4b   : > { %p2507_p9 = scmp.ne.s32.totalorder %s473_s2, %s2506_s29  ;;  %p2514_p12 = scmp.lt.s32.totalorder %s473_s2, %s473_s2 }
  0x4c   : > { %p2515_p0 = scmp.lt.s32.totalorder %s2506_s29, %s2506_s29 }
  0x4d   : > { %p2509_p10 = pnand %p2507_p9, %p2828_p7 }
  0x4e   : > { %p2516_p13 = por %p2515_p0, %p2514_p12 }
  0x4f   : > { %p2510_p11 = pneg %p2509_p10 }
  0x50   : > { %2225 = dma.hbm_to_vmem [thread:$0]  (!%p2818_p6), %s3307_s7, 1024, %s441_s17, [#allocation9], %s3281_s22, %s3281_s22, %s3282_s26  }
  0x51   : > { %p2517_p2 = pnand %p2516_p13, %p2510_p11 }
  0x53   : > { %2520 = shalt.err (!%p2517_p2)
}
  0x54   : > { %s3308_s11 = sld [smem:[#allocation33_spill]]  ;;  %s2696_s17 = smov [#allocation14]  }
  0x55   : > { %s488_s23 = sshll.u32 %s2696_s17, 4  ;;  %s489_s23 = int_to_ptr.vmem [resolvable:$true] %s488_s23 }
  0x56   : > { %s2532_s30 = scalar_lea.vmem %s489_s23, 1024  ;;  %p2540_p10 = scmp.lt.s32.totalorder %s489_s23, %s489_s23 }
  0x57   : > { %p2533_p5 = scmp.ne.s32.totalorder %s489_s23, %s2532_s30  ;;  %p2541_p11 = scmp.lt.s32.totalorder %s2532_s30, %s2532_s30 }
  0x59   : > { %p2535_p8 = pnand %p2533_p5, %p2828_p7  ;;  %p2542_p12 = por %p2541_p11, %p2540_p10 }
  0x5a   : > { %2231 = dma.hbm_to_vmem [thread:$0]  (!%p2818_p6), %s3308_s11, 1024, %s473_s2, [#allocation12], %s3281_s22, %s3281_s22, %s3282_s26  }
  0x5b   : > { %p2536_p9 = pneg %p2535_p8 }
  0x5d   : > { %p2543_p0 = pnand %p2542_p12, %p2536_p9 }
  0x5f   : > { %2546 = shalt.err (!%p2543_p0)
}
  0x60   : > { %s3309_s13 = sld [smem:[#allocation34_spill]]  ;;  %s1917_s28 = sadd.s32 4294967294, %s2687_s21  }
  0x61   : > { %s2904_s16 = sadd.s32 1, %s2687_s21   ;;  %s44_s27 = sadd.s32 1, %s2683_s20 }
  0x62   : > { %3310 = sst [smem:[#allocation25_spill]] %s2904_s16  ;;  %s41_s29 = ssub.s32 %s2687_s21, %s2904_s16 }
  0x63   : > { %p42_p7 = scmp.eq.s32.totalorder %s41_s29, 0  ;;  %p51_p13 = scmp.ne.s32.totalorder %s2683_s20, %s2679_s19 }
  0x64   : > { %p52_p2 = scmp.eq.s32.totalorder %s2687_s21, 0  ;;  %p57_p5 = scmp.ne.s32.totalorder %s2679_s19, %s2675_s18 }
  0x65   : > { %s2915_s15 = scalar_select %p42_p7, %s2683_s20, %s44_s27  }
  0x66   : > { %2234 = dma.hbm_to_vmem [thread:$0]  (!%p2818_p6), %s3309_s13, 1024, %s489_s23, [#allocation15], %s3281_s22, %s3281_s22, %s3282_s26  }
  0x67   : > { %3311 = sst [smem:[#allocation26_spill]] %s2915_s15  ;;  %p2917_p8 = por %p52_p2, %p51_p13 }
  0x68   : > { %p2923_p6 = por %p3283_p1, %p57_p5  ;;  %p380_p9 = scmp.eq.s32.totalorder %s2804_s24, 1 }
  0x69   : > { %p386_p10 = scmp.eq.s32.totalorder %s1917_s28, 1  ;;  %p2252_p11 = scmp.lt.s32.totalorder %s2687_s21, 2 }
  0x6a   : > { %s3313_s23 = scalar_select %p2923_p6, 1, 0 }
  0x6b   : > { %s2930_s30 = sand.u32 1, %s2683_s20   ;;  %p2932_p12 = por %p380_p9, %p51_p13 }
  0x6c   : > { %p2936_p0 = por %p386_p10, %p57_p5  ;;  %s1926_s29 = sshll.u32 %s2930_s30, 5 }
  0x6d   : > { %s3314_s14 = scalar_select %p2932_p12, 1, 0 }
  0x6e   : > { %s3315_s2 = scalar_select %p2936_p0, 1, 0 }
  0x6f   : > { %s2004_s27 = sshll.u32 %s2687_s21, 9  ;;  %s3317_s0 = sld [smem:[#allocation28_spill]] }
  0x70   : > { %3316 = sst [smem:[#allocation27_spill]] %s3315_s2  ;;  %s509_s4 = scalar_lea.vmem [#allocation2], %s1926_s29 }
  0x71   : > { %s516_s7 = sshll.u32 %s509_s4, 4  ;;  %p2951_p7 = pnand %p2252_p11, %p2917_p8  ;;  %s2947_s7 = int_to_ptr.vmem [resolvable:$true] %s516_s7 }
  0x72   : > { %s506_s15 = scalar_lea.sflag [#allocation3], %s2930_s30 }
  0x73   : > { %p2549_p2 = pneg %p2951_p7 }
  0x75   : > { %s2945_s28 = scalar_lea.hbm %s3317_s0, %s2004_s27  ;;  %s2552_s17 = scalar_lea.hbm %s3317_s0, 1024 }
  0x76   : > { %s2547_s22 = scalar_lea.hbm %s2945_s28, 512  ;;  %p2553_p8 = scmp.lt.s32.totalorder %s2945_s28, %s3317_s0 }
  0x77   : > { %p2548_p13 = scmp.ne.s32.totalorder %s2945_s28, %s2547_s22  ;;  %p2554_p10 = scmp.lt.s32.totalorder %s2552_s17, %s2547_s22 }
  0x79   : > { %p2550_p5 = pnand %p2549_p2, %p2548_p13  ;;  %p2555_p11 = por %p2554_p10, %p2553_p8 }
  0x7b   : > { %p2551_p9 = pneg %p2550_p5 }
  0x7d   : > { %p2556_p4 = pnand %p2555_p11, %p2551_p9 }
  0x7f   : > { %2559 = shalt.err (!%p2556_p4)
}
  0x80   : > { %s2560_s11 = scalar_lea.vmem %s2947_s7, 512  ;;  %s2697_s4 = smov [#allocation2]  }
  0x81   : > { %p2561_p1 = scmp.ne.s32.totalorder %s2947_s7, %s2560_s11  ;;  %s2565_s26 = sshll.u32 %s2697_s4, 4  ;;  %s2566_s26 = int_to_ptr.vmem [resolvable:$false] %s2565_s26 }
  0x82   : > { %s2567_s13 = scalar_lea.vmem %s2566_s26, 1024  ;;  %p2568_p0 = scmp.lt.s32.totalorder %s2947_s7, %s2566_s26 }
  0x83   : > { %p2563_p13 = pnand %p2561_p1, %p2549_p2  ;;  %p2569_p12 = scmp.lt.s32.totalorder %s2567_s13, %s2560_s11 }
  0x85   : > { %p2564_p5 = pneg %p2563_p13  ;;  %p2570_p6 = por %p2569_p12, %p2568_p0 }
  0x87   : > { %p2571_p8 = pnand %p2570_p6, %p2564_p5 }
  0x89   : > { %2574 = shalt.err (!%p2571_p8)
}
  0x8a   : > { %s3319_s22 = smov 4   ;;  %s3320_s17 = smov 64  }
  0x8b   : > { %2238 = dma.hbm_to_vmem [thread:$0]  (!%p2951_p7), %s2945_s28, 512, %s2947_s7, %s506_s15, %s3320_s17, %s3320_s17, %s3319_s22  }
  0x8c   : > { %s1930_s29 = sshll.u32 %s2687_s21, 7  ;;  %s3321_s4 = sshll.u32 %s2930_s30, 3 }
  0x8d   : > { %s2991_s13 = scalar_lea.hbm %s3265_s1, %s1930_s29  ;;  %s530_s26 = scalar_lea.vmem [#allocation5], %s3321_s4 }
  0x8e   : > { %s537_s0 = sshll.u32 %s530_s26, 4  ;;  %s3322_s20 = sand.u32 1, %s2687_s21   ;;  %s538_s0 = int_to_ptr.vmem [resolvable:$true] %s537_s0 }
  0x8f   : > { %s527_s16 = scalar_lea.sflag [#allocation6], %s3322_s20  ;;  %s2575_s2 = scalar_lea.hbm %s2991_s13, 128 }
  0x90   : > { %p2576_p1 = scmp.ne.s32.totalorder %s2991_s13, %s2575_s2  ;;  %s2580_s28 = scalar_lea.hbm %s3265_s1, 256 }
  0x91   : > { %p2581_p12 = scmp.lt.s32.totalorder %s2991_s13, %s3265_s1  ;;  %p2582_p0 = scmp.lt.s32.totalorder %s2580_s28, %s2575_s2 }
  0x92   : > { %p2578_p4 = pnand %p2576_p1, %p2549_p2 }
  0x93   : > { %p2583_p9 = por %p2582_p0, %p2581_p12 }
  0x94   : > { %p2579_p6 = pneg %p2578_p4 }
  0x96   : > { %p2584_p10 = pnand %p2583_p9, %p2579_p6 }
  0x98   : > { %2587 = shalt.err (!%p2584_p10)
}
  0x99   : > { %s2588_s17 = scalar_lea.vmem %s538_s0, 128  ;;  %s2698_s20 = smov [#allocation5]  }
  0x9a   : > { %p2589_p11 = scmp.ne.s32.totalorder %s538_s0, %s2588_s17  ;;  %s2593_s29 = sshll.u32 %s2698_s20, 4  ;;  %s2594_s29 = int_to_ptr.vmem [resolvable:$false] %s2593_s29 }
  0x9b   : > { %s2595_s27 = scalar_lea.vmem %s2594_s29, 256  ;;  %p2596_p8 = scmp.lt.s32.totalorder %s538_s0, %s2594_s29 }
  0x9c   : > { %p2591_p13 = pnand %p2589_p11, %p2549_p2  ;;  %p2597_p1 = scmp.lt.s32.totalorder %s2595_s27, %s2588_s17 }
  0x9e   : > { %p2592_p5 = pneg %p2591_p13  ;;  %p2598_p4 = por %p2597_p1, %p2596_p8 }
  0xa0   : > { %p2599_p3 = pnand %p2598_p4, %p2592_p5 }
  0xa2   : > { %2602 = shalt.err (!%p2599_p3)
}
  0xa3   : > { %2241 = dma.hbm_to_vmem [thread:$0]  (!%p2951_p7), %s2991_s13, 128, %s538_s0, %s527_s16  }
  0xa4   : > { %p3323_p6 = scmp.ne.s32.totalorder %s3301_s25, 0 }
  0xa5   : > { %s3018_s2 = sand.u32 (!%p3323_p6), 1, %s2679_s19   ;;  %p3324_p2 = scmp.ne.s32.totalorder (!%p3323_p6), %s3313_s23, 0 }
  0xa6   : > { %546 = sbr.rel (%p3323_p6) target bundleno = 1270 (0x4f6), region = 80  ;;  %s1932_s11 = sshll.u32 (!%p3323_p6), %s3018_s2, 5 }
  0xa7   : > { %s549_s4 = scalar_lea.sflag (!%p3323_p6), [#allocation3], %s3018_s2  ;;  %s3022_s26 = scalar_lea.vmem (!%p3323_p6), [#allocation2], %s1932_s11 }
  0xab   : > { %2646 = dma.done.wait (%p3324_p2), %s549_s4, 512  }
  0xac   : > { %2648 = vsyncadd (%p3324_p2), %s549_s4, 4294966784  ;;  %s557_s0 = sand.u32 1, %s2804_s24   ;;  %s1933_s9 = sshll.u32 %s3018_s2, 3 }
  0xad   : > { %s558_s25 = scalar_lea.sflag [#allocation6], %s557_s0  ;;  %s3032_s16 = scalar_lea.vmem [#allocation5], %s1933_s9 }
  0xae   : > { %2650 = dma.done.wait (%p3324_p2), %s558_s25, 128  }
  0xaf   : > { %2652 = vsyncadd (%p3324_p2), %s558_s25, 4294967168  ;;  %p3325_p3 = scmp.eq.s32.totalorder %s2804_s24, 0 }
  0xb1   : > { %2654 = dma.done.wait (%p3325_p3), [#allocation6], 1024   ;;  %p3326_p7 = pmov %p3325_p3 }
  0xb2   : > { %p3327_p12 = pmov %p3325_p3 }
  0xb3   : > { %2656 = vsyncadd (%p3326_p7), [#allocation6], 4294966272 }
  0xb4   : > { %2658 = dma.done.wait (%p3327_p12), [#allocation9], 2048   ;;  %p3328_p0 = pmov %p3325_p3 }
  0xb6   : > { %2660 = vsyncadd (%p3328_p0), [#allocation9], 4294965248  ;;  %p3329_p9 = pmov %p3328_p0 }
  0xb7   : > { %p3330_p10 = pmov %p3328_p0 }
  0xb8   : > { %2662 = dma.done.wait (%p3329_p9), [#allocation12], 2048  }
  0xb9   : > { %2664 = vsyncadd (%p3330_p10), [#allocation12], 4294965248  ;;  %p3331_p11 = pmov %p3328_p0 }
  0xba   : > { %p3332_p13 = pmov %p3328_p0 }
  0xbb   : > { %2666 = dma.done.wait (%p3331_p11), [#allocation15], 1024  }
  0xbc   : > { %2668 = vsyncadd (%p3332_p13), [#allocation15], 4294966272  ;;  %v2699_v0 = vmov 0.0   ;;  %vm2700_vm0 = vmmov 0   ;;  %v2303_v1 = vld [vmem:[#allocation7 + $0x38] sm:$0xff]   ;;  %v2305_v3 = vld [vmem:[#allocation7 + $0x30] sm:$0xff]   ;;  %v942_v25 = vlaneseq }
  0xbd   : > { %2086 = vmatprep.subr.bf16.mxu1 %v2699_v0  ;;  %2102 = vmatprep.mubr.msk.bf16.mxu1 %vm2700_vm0, %v2699_v0  ;;  %v2304_v2 = vld [vmem:[#allocation8 + $0x38] sm:$0xff]   ;;  %v2306_v4 = vld [vmem:[#allocation8 + $0x30] sm:$0xff]   ;;  %v2307_v5 = vld [vmem:[#allocation7 + $0x28] sm:$0xff]   ;;  %v2701_v23 = vmov 1966171168   ;;  %vm1421_vm2 = vcmask 1041409  }
  0xbe   : > { %2062 = vmatprep.subr.bf16.mxu0 %v2303_v1  ;;  %2087 = vmatpush3.bf16.msra.mxu1 %v2304_v2  ;;  %v2308_v6 = vld [vmem:[#allocation8 + $0x28] sm:$0xff]   ;;  %v2309_v7 = vld [vmem:[#allocation7 + $0x20] sm:$0xff]   ;;  %v2311_v9 = vld [vmem:[#allocation7 + $0x18] sm:$0xff]   ;;  %v940_v24 = vunpack.c.l.s4 %v2701_v23  ;;  %v3093_v28 = vshrl.u32 %v942_v25, 7  ;;  %vm1423_vm3 = vcmask 1042434   ;;  %vm1425_vm4 = vcmask 1043459  }
  0xbf   : > { %2063 = vmatpush3.bf16.msra.mxu0 %v2303_v1  ;;  %2088 = vmatprep.subr.bf16.mxu1 %v2699_v0  ;;  %v2310_v8 = vld [vmem:[#allocation8 + $0x20] sm:$0xff]   ;;  %v2312_v10 = vld [vmem:[#allocation8 + $0x18] sm:$0xff]   ;;  %v2313_v11 = vld [vmem:[#allocation7 + $0x10] sm:$0xff]   ;;  %vm1427_vm5 = vcmask 1044484   ;;  %vm1429_vm6 = vcmask 1045509   ;;  %vm1431_vm7 = vcmask 1046534  }
  0xc0   : > { %2064 = vmatprep.subr.bf16.mxu0 %v2305_v3  ;;  %v3062_v12 = vld [vmem:[%s3022_s26] sm:$0xff]   ;;  %v2315_v14 = vld [vmem:[#allocation7 + $0x8] sm:$0xff]   ;;  %v2317_v16 = vld [vmem:[#allocation7] sm:$0xff]   ;;  %v941_v27 = vunpack.c.0.s8 %v940_v24  ;;  %v989_v45 = vsub.s32 0, %v3093_v28  ;;  %vm1053_vm1 = vcmp.lt.s32.totalorder %v3093_v28, 6  ;;  %vm1433_vm8 = vcmask 1047559  }
  0xc1   : > { %v2314_v13 = vld [vmem:[#allocation8 + $0x10] sm:$0xff]   ;;  %v2316_v15 = vld [vmem:[#allocation8 + $0x8] sm:$0xff]   ;;  %2078 = vmatprep.mubr.bf16.mxu0 %v3062_v12  ;;  %v2318_v17 = vld [vmem:[#allocation8] sm:$0xff]   ;;  %s3333_s0 = sld [smem:[#allocation35_spill]]  ;;  %s2001_s25 = sshll.u32 %s2804_s24, 7 }
  0xc2   : > { %2089 = vmatpush3.bf16.msra.mxu1 %v2306_v4  ;;  %v639_v18 = vld [vmem:[%s3032_s16] sm:$0xff]  ;;  %v3072_v20 = vld [vmem:[%s3022_s26 + $0x10] sm:$0xff]   ;;  %v3080_v22 = vld [vmem:[%s3022_s26 + $0x18] sm:$0xff]   ;;  %v944_v36 = vsub.s32 %v941_v27, %v3093_v28  ;;  %s636_s16 = scalar_lea.vmem [#allocation16], %s1933_s9  ;;  %s3334_s15 = sld [smem:[#allocation36_spill]] }
  0xc3   : > { %2065 = vmatpush3.bf16.msra.mxu0 %v2305_v3  ;;  %2090 = vmatprep.subr.bf16.mxu1 %v2699_v0  ;;  %v3069_v19 = vld [vmem:[%s3022_s26 + $0x8] sm:$0xff]   ;;  %v3075_v21 = vpack.c.bf16 %v639_v18, %v639_v18  ;;  %v1954_v26 = vld [vmem:[%s3269_s5] ss:$0 sm:$0xff]  ;;  %s1767_s23 = sshll.u32 %s636_s16, 4  ;;  %s1754_s22 = scalar_lea.sflag [#allocation4], %s3018_s2  ;;  %s3223_s23 = int_to_ptr.vmem [resolvable:$true] %s1767_s23 }
  0xc4   : > { %2066 = vmatprep.subr.bf16.mxu0 %v2307_v5  ;;  %v1963_v32 = vld [vmem:[%s3270_s6] ss:$0 sm:$0xff]  ;;  %s2603_s24 = scalar_lea.vmem %s3223_s23, 128  ;;  %p3335_p8 = scmp.ne.s32.totalorder %s3314_s14, 0 }
  0xc5   : > { %v1941_v40 = vld [vmem:[%s3267_s3] ss:$0 sm:$0xff]  ;;  %p2604_p5 = scmp.ne.s32.totalorder %s3223_s23, %s2603_s24  ;;  %s2702_s9 = smov [#allocation16]  }
  0xc6   : > { %2091 = vmatpush3.bf16.msra.mxu1 %v2308_v6  ;;  %s2607_s30 = sshll.u32 %s2702_s9, 4  ;;  %s2608_s30 = int_to_ptr.vmem [resolvable:$false] %s2607_s30 }
  0xc7   : > { %2067 = vmatpush3.bf16.msra.mxu0 %v2307_v5  ;;  %2092 = vmatprep.subr.bf16.mxu1 %v2699_v0  ;;  %p2605_p1 = pnand %p2604_p5, %p3335_p8  ;;  %s2609_s17 = scalar_lea.vmem %s2608_s30, 256 }
  0xc8   : > { %2068 = vmatprep.subr.bf16.mxu0 %v2309_v7  ;;  %s3221_s28 = scalar_lea.hbm %s3334_s15, %s2001_s25  ;;  %p2610_p6 = scmp.lt.s32.totalorder %s3223_s23, %s2608_s30 }
  0xc9   : > { %p2606_p4 = pneg %p2605_p1  ;;  %p2611_p2 = scmp.lt.s32.totalorder %s2609_s17, %s2603_s24 }
  0xca   : > { %2093 = vmatpush3.bf16.msra.mxu1 %v2310_v8 }
  0xcb   : > { %2069 = vmatpush3.bf16.msra.mxu0 %v2309_v7  ;;  %2094 = vmatprep.subr.bf16.mxu1 %v2699_v0  ;;  %p2612_p3 = por %p2611_p2, %p2610_p6 }
  0xcc   : > { %2070 = vmatprep.subr.bf16.mxu0 %v2311_v9 }
  0xcd   : > { %p2613_p7 = pnand %p2612_p3, %p2606_p4 }
  0xce   : > { %2095 = vmatpush3.bf16.msra.mxu1 %v2312_v10 }
  0xcf   : > { %2071 = vmatpush3.bf16.msra.mxu0 %v2311_v9  ;;  %2096 = vmatprep.subr.bf16.mxu1 %v2699_v0 }
  0xd0   : > { %2072 = vmatprep.subr.bf16.mxu0 %v2313_v11 }
  0xd2   : > { %2097 = vmatpush3.bf16.msra.mxu1 %v2314_v13 }
  0xd3   : > { %2073 = vmatpush3.bf16.msra.mxu0 %v2313_v11  ;;  %2098 = vmatprep.subr.bf16.mxu1 %v2699_v0 }
  0xd4   : > { %2074 = vmatprep.subr.bf16.mxu0 %v2315_v14 }
  0xd6   : > { %2099 = vmatpush3.bf16.msra.mxu1 %v2316_v15 }
  0xd7   : > { %2075 = vmatpush3.bf16.msra.mxu0 %v2315_v14  ;;  %2100 = vmatprep.subr.bf16.mxu1 %v2699_v0 }
  0xd8   : > { %2076 = vmatprep.subr.bf16.mxu0 %v2317_v16 }
  0xda   : > { %2101 = vmatpush3.bf16.msra.mxu1 %v2318_v17 }
  0xdb   : > { %2077 = vmatpush3.bf16.msra.mxu0 %v2317_v16  ;;  %2126 = vmatprep.subr.bf16.mxu1 %v2699_v0 }
  0xdc   : > { %2106 = vmatprep.subr.bf16.mxu0 %v2699_v0 }
  0xdd   : > { %2103 = vmatmul.mubr.bf16.vlgmr.msra.gmra.mxu1 %v3075_v21 }
  0xde   : > { %2079 = vmatmul.mubr.bf16.vlgmr.msra.gmra.mxu0 %v3069_v19  ;;  %2142 = vmatprep.mubr.msk.bf16.mxu1 %vm2700_vm0, %v2699_v0 }
  0xdf   : > { %2082 = vmatprep.mubr.bf16.mxu0 %v3072_v20 }
  0xe6   : > { %2083 = vmatmul.mubr.bf16.gmra.mxu0 %v3080_v22 }
  0xe7   : > { %2122 = vmatprep.mubr.msk.bf16.mxu0 %vm2700_vm0, %v2699_v0 }
 0x19d   : > { %v922_v29 = vpop.f32.mrf.mxu1 }
 0x19e   : > { %v2080_v30 = vpop.f32.mrf.mxu0  ;;  %v923_v31 = vadd.f32 %v1954_v26, %v922_v29 }
 0x19f   : > { %v2104_v33 = vpop.f32.mrf.mxu1  ;;  %v787_v50 = vadd.f32 %v2080_v30, %v1941_v40 }
 0x1a0   : > { %v778_v34 = vpop.f32.mrf.mxu0  ;;  %v928_v35 = vmax.f32 %v923_v31, 0.0 }
 0x1a1   : > { %v925_v37 = vpop.f32.mrf.mxu1  ;;  %v779_v46 = vadd.f32 %v1941_v40, %v778_v34  ;;  %v811_v60 = vmax.f32 %v787_v50, 0.0  ;;  %v2336_v50 = vld [vmem:[#allocation10] sm:$0xff]  }
 0x1a2   : > { %v2081_v38 = vpop.f32.mrf.mxu0  ;;  %v936_v39 = vmul.f32 %v1963_v32, %v928_v35  ;;  %v2325_v37 = vld [vmem:[#allocation11 + $0x38] sm:$0xff]  }
 0x1a3   : > { %v2105_v41 = vpop.f32.mrf.mxu1  ;;  %v809_v55 = vmax.f32 %v779_v46, 0.0  ;;  %v790_v61 = vadd.f32 %v2081_v38, %v1941_v40  ;;  %v2324_v38 = vld [vmem:[#allocation10 + $0x30] sm:$0xff]   ;;  %2127 = vmatpush3.bf16.msra.mxu1 %v2325_v37 }
 0x1a4   : > { %v781_v42 = vpop.f32.mrf.mxu0  ;;  %v938_v43 = vcombine.high %v936_v39, %v936_v39  ;;  %v945_v44 = vrot.slane %v936_v39, %v944_v36  ;;  %v2327_v39 = vld [vmem:[#allocation11 + $0x30] sm:$0xff]   ;;  %2128 = vmatprep.subr.bf16.mxu1 %v2699_v0  ;;  %v2329_v41 = vld [vmem:[#allocation11 + $0x28] sm:$0xff]  }
 0x1a5   : > { %v782_v53 = vadd.f32 %v1941_v40, %v781_v42  ;;  %v812_v11 = vmax.f32 %v790_v61, 0.0  ;;  %v2328_v42 = vld [vmem:[#allocation10 + $0x20] sm:$0xff]   ;;  %v2332_v46 = vld [vmem:[#allocation10 + $0x10] sm:$0xff]  }
 0x1a6   : > { %v2084_v47 = vpop.f32.mrf.mxu0  ;;  %v952_v48 = vrot.slane %v938_v43, %v944_v36  ;;  %v953_v49 = vcombine.high %v945_v44, %v945_v44  ;;  %v961_v52 = vrot.slane %v945_v44, %v944_v36  ;;  %v2331_v43 = vld [vmem:[#allocation11 + $0x20] sm:$0xff]   ;;  %v2330_v44 = vld [vmem:[#allocation10 + $0x18] sm:$0xff]  }
 0x1a7   : > { %v810_v6 = vmax.f32 %v782_v53, 0.0  ;;  %v803_v13 = vadd.f32 %v2084_v47, %v1941_v40  ;;  %2129 = vmatpush3.bf16.msra.mxu1 %v2327_v39  ;;  %v2335_v47 = vld [vmem:[#allocation11 + $0x10] sm:$0xff]  }
 0x1a8   : > { %v794_v51 = vpop.f32.mrf.mxu0  ;;  %v975_v54 = vrot.slane %v953_v49, %v944_v36  ;;  %v990_v57 = vrot.slane %v961_v52, %v989_v45  ;;  %v983_v58 = vcombine.high %v961_v52, %v961_v52  ;;  %v954_v59 = vcombine.high %v952_v48, %v952_v48  ;;  %2130 = vmatprep.subr.bf16.mxu1 %v2699_v0  ;;  %v2337_v49 = vld [vmem:[#allocation11 + $0x8] sm:$0xff]   ;;  %v2339_v52 = vld [vmem:[#allocation13 + $0x38] sm:$0xff]   ;;  %v2340_v53 = vld [vmem:[#allocation13 + $0x30] sm:$0xff]  }
 0x1a9   : > { %v795_v62 = vadd.f32 %v1941_v40, %v794_v51  ;;  %v968_v5 = vrot.slane %v952_v48, %v944_v36  ;;  %v815_v26 = vmax.f32 %v803_v13, 0.0  ;;  %v2334_v48 = vld [vmem:[#allocation10 + $0x8] sm:$0xff]   ;;  %v2338_v51 = vld [vmem:[#allocation11] sm:$0xff]  }
 0x1aa   : > { %v2085_v56 = vpop.f32.mrf.mxu0  ;;  %v985_v63 = vcombine.high %v975_v54, %v975_v54  ;;  %v1027_v2 = vmul.f32 %v990_v57, %v809_v55  ;;  %v998_v3 = vrot.slane %v983_v58, %v989_v45  ;;  %v994_v4 = vrot.slane %v975_v54, %v989_v45  ;;  %v2341_v54 = vld [vmem:[#allocation13 + $0x28] sm:$0xff]   ;;  %v2342_v55 = vld [vmem:[#allocation13 + $0x20] sm:$0xff]  }
 0x1ab   : > { %v982_v10 = vrot.slane %v954_v59, %v944_v36  ;;  %v813_v14 = vmax.f32 %v795_v62, 0.0  ;;  %v1006_v16 = vrot.slane %v968_v5, %v989_v45  ;;  %v984_v17 = vcombine.high %v968_v5, %v968_v5  ;;  %v2323_v36 = vld [vmem:[#allocation10 + $0x38] sm:$0xff]   ;;  %2131 = vmatpush3.bf16.msra.mxu1 %v2329_v41 }
 0x1ac   : > { %v797_v1 = vpop.f32.mrf.mxu0  ;;  %1035 = vadd.xlane.f32.xlu0 %v1027_v2  ;;  %v1029_v8 = vmul.f32 %v998_v3, %v811_v60  ;;  %v1002_v9 = vrot.slane %v985_v63, %v989_v45  ;;  %v1028_v15 = vmul.f32 %v994_v4, %v810_v6  ;;  %v806_v18 = vadd.f32 %v2085_v56, %v1941_v40 }
 0x1ad   : > { %v798_v7 = vadd.f32 %v1941_v40, %v797_v1  ;;  %v986_v25 = vcombine.high %v982_v10, %v982_v10  ;;  %v1031_v27 = vmul.f32 %v1006_v16, %v813_v14  ;;  %v1010_v29 = vrot.slane %v982_v10, %v989_v45  ;;  %2107 = vmatpush3.bf16.msra.mxu0 %v2323_v36  ;;  %v2326_v40 = vld [vmem:[#allocation10 + $0x28] sm:$0xff]  }
 0x1ae   : > { %1039 = vadd.xlane.f32.xlu1 %v1029_v8  ;;  %v1030_v24 = vmul.f32 %v1002_v9, %v812_v11  ;;  %v1014_v30 = vrot.slane %v984_v17, %v989_v45  ;;  %v816_v31 = vmax.f32 %v806_v18, 0.0  ;;  %2108 = vmatprep.subr.bf16.mxu0 %v2699_v0 }
 0x1af   : > { %v814_v23 = vmax.f32 %v798_v7, 0.0  ;;  %v1018_v33 = vrot.slane %v986_v25, %v989_v45  ;;  %2132 = vmatprep.subr.bf16.mxu1 %v2699_v0  ;;  %v2333_v45 = vld [vmem:[#allocation11 + $0x18] sm:$0xff]  }
 0x1b0   : > { %1037 = vadd.xlane.f32.xlu0 %v1028_v15  ;;  %v1033_v34 = vmul.f32 %v1014_v30, %v815_v26  ;;  %2133 = vmatpush3.bf16.msra.mxu1 %v2331_v43 }
 0x1b1   : > { %v1032_v32 = vmul.f32 %v1010_v29, %v814_v23  ;;  %v1034_v35 = vmul.f32 %v1018_v33, %v816_v31  ;;  %2109 = vmatpush3.bf16.msra.mxu0 %v2324_v38  ;;  %2134 = vmatprep.subr.bf16.mxu1 %v2699_v0 }
 0x1b2   : > { %1041 = vadd.xlane.f32.xlu1 %v1030_v24  ;;  %2110 = vmatprep.subr.bf16.mxu0 %v2699_v0 }
 0x1b4   : > { %1043 = vadd.xlane.f32.xlu0 %v1031_v27  ;;  %2135 = vmatpush3.bf16.msra.mxu1 %v2333_v45 }
 0x1b5   : > { %2111 = vmatpush3.bf16.msra.mxu0 %v2326_v40  ;;  %2136 = vmatprep.subr.bf16.mxu1 %v2699_v0 }
 0x1b6   : > { %1045 = vadd.xlane.f32.xlu1 %v1032_v32  ;;  %2112 = vmatprep.subr.bf16.mxu0 %v2699_v0 }
 0x1b8   : > { %1047 = vadd.xlane.f32.xlu0 %v1033_v34  ;;  %2137 = vmatpush3.bf16.msra.mxu1 %v2335_v47 }
 0x1b9   : > { %2113 = vmatpush3.bf16.msra.mxu0 %v2328_v42  ;;  %2138 = vmatprep.subr.bf16.mxu1 %v2699_v0 }
 0x1ba   : > { %1049 = vadd.xlane.f32.xlu1 %v1034_v35  ;;  %2114 = vmatprep.subr.bf16.mxu0 %v2699_v0 }
 0x1bc   : > { %2139 = vmatpush3.bf16.msra.mxu1 %v2337_v49 }
 0x1bd   : > { %2115 = vmatpush3.bf16.msra.mxu0 %v2330_v44  ;;  %2140 = vmatprep.subr.bf16.mxu1 %v2699_v0 }
 0x1be   : > { %2116 = vmatprep.subr.bf16.mxu0 %v2699_v0 }
 0x1c0   : > { %2141 = vmatpush3.bf16.msra.mxu1 %v2338_v51 }
 0x1c1   : > { %2117 = vmatpush3.bf16.msra.mxu0 %v2332_v46  ;;  %2166 = vmatprep.subr.bf16.mxu1 %v2699_v0 }
 0x1c2   : > { %2118 = vmatprep.subr.bf16.mxu0 %v2699_v0 }
 0x1c5   : > { %2119 = vmatpush3.bf16.msra.mxu0 %v2334_v48 }
 0x1c6   : > { %2120 = vmatprep.subr.bf16.mxu0 %v2699_v0 }
 0x1c9   : > { %2121 = vmatpush3.bf16.msra.mxu0 %v2336_v50 }
 0x1ca   : > { %2146 = vmatprep.subr.bf16.mxu0 %v2699_v0 }
 0x1cc   : > { %2123 = vmatmul.mubr.bf16.vlgmr.msra.gmra.mxu0 %v3075_v21 }
 0x1cd   : > { %2162 = vmatprep.mubr.msk.bf16.mxu0 %vm2700_vm0, %v2699_v0  ;;  %2147 = vmatpush3.bf16.msra.mxu0 %v2339_v52 }
 0x1ce   : > { %2148 = vmatprep.subr.bf16.mxu0 %v2699_v0 }
 0x1d1   : > { %2149 = vmatpush3.bf16.msra.mxu0 %v2340_v53 }
 0x1d2   : > { %2150 = vmatprep.subr.bf16.mxu0 %v2699_v0 }
 0x1d5   : > { %2151 = vmatpush3.bf16.msra.mxu0 %v2341_v54 }
 0x1d6   : > { %2152 = vmatprep.subr.bf16.mxu0 %v2699_v0 }
 0x1d9   : > { %2153 = vmatpush3.bf16.msra.mxu0 %v2342_v55 }
 0x1da   : > { %2154 = vmatprep.subr.bf16.mxu0 %v2699_v0 }
 0x235   : > { %v1036_v21 = vpop.xlane.xlu0 %1035 }
 0x236   : > { %v1054_v56 = vsel %vm1053_vm1, %v1036_v21, -inf }
 0x237   : > { %v1062_v57 = vrot.slane %v1054_v56, 4  ;;  %v1040_v58 = vpop.xlane.xlu1 %1039 }
 0x238   : > { %v1056_v59 = vsel %vm1053_vm1, %v1040_v58, -inf }
 0x239   : > { %v1063_v60 = vmax.f32 %v1054_v56, %v1062_v57  ;;  %v1074_v61 = vrot.slane %v1056_v59, 4  ;;  %v1038_v62 = vpop.xlane.xlu0 %1037 }
 0x23a   : > { %v1055_v63 = vsel %vm1053_vm1, %v1038_v62, -inf }
 0x23b   : > { %v1064_v1 = vrot.slane %v1063_v60, 2  ;;  %v1075_v2 = vmax.f32 %v1056_v59, %v1074_v61  ;;  %v1068_v3 = vrot.slane %v1055_v63, 4  ;;  %v1042_v4 = vpop.xlane.xlu1 %1041 }
 0x23c   : > { %v1057_v5 = vsel %vm1053_vm1, %v1042_v4, -inf }
 0x23d   : > { %v1065_v6 = vmax.f32 %v1063_v60, %v1064_v1  ;;  %v1076_v7 = vrot.slane %v1075_v2, 2  ;;  %v1069_v8 = vmax.f32 %v1055_v63, %v1068_v3  ;;  %v1080_v9 = vrot.slane %v1057_v5, 4  ;;  %v1044_v10 = vpop.xlane.xlu0 %1043 }
 0x23e   : > { %v1058_v11 = vsel %vm1053_vm1, %v1044_v10, -inf }
 0x23f   : > { %v1066_v13 = vrot.slane %v1065_v6, 1  ;;  %v1077_v14 = vmax.f32 %v1075_v2, %v1076_v7  ;;  %v1070_v15 = vrot.slane %v1069_v8, 2  ;;  %v1081_v16 = vmax.f32 %v1057_v5, %v1080_v9  ;;  %v1046_v17 = vpop.xlane.xlu1 %1045 }
 0x240   : > { %v1086_v18 = vrot.slane %v1058_v11, 4  ;;  %v1059_v23 = vsel %vm1053_vm1, %v1046_v17, -inf }
 0x241   : > { %v1067_v24 = vmax.f32 %v1065_v6, %v1066_v13  ;;  %v1078_v25 = vrot.slane %v1077_v14, 1  ;;  %v1071_v26 = vmax.f32 %v1069_v8, %v1070_v15  ;;  %v1082_v27 = vrot.slane %v1081_v16, 2  ;;  %v1048_v29 = vpop.xlane.xlu0 %1047  ;;  %v2343_v8 = vld [vmem:[#allocation13 + $0x18] sm:$0xff]   ;;  %v2344_v13 = vld [vmem:[#allocation13 + $0x10] sm:$0xff]  }
 0x242   : > { %v1087_v30 = vmax.f32 %v1058_v11, %v1086_v18  ;;  %v1092_v31 = vrot.slane %v1059_v23, 4  ;;  %v1060_v32 = vsel %vm1053_vm1, %v1048_v29, -inf  ;;  %2155 = vmatpush3.bf16.msra.mxu0 %v2343_v8 }
 0x243   : > { %v1110_v33 = vsub.f32 %v1054_v56, %v1067_v24  ;;  %v1079_v34 = vmax.f32 %v1077_v14, %v1078_v25  ;;  %v1072_v35 = vrot.slane %v1071_v26, 1  ;;  %v1083_v36 = vmax.f32 %v1081_v16, %v1082_v27  ;;  %v1050_v37 = vpop.xlane.xlu1 %1049  ;;  %2156 = vmatprep.subr.bf16.mxu0 %v2699_v0 }
 0x244   : > { %v1088_v38 = vrot.slane %v1087_v30, 2  ;;  %v1093_v39 = vmax.f32 %v1059_v23, %v1092_v31  ;;  %v1098_v40 = vrot.slane %v1060_v32, 4  ;;  %v1061_v41 = vsel %vm1053_vm1, %v1050_v37, -inf }
 0x245   : > { %v1118_v42 = vmul.f32 1.442695, %v1110_v33  ;;  %v1112_v43 = vsub.f32 %v1056_v59, %v1079_v34  ;;  %v1073_v44 = vmax.f32 %v1071_v26, %v1072_v35  ;;  %v1084_v45 = vrot.slane %v1083_v36, 1 }
 0x246   : > { %v1089_v46 = vmax.f32 %v1087_v30, %v1088_v38  ;;  %v1094_v47 = vrot.slane %v1093_v39, 2  ;;  %v1099_v48 = vmax.f32 %v1060_v32, %v1098_v40  ;;  %v1104_v49 = vrot.slane %v1061_v41, 4  ;;  %2157 = vmatpush3.bf16.msra.mxu0 %v2344_v13 }
 0x247   : > { %2359 = vpow2.f32 %v1118_v42  ;;  %v1122_v50 = vmul.f32 1.442695, %v1112_v43  ;;  %v1111_v51 = vsub.f32 %v1055_v63, %v1073_v44  ;;  %v1085_v52 = vmax.f32 %v1083_v36, %v1084_v45  ;;  %2158 = vmatprep.subr.bf16.mxu0 %v2699_v0 }
 0x248   : > { %v1090_v53 = vrot.slane %v1089_v46, 1  ;;  %v1095_v54 = vmax.f32 %v1093_v39, %v1094_v47  ;;  %v1100_v55 = vrot.slane %v1099_v48, 2  ;;  %v1105_v21 = vmax.f32 %v1061_v41, %v1104_v49 }
 0x249   : > { %2361 = vpow2.f32 %v1122_v50  ;;  %v1120_v56 = vmul.f32 1.442695, %v1111_v51  ;;  %v1113_v28 = vsub.f32 %v1057_v5, %v1085_v52  ;;  %v1198_v13 = vunpack.c.l.bf16 %v3062_v12 }
 0x24a   : > { %v1091_v57 = vmax.f32 %v1089_v46, %v1090_v53  ;;  %v1096_v58 = vrot.slane %v1095_v54, 1  ;;  %v1101_v59 = vmax.f32 %v1099_v48, %v1100_v55  ;;  %v1106_v60 = vrot.slane %v1105_v21, 2 }
 0x24b   : > { %2363 = vpow2.f32 %v1120_v56  ;;  %v1124_v61 = vmul.f32 1.442695, %v1113_v28 }
 0x24c   : > { %v1114_v62 = vsub.f32 %v1058_v11, %v1091_v57  ;;  %v1097_v1 = vmax.f32 %v1095_v54, %v1096_v58  ;;  %v1102_v2 = vrot.slane %v1101_v59, 1  ;;  %v1107_v3 = vmax.f32 %v1105_v21, %v1106_v60 }
 0x24d   : > { %2365 = vpow2.f32 %v1124_v61 }
 0x24e   : > { %v1126_v63 = vmul.f32 1.442695, %v1114_v62  ;;  %v1115_v4 = vsub.f32 %v1059_v23, %v1097_v1  ;;  %v1103_v6 = vmax.f32 %v1101_v59, %v1102_v2  ;;  %v1108_v7 = vrot.slane %v1107_v3, 1 }
 0x250   : > { %2367 = vpow2.f32 %v1126_v63  ;;  %v1128_v9 = vmul.f32 1.442695, %v1115_v4  ;;  %v1116_v10 = vsub.f32 %v1060_v32, %v1103_v6  ;;  %v1109_v5 = vmax.f32 %v1107_v3, %v1108_v7 }
 0x252   : > { %2369 = vpow2.f32 %v1128_v9  ;;  %v1130_v14 = vmul.f32 1.442695, %v1116_v10  ;;  %v1117_v11 = vsub.f32 %v1061_v41, %v1109_v5 }
 0x254   : > { %v3144_v15 = vpop.eup %2359  ;;  %2371 = vpow2.f32 %v1130_v14  ;;  %v1132_v16 = vmul.f32 1.442695, %v1117_v11 }
 0x255   : > { %v1134_v17 = vrot.slane %v3144_v15, 4 }
 0x256   : > { %v3148_v18 = vpop.eup %2361  ;;  %2373 = vpow2.f32 %v1132_v16  ;;  %v1200_v16 = vunpack.c.l.bf16 %v3069_v19 }
 0x257   : > { %v1135_v23 = vadd.f32 %v3144_v15, %v1134_v17  ;;  %v1146_v24 = vrot.slane %v3148_v18, 4 }
 0x258   : > { %v3152_v25 = vpop.eup %2363 }
 0x259   : > { %v1136_v26 = vrot.slane %v1135_v23, 2  ;;  %v1147_v27 = vadd.f32 %v3148_v18, %v1146_v24  ;;  %v1140_v29 = vrot.slane %v3152_v25, 4  ;;  %v1199_v24 = vunpack.c.h.bf16 %v3062_v12 }
 0x25a   : > { %v3156_v30 = vpop.eup %2365 }
 0x25b   : > { %v1137_v31 = vadd.f32 %v1136_v26, %v1135_v23  ;;  %v1148_v32 = vrot.slane %v1147_v27, 2  ;;  %v1141_v33 = vadd.f32 %v3152_v25, %v1140_v29  ;;  %v1152_v34 = vrot.slane %v3156_v30, 4 }
 0x25d   : > { %v3160_v35 = vpop.eup %2367  ;;  %v1138_v36 = vrot.slane %v1137_v31, 1  ;;  %v1149_v37 = vadd.f32 %v1148_v32, %v1147_v27  ;;  %v1142_v38 = vrot.slane %v1141_v33, 2  ;;  %v1153_v39 = vadd.f32 %v3156_v30, %v1152_v34 }
 0x25e   : > { %v1158_v40 = vrot.slane %v3160_v35, 4 }
 0x25f   : > { %v3164_v41 = vpop.eup %2369  ;;  %v1139_v42 = vadd.f32 %v1138_v36, %v1137_v31  ;;  %v1150_v43 = vrot.slane %v1149_v37, 1  ;;  %v1143_v44 = vadd.f32 %v1142_v38, %v1141_v33  ;;  %v1154_v45 = vrot.slane %v1153_v39, 2 }
 0x260   : > { %v1159_v46 = vadd.f32 %v3160_v35, %v1158_v40  ;;  %v1164_v47 = vrot.slane %v3164_v41, 4  ;;  %v1201_v31 = vunpack.c.h.bf16 %v3069_v19  ;;  %v1202_v40 = vunpack.c.l.bf16 %v3072_v20 }
 0x261   : > { %v3168_v48 = vpop.eup %2371  ;;  %2375 = vrcp.f32 %v1139_v42  ;;  %v1151_v49 = vadd.f32 %v1150_v43, %v1149_v37  ;;  %v1144_v50 = vrot.slane %v1143_v44, 1  ;;  %v1155_v51 = vadd.f32 %v1154_v45, %v1153_v39 }
 0x262   : > { %v1160_v52 = vrot.slane %v1159_v46, 2  ;;  %v1165_v53 = vadd.f32 %v3164_v41, %v1164_v47  ;;  %v1170_v54 = vrot.slane %v3168_v48, 4  ;;  %v1203_v45 = vunpack.c.h.bf16 %v3072_v20 }
 0x263   : > { %v3172_v55 = vpop.eup %2373  ;;  %2377 = vrcp.f32 %v1151_v49  ;;  %v1145_v21 = vadd.f32 %v1144_v50, %v1143_v44  ;;  %v1156_v56 = vrot.slane %v1155_v51, 1 }
 0x264   : > { %v1161_v28 = vadd.f32 %v1160_v52, %v1159_v46  ;;  %v1166_v57 = vrot.slane %v1165_v53, 2  ;;  %v1171_v58 = vadd.f32 %v3168_v48, %v1170_v54  ;;  %v1176_v59 = vrot.slane %v3172_v55, 4 }
 0x265   : > { %2379 = vrcp.f32 %v1145_v21  ;;  %v1157_v60 = vadd.f32 %v1156_v56, %v1155_v51 }
 0x266   : > { %v1162_v61 = vrot.slane %v1161_v28, 1  ;;  %v1167_v62 = vadd.f32 %v1166_v57, %v1165_v53  ;;  %v1172_v1 = vrot.slane %v1171_v58, 2  ;;  %v1177_v2 = vadd.f32 %v3172_v55, %v1176_v59 }
 0x267   : > { %2381 = vrcp.f32 %v1157_v60  ;;  %v1205_v57 = vunpack.c.h.bf16 %v3080_v22 }
 0x268   : > { %v1163_v3 = vadd.f32 %v1162_v61, %v1161_v28  ;;  %v1168_v63 = vrot.slane %v1167_v62, 1  ;;  %v1173_v4 = vadd.f32 %v1172_v1, %v1171_v58  ;;  %v1178_v6 = vrot.slane %v1177_v2, 2 }
 0x26a   : > { %2383 = vrcp.f32 %v1163_v3  ;;  %v1169_v7 = vadd.f32 %v1168_v63, %v1167_v62  ;;  %v1174_v8 = vrot.slane %v1173_v4, 1  ;;  %v1179_v9 = vadd.f32 %v1178_v6, %v1177_v2 }
 0x26c   : > { %v1175_v10 = vadd.f32 %v1174_v8, %v1173_v4  ;;  %v1180_v5 = vrot.slane %v1179_v9, 1  ;;  %2385 = vrcp.f32 %v1169_v7 }
 0x26e   : > { %v2376_v14 = vpop.eup %2375  ;;  %v1181_v11 = vadd.f32 %v1180_v5, %v1179_v9  ;;  %2387 = vrcp.f32 %v1175_v10 }
 0x26f   : > { %v1190_v17 = vmul.f32 %v2376_v14, %v3144_v15 }
 0x270   : > { %v2378_v23 = vpop.eup %2377  ;;  %2389 = vrcp.f32 %v1181_v11 }
 0x271   : > { %v1192_v26 = vmul.f32 %v2378_v23, %v3148_v18  ;;  %v1206_v27 = vmul.f32 %v1198_v13, %v1190_v17 }
 0x272   : > { %v2380_v29 = vpop.eup %2379 }
 0x273   : > { %v1191_v32 = vmul.f32 %v2380_v29, %v3152_v25  ;;  %v1208_v33 = vmul.f32 %v1200_v16, %v1192_v26  ;;  %v1214_v34 = vrot.slane %v1206_v27, 4 }
 0x274   : > { %v2382_v36 = vpop.eup %2381 }
 0x275   : > { %v1193_v37 = vmul.f32 %v2382_v36, %v3156_v30  ;;  %v1207_v38 = vmul.f32 %v1199_v24, %v1191_v32  ;;  %v1215_v39 = vadd.f32 %v1214_v34, %v1206_v27  ;;  %v1226_v15 = vrot.slane %v1208_v33, 4 }
 0x276   : > { %v1204_v30 = vunpack.c.l.bf16 %v3080_v22 }
 0x277   : > { %v2384_v42 = vpop.eup %2383  ;;  %v1209_v12 = vmul.f32 %v1201_v31, %v1193_v37  ;;  %v1216_v43 = vrot.slane %v1215_v39, 2  ;;  %v1220_v18 = vrot.slane %v1207_v38, 4  ;;  %v1227_v44 = vadd.f32 %v1226_v15, %v1208_v33 }
 0x278   : > { %v1194_v19 = vmul.f32 %v2384_v42, %v3160_v35 }
 0x279   : > { %v2386_v25 = vpop.eup %2385  ;;  %v1217_v46 = vadd.f32 %v1216_v43, %v1215_v39  ;;  %v1221_v47 = vadd.f32 %v1220_v18, %v1207_v38  ;;  %v1228_v49 = vrot.slane %v1227_v44, 2  ;;  %v1232_v50 = vrot.slane %v1209_v12, 4 }
 0x27a   : > { %v1195_v51 = vmul.f32 %v2386_v25, %v3164_v41  ;;  %v1210_v52 = vmul.f32 %v1202_v40, %v1194_v19 }
 0x27b   : > { %v2388_v53 = vpop.eup %2387  ;;  %v1218_v54 = vrot.slane %v1217_v46, 1  ;;  %v1222_v21 = vrot.slane %v1221_v47, 2  ;;  %v1229_v56 = vadd.f32 %v1228_v49, %v1227_v44  ;;  %v1233_v28 = vadd.f32 %v1232_v50, %v1209_v12 }
 0x27c   : > { %v1196_v20 = vmul.f32 %v2388_v53, %v3168_v48  ;;  %v1211_v35 = vmul.f32 %v1203_v45, %v1195_v51  ;;  %v1238_v58 = vrot.slane %v1210_v52, 4 }
 0x27d   : > { %v2390_v59 = vpop.eup %2389  ;;  %v1219_v60 = vadd.f32 %v1218_v54, %v1217_v46  ;;  %v1223_v61 = vadd.f32 %v1222_v21, %v1221_v47  ;;  %v1230_v62 = vrot.slane %v1229_v56, 1  ;;  %v1234_v1 = vrot.slane %v1233_v28, 2 }
 0x27e   : > { %v1197_v2 = vmul.f32 %v2390_v59, %v3172_v55  ;;  %v1212_v41 = vmul.f32 %v1204_v30, %v1196_v20  ;;  %v1239_v3 = vadd.f32 %v1238_v58, %v1210_v52  ;;  %v1244_v63 = vrot.slane %v1211_v35, 4 }
 0x27f   : > { %v1224_v4 = vrot.slane %v1223_v61, 1  ;;  %v1231_v6 = vadd.f32 %v1230_v62, %v1229_v56  ;;  %v1235_v7 = vadd.f32 %v1234_v1, %v1233_v28  ;;  %v1374_v13 = vpack.c.bf16 %v1219_v60, %v1219_v60  ;;  %v2346_v62 = vld [vmem:[#allocation13] sm:$0xff]   ;;  %v2347_v1 = vld [vmem:[#allocation14 + $0x38] sm:$0xff]  }
 0x280   : > { %v1213_v8 = vmul.f32 %v1205_v57, %v1197_v2  ;;  %v1240_v9 = vrot.slane %v1239_v3, 2  ;;  %v1245_v22 = vadd.f32 %v1244_v63, %v1211_v35  ;;  %v1250_v10 = vrot.slane %v1212_v41, 4  ;;  %v2348_v2 = vld [vmem:[#allocation14 + $0x30] sm:$0xff]   ;;  %v2351_v63 = vld [vmem:[#allocation14 + $0x18] sm:$0xff]  }
 0x281   : > { %v1225_v48 = vadd.f32 %v1224_v4, %v1223_v61  ;;  %v1236_v5 = vrot.slane %v1235_v7, 1  ;;  %v1376_v55 = vpack.c.bf16 %v1231_v6, %v1231_v6  ;;  %v1413_v33 = vunpack.c.l.b16 %v1374_v13  ;;  %v2345_v61 = vld [vmem:[#allocation13 + $0x8] sm:$0xff]   ;;  %v2352_v4 = vld [vmem:[#allocation14 + $0x10] sm:$0xff]  }
 0x282   : > { %v1241_v14 = vadd.f32 %v1240_v9, %v1239_v3  ;;  %v1246_v11 = vrot.slane %v1245_v22, 2  ;;  %v1251_v16 = vadd.f32 %v1250_v10, %v1212_v41  ;;  %v1256_v17 = vrot.slane %v1213_v8, 4  ;;  %2159 = vmatpush3.bf16.msra.mxu0 %v2345_v61  ;;  %v2349_v41 = vld [vmem:[#allocation14 + $0x28] sm:$0xff]   ;;  %v2350_v3 = vld [vmem:[#allocation14 + $0x20] sm:$0xff]   ;;  %v1964_v6 = vld [vmem:[%s3272_s8] ss:$0 sm:$0xff] }
 0x283   : > { %v1237_v23 = vadd.f32 %v1236_v5, %v1235_v7  ;;  %v1375_v24 = vpack.c.bf16 %v1225_v48, %v1225_v48  ;;  %v1415_v15 = vunpack.c.l.b16 %v1376_v55  ;;  %2160 = vmatprep.subr.bf16.mxu0 %v2699_v0 }
 0x284   : > { %v1242_v26 = vrot.slane %v1241_v14, 1  ;;  %v1247_v27 = vadd.f32 %v1246_v11, %v1245_v22  ;;  %v1252_v29 = vrot.slane %v1251_v16, 2  ;;  %v1257_v31 = vadd.f32 %v1256_v17, %v1213_v8  ;;  %v1973_v8 = vld [vmem:[%s3274_s10] ss:$0 sm:$0xff]  ;;  %v2353_v17 = vld [vmem:[#allocation14 + $0x8] sm:$0xff]  }
 0x285   : > { %v1377_v32 = vpack.c.bf16 %v1237_v23, %v1237_v23  ;;  %v1414_v34 = vunpack.c.l.b16 %v1375_v24  ;;  %v2354_v23 = vld [vmem:[#allocation14] sm:$0xff]   ;;  %v1982_v24 = vld [vmem:[%s3276_s12] ss:$0 sm:$0xff] }
 0x286   : > { %v1243_v36 = vadd.f32 %v1242_v26, %v1241_v14  ;;  %v1248_v37 = vrot.slane %v1247_v27, 1  ;;  %v1253_v38 = vadd.f32 %v1252_v29, %v1251_v16  ;;  %v1258_v39 = vrot.slane %v1257_v31, 2  ;;  %2161 = vmatpush3.bf16.msra.mxu0 %v2346_v62 }
 0x287   : > { %v1416_v40 = vunpack.c.l.b16 %v1377_v32  ;;  %v1422_v42 = vsel %vm1421_vm2, %v1414_v34, %v1413_v33 }
 0x288   : > { %v1249_v12 = vadd.f32 %v1248_v37, %v1247_v27  ;;  %v1254_v43 = vrot.slane %v1253_v38, 1  ;;  %v1259_v18 = vadd.f32 %v1258_v39, %v1257_v31  ;;  %v1378_v44 = vpack.c.bf16 %v1243_v36, %v1243_v36 }
 0x289   : > { %v1424_v45 = vsel %vm1423_vm3, %v1415_v15, %v1422_v42 }
 0x28a   : > { %v1255_v19 = vadd.f32 %v1254_v43, %v1253_v38  ;;  %v1260_v25 = vrot.slane %v1259_v18, 1  ;;  %v1379_v46 = vpack.c.bf16 %v1249_v12, %v1249_v12  ;;  %v1417_v47 = vunpack.c.l.b16 %v1378_v44 }
 0x28b   : > { %v1426_v49 = vsel %vm1425_vm4, %v1416_v40, %v1424_v45 }
 0x28c   : > { %v1261_v50 = vadd.f32 %v1260_v25, %v1259_v18  ;;  %v1380_v30 = vpack.c.bf16 %v1255_v19, %v1255_v19  ;;  %v1418_v51 = vunpack.c.l.b16 %v1379_v46  ;;  %v1428_v52 = vsel %vm1427_vm5, %v1417_v47, %v1426_v49  ;;  %v1367_v35 = vpop.f32.mrf.mxu0 }
 0x28d   : > { %v1368_v7 = vadd.f32 %v1964_v6, %v1367_v35 }
 0x28e   : > { %v1381_v53 = vpack.c.bf16 %v1261_v50, %v1261_v50  ;;  %v1419_v54 = vunpack.c.l.b16 %v1380_v30  ;;  %v1430_v21 = vsel %vm1429_vm6, %v1418_v51, %v1428_v52  ;;  %v2124_v58 = vpop.f32.mrf.mxu0 }
 0x28f   : > { %v1373_v22 = vmax.f32 %v1368_v7, 0.0 }
 0x290   : > { %v1420_v56 = vunpack.c.l.b16 %v1381_v53  ;;  %v1432_v28 = vsel %vm1431_vm7, %v1419_v54, %v1430_v21  ;;  %v1370_v59 = vpop.f32.mrf.mxu0 }
 0x292   : > { %v1434_v57 = vsel %vm1433_vm8, %v1420_v56, %v1432_v28  ;;  %v2125_v60 = vpop.f32.mrf.mxu0 }
 0x293   : > { %v1435_v20 = vpack.c.b16 %v1434_v57, %v1434_v57 }
 0x295   : > { %2143 = vmatmul.mubr.bf16.vlgmr.msra.gmra.mxu1 %v1435_v20 }
 0x296   : > { %2182 = vmatprep.mubr.msk.bf16.mxu1 %vm2700_vm0, %v2699_v0  ;;  %2167 = vmatpush3.bf16.msra.mxu1 %v2347_v1 }
 0x297   : > { %2168 = vmatprep.subr.bf16.mxu1 %v2699_v0 }
 0x29a   : > { %2169 = vmatpush3.bf16.msra.mxu1 %v2348_v2 }
 0x29b   : > { %2170 = vmatprep.subr.bf16.mxu1 %v2699_v0 }
 0x29e   : > { %2171 = vmatpush3.bf16.msra.mxu1 %v2349_v41 }
 0x29f   : > { %2172 = vmatprep.subr.bf16.mxu1 %v2699_v0 }
 0x2a2   : > { %2173 = vmatpush3.bf16.msra.mxu1 %v2350_v3 }
 0x2a3   : > { %2174 = vmatprep.subr.bf16.mxu1 %v2699_v0 }
 0x2a6   : > { %2175 = vmatpush3.bf16.msra.mxu1 %v2351_v63 }
 0x2a7   : > { %2176 = vmatprep.subr.bf16.mxu1 %v2699_v0 }
 0x2aa   : > { %2177 = vmatpush3.bf16.msra.mxu1 %v2352_v4 }
 0x2ab   : > { %2178 = vmatprep.subr.bf16.mxu1 %v2699_v0 }
 0x2ae   : > { %2179 = vmatpush3.bf16.msra.mxu1 %v2353_v17 }
 0x2af   : > { %2180 = vmatprep.subr.bf16.mxu1 %v2699_v0  ;;  %v1991_v0 = vld [vmem:[%s3333_s0] ss:$0 sm:$0xff] }
 0x2b2   : > { %2181 = vmatpush3.bf16.msra.mxu1 %v2354_v23 }
 0x355   : > { %v1519_v9 = vpop.f32.mrf.mxu1 }
 0x356   : > { %v1520_v10 = vadd.f32 %v1973_v8, %v1519_v9 }
 0x357   : > { %v2144_v48 = vpop.f32.mrf.mxu1 }
 0x358   : > { %v1525_v5 = vmax.f32 %v1520_v10, 0.0 }
 0x359   : > { %v1522_v13 = vpop.f32.mrf.mxu1 }
 0x35a   : > { %v1526_v14 = vmul.f32 %v1525_v5, %v1373_v22 }
 0x35b   : > { %v2145_v11 = vpop.f32.mrf.mxu1 }
 0x35c   : > { %v1527_v16 = vpack.c.bf16 %v1526_v14, %v1526_v14 }
 0x35e   : > { %2163 = vmatmul.mubr.bf16.vlgmr.msra.gmra.mxu0 %v1527_v16 }
 0x41e   : > { %v1633_v55 = vpop.f32.mrf.mxu0 }
 0x41f   : > { %v1634_v26 = vadd.f32 %v1982_v24, %v1633_v55 }
 0x420   : > { %v2164_v27 = vpop.f32.mrf.mxu0 }
 0x421   : > { %v1639_v29 = vmax.f32 %v1634_v26, 0.0 }
 0x422   : > { %v1636_v31 = vpop.f32.mrf.mxu0 }
 0x423   : > { %v1640_v32 = vpack.c.bf16 %v1639_v29, %v1639_v29 }
 0x424   : > { %v2165_v33 = vpop.f32.mrf.mxu0 }
 0x425   : > { %2183 = vmatmul.mubr.bf16.vlgmr.msra.gmra.mxu1 %v1640_v32 }
 0x4e5   : > { %v1746_v34 = vpop.f32.mrf.mxu1 }
 0x4e6   : > { %v1747_v36 = vadd.f32 %v1991_v0, %v1746_v34 }
 0x4e7   : > { %v2184_v37 = vpop.f32.mrf.mxu1 }
 0x4e8   : > { %1752 = vst [vmem:[%s636_s16] sm:$0xff] %v1747_v36 }
 0x4e9   : > { %v1749_v38 = vpop.f32.mrf.mxu1 }
 0x4ea   : > { %2616 = shalt.err (!%p2613_p7)
}
 0x4eb   : > { %s2617_s20 = scalar_lea.hbm %s3221_s28, 128  ;;  %s2621_s27 = scalar_lea.hbm %s3334_s15, 256 }
 0x4ec   : > { %p2618_p12 = scmp.ne.s32.totalorder %s3221_s28, %s2617_s20  ;;  %p2622_p10 = scmp.lt.s32.totalorder %s3221_s28, %s3334_s15 }
 0x4ed   : > { %p2623_p11 = scmp.lt.s32.totalorder %s2621_s27, %s2617_s20 }
 0x4ee   : > { %p2619_p0 = pnand %p2618_p12, %p3335_p8 }
 0x4ef   : > { %p2624_p13 = por %p2623_p11, %p2622_p10 }
 0x4f0   : > { %p2620_p9 = pneg %p2619_p0 }
 0x4f2   : > { %p2625_p5 = pnand %p2624_p13, %p2620_p9 }
 0x4f4   : > { %2628 = shalt.err (!%p2625_p5)
}
 0x4f5   : > { %2214 = dma.vmem_to_hbm [thread:$0]  (%p3335_p8), %s3223_s23, 128, %s3221_s28, %s1754_s22   ;;  %v2185_v39 = vpop.f32.mrf.mxu1 }
 0x4f6 PF: > { %s3336_s26 = sld [smem:[#allocation27_spill]]  ;;  %s1779_s0 = sand.u32 1, %s2675_s18  }
 0x4f7   : > { %p3338_p4 = scmp.ge.s32.totalorder %s2687_s21, 2  ;;  %s1780_s25 = scalar_lea.sflag [#allocation4], %s1779_s0 }
 0x4fc   : > { %p3337_p1 = scmp.ne.s32.totalorder %s3336_s26, 0 }
 0x4fe   : > { %p2243_p6 = pnand %p3338_p4, %p3337_p1 }
 0x500   : > { %p2244_p2 = pneg %p2243_p6 }
 0x502   : > { %2670 = dma.done.wait (%p2244_p2), %s1780_s25, 128  }
 0x503   : > { %2672 = vsyncadd (%p2244_p2), %s1780_s25, 4294967168  ;;  %s3339_s21 = sld [smem:[#allocation25_spill]]  ;;  %s3342_s18 = smov %s2679_s19 }
 0x504   : > { %s3340_s16 = sld [smem:[#allocation24_spill]] }
 0x505   : > { %s3341_s20 = sld [smem:[#allocation26_spill]] }
 0x509   : > { %p34_p3 = scmp.ge.s32.totalorder %s3339_s21, 4  }
 0x50a   : > { %s3343_s19 = smov %s3340_s16 }
 0x50b   :  { %36 = sbr.rel (!%p34_p3) target bundleno = 20 (0x14), region = 162 }
 0x510   :  { %1785 = vsyncpa [#allocation3], 1 }
 0x511   :  { %1787 = vsyncpa [#allocation3 + $0x1], 1 }
 0x512   :  { %1788 = vsyncpa [#allocation6], 1 }
 0x513   :  { %1790 = vsyncpa [#allocation6 + $0x1], 1 }
 0x514   :  { %1791 = vsyncpa [#allocation9], 1 }
 0x515   :  { %1792 = vsyncpa [#allocation12], 1 }
 0x516   :  { %1793 = vsyncpa [#allocation15], 1 }
 0x517   :  { %1794 = vsyncpa [#allocation4], 1 }
 0x518   :  { %1796 = vsyncpa [#allocation4 + $0x1], 1 }

</bundles_post_ra>
